<compile_context>
chip_gen: v7x
topology: tpu7x:2x2x1
jax: 0.10.0
libtpu: 0.0.40
codegen_flags: <defaults>
</compile_context>

<pallas_src>
import functools

import jax
import jax.numpy as jnp
from jax.experimental import pallas as pl
from jax.experimental.pallas import tpu as pltpu


def _generator_kernel(x_ref,
                      w1_ref, b1_ref,
                      w2_ref, b2_ref,
                      w3_ref, b3_ref,
                      w4_ref, b4_ref,
                      w5_ref, b5_ref,
                      out_ref, prob_ref):
    # fc1..fc4: bf16 MXU inputs, f32 accumulate, bf16 bias+ReLU epilogue.
    h = x_ref[...].astype(jnp.bfloat16)

    h = jnp.dot(h, w1_ref[...], preferred_element_type=jnp.float32).astype(jnp.bfloat16)
    h = jnp.maximum(h + b1_ref[...], 0.0)

    h = jnp.dot(h, w2_ref[...], preferred_element_type=jnp.float32).astype(jnp.bfloat16)
    h = jnp.maximum(h + b2_ref[...], 0.0)

    h = jnp.dot(h, w3_ref[...], preferred_element_type=jnp.float32).astype(jnp.bfloat16)
    h = jnp.maximum(h + b3_ref[...], 0.0)

    h = jnp.dot(h, w4_ref[...], preferred_element_type=jnp.float32).astype(jnp.bfloat16)
    h = jnp.maximum(h + b4_ref[...], 0.0)

    # fc5: logits stay f32.
    logits = jnp.dot(h, w5_ref[...], preferred_element_type=jnp.float32) + b5_ref[...]
    out_ref[...] = logits

    # sigmoid(x) = 1 / (1 + exp(-x)); exp -> EUP, approx reciprocal -> vrcp (not VPU divide).
    prob_ref[...] = pl.reciprocal(1.0 + jnp.exp(-logits), approx=True)


def prepare_params(params):
    """One-time conversion (hoisted out of the per-call hot path).

    params: list of 5 (W, b), W: (in, out) f32 (transpose of nn.Linear weight), b: (1, out).
    Returns (prepped, g_out, g_out_pad) where prepped is a list of (W, b):
      * all W -> bf16
      * fc1-fc4 biases -> bf16 (bf16 epilogue)
      * fc5 bias -> f32, and fc5 W/b zero-padded to a multiple of 128 output lanes
        so output stores stay lane-dense.
    """
    n = len(params)
    g_out = params[-1][0].shape[1]
    g_out_pad = ((g_out + 127) // 128) * 128
    prepped = []
    for i, (w, b) in enumerate(params):
        if i < n - 1:
            prepped.append((w.astype(jnp.bfloat16), b.astype(jnp.bfloat16)))
        else:
            if g_out_pad != g_out:
                w = jnp.pad(w, ((0, 0), (0, g_out_pad - g_out)))
                b = jnp.pad(b, ((0, 0), (0, g_out_pad - g_out)))
            prepped.append((w.astype(jnp.bfloat16), b.astype(jnp.float32)))
    return prepped, g_out, g_out_pad


@functools.partial(jax.jit, static_argnames=("g_out", "tb"))
def generator_forward(x, prepped, g_out=None, tb=256):
    """x: (B, G_in) f32.  prepped: output of prepare_params.

    Returns (out, prob), each (B, g_out) f32 — matches the PyTorch forward.
    tb: batch tile.  Sweep 256-1024 on v6e/v7x for large B; keep cdiv(B, tb) >= 2
    on v7x so both TensorCores are used.
    """
    B, G_in = x.shape
    g_out_pad = prepped[-1][0].shape[1]

    TB = min(tb, B)
    num_blocks = pl.cdiv(B, TB)   # no batch padding: ragged last block is masked on store

    flat_args = [x]
    for w, b in prepped:
        flat_args.append(w)
        flat_args.append(b)

    # Resident weight/bias specs: constant block index -> fetched once, stay in VMEM.
    def resident_spec(a):
        return pl.BlockSpec(a.shape, lambda i: (0, 0))

    in_specs = [pl.BlockSpec((TB, G_in), lambda i: (i, 0))]
    in_specs += [resident_spec(a) for a in flat_args[1:]]

    out_spec = pl.BlockSpec((TB, g_out_pad), lambda i: (i, 0))

    out, prob = pl.pallas_call(
        _generator_kernel,
        out_shape=(jax.ShapeDtypeStruct((B, g_out_pad), jnp.float32),
                   jax.ShapeDtypeStruct((B, g_out_pad), jnp.float32)),
        grid=(num_blocks,),
        in_specs=in_specs,
        out_specs=(out_spec, out_spec),
        compiler_params=pltpu.CompilerParams(
            dimension_semantics=("parallel",)),
    )(*flat_args)

    if g_out is not None and g_out != g_out_pad:
        out, prob = out[:, :g_out], prob[:, :g_out]
    return out, prob


def init_params(key, g_in, g_out):
    """Deterministic init mimicking nn.Linear default (uniform +/- 1/sqrt(fan_in))."""
    dims = [g_in, 256, 512, 512, 256, g_out]
    params = []
    for i in range(5):
        fan_in, fan_out = dims[i], dims[i + 1]
        key, kw, kb = jax.random.split(key, 3)
        bound = 1.0 / jnp.sqrt(jnp.float32(fan_in))
        w = jax.random.uniform(kw, (fan_in, fan_out), jnp.float32, -bound, bound)
        b = jax.random.uniform(kb, (1, fan_out), jnp.float32, -bound, bound)
        params.append((w, b))
    return params


def reference_forward(x, prepped, g_out):
    """Plain-JAX reference mirroring the kernel's bf16-epilogue recipe."""
    h = x.astype(jnp.bfloat16)
    n = len(prepped)
    for i, (w, b) in enumerate(prepped):
        acc = jnp.dot(h, w, preferred_element_type=jnp.float32)
        if i < n - 1:
            h = jnp.maximum(acc.astype(jnp.bfloat16) + b, 0.0)
        else:
            logits = acc + b
    logits = logits[:, :g_out]
    return logits, jax.nn.sigmoid(logits)


if __name__ == "__main__":
    key = jax.random.PRNGKey(0)
    G_in, G_out = 32, 128        # G_out multiple of 128 -> lane-dense stores (no slicing)
    B = 512                      # 2 grid steps at TB=256 (keeps both v7x TCs busy)

    kx, kp = jax.random.split(key)
    x = jax.random.normal(kx, (B, G_in), jnp.float32)
    params = init_params(kp, G_in, G_out)

    # One-time param prep (bf16 weights etc.) — outside the per-call hot path.
    prepped, g_out, _ = prepare_params(params)

    out, prob = generator_forward(x, prepped, g_out=g_out, tb=256)
    out = jax.block_until_ready(out)
    prob = jax.block_until_ready(prob)

    ref_out, ref_prob = reference_forward(x, prepped, g_out)

    assert out.shape == (B, G_out) and prob.shape == (B, G_out)
    assert jnp.allclose(out, ref_out, atol=2e-3, rtol=2e-3)
    assert jnp.allclose(prob, ref_prob, atol=2e-3, rtol=2e-3)

    print("KERNEL_OK")
</pallas_src>

<mosaic_0001>
module attributes {stable_mosaic.version = 11 : i64} {
  func.func @_generator_kernel(%arg0: i32, %arg1: memref<256x32xf32, #tpu.memory_space<vmem>>, %arg2: memref<32x256xbf16, #tpu.memory_space<vmem>>, %arg3: memref<1x256xbf16, #tpu.memory_space<vmem>>, %arg4: memref<256x512xbf16, #tpu.memory_space<vmem>>, %arg5: memref<1x512xbf16, #tpu.memory_space<vmem>>, %arg6: memref<512x512xbf16, #tpu.memory_space<vmem>>, %arg7: memref<1x512xbf16, #tpu.memory_space<vmem>>, %arg8: memref<512x256xbf16, #tpu.memory_space<vmem>>, %arg9: memref<1x256xbf16, #tpu.memory_space<vmem>>, %arg10: memref<256x128xbf16, #tpu.memory_space<vmem>>, %arg11: memref<1x128xf32, #tpu.memory_space<vmem>>, %arg12: memref<256x128xf32, #tpu.memory_space<vmem>>, %arg13: memref<256x128xf32, #tpu.memory_space<vmem>>) attributes {dimension_semantics = [#tpu.dimension_semantics<parallel>], iteration_bounds = array<i64: 2>, scalar_prefetch = 0 : i64, scratch_operands = 0 : i64, tpu.core_type = #tpu.core_type<tc>, window_params = [{transform_indices = @transform_0, window_bounds = array<i64: 256, 32>}, {pipeline_mode = #tpu.pipeline_mode<synchronous>, transform_indices = @transform_1, window_bounds = array<i64: 32, 256>}, {pipeline_mode = #tpu.pipeline_mode<synchronous>, transform_indices = @transform_2, window_bounds = array<i64: 1, 256>}, {pipeline_mode = #tpu.pipeline_mode<synchronous>, transform_indices = @transform_3, window_bounds = array<i64: 256, 512>}, {pipeline_mode = #tpu.pipeline_mode<synchronous>, transform_indices = @transform_4, window_bounds = array<i64: 1, 512>}, {pipeline_mode = #tpu.pipeline_mode<synchronous>, transform_indices = @transform_5, window_bounds = array<i64: 512, 512>}, {pipeline_mode = #tpu.pipeline_mode<synchronous>, transform_indices = @transform_6, window_bounds = array<i64: 1, 512>}, {pipeline_mode = #tpu.pipeline_mode<synchronous>, transform_indices = @transform_7, window_bounds = array<i64: 512, 256>}, {pipeline_mode = #tpu.pipeline_mode<synchronous>, transform_indices = @transform_8, window_bounds = array<i64: 1, 256>}, {pipeline_mode = #tpu.pipeline_mode<synchronous>, transform_indices = @transform_9, window_bounds = array<i64: 256, 128>}, {pipeline_mode = #tpu.pipeline_mode<synchronous>, transform_indices = @transform_10, window_bounds = array<i64: 1, 128>}, {transform_indices = @transform_11, window_bounds = array<i64: 256, 128>}, {transform_indices = @transform_12, window_bounds = array<i64: 256, 128>}]} {
    %c0 = arith.constant 0 : index
    %c0_0 = arith.constant 0 : index
    %0 = vector.load %arg1[%c0, %c0_0] : memref<256x32xf32, #tpu.memory_space<vmem>>, vector<256x32xf32>
    %1 = arith.truncf %0 : vector<256x32xf32> to vector<256x32xbf16>
    %c0_1 = arith.constant 0 : index
    %c0_2 = arith.constant 0 : index
    %2 = vector.load %arg2[%c0_1, %c0_2] : memref<32x256xbf16, #tpu.memory_space<vmem>>, vector<32x256xbf16>
    %cst = arith.constant dense<0.000000e+00> : vector<256x256xf32>
    %3 = tpu.matmul %1, %2, %cst {dimension_numbers = #tpu.dot_dimension_numbers<[1], [0], [0], [1], [0, 0, 1, 1], [], []>} : vector<256x32xbf16>, vector<32x256xbf16>, vector<256x256xf32> -> vector<256x256xf32>
    %4 = arith.truncf %3 : vector<256x256xf32> to vector<256x256xbf16>
    %c0_3 = arith.constant 0 : index
    %c0_4 = arith.constant 0 : index
    %5 = vector.load %arg3[%c0_3, %c0_4] : memref<1x256xbf16, #tpu.memory_space<vmem>>, vector<1x256xbf16>
    %6 = vector.broadcast %5 : vector<1x256xbf16> to vector<256x256xbf16>
    %7 = arith.addf %4, %6 : vector<256x256xbf16>
    %cst_5 = arith.constant 0.000000e+00 : bf16
    %8 = vector.broadcast %cst_5 : bf16 to vector<256x256xbf16>
    %9 = arith.maximumf %7, %8 : vector<256x256xbf16>
    %c0_6 = arith.constant 0 : index
    %c0_7 = arith.constant 0 : index
    %10 = vector.load %arg4[%c0_6, %c0_7] : memref<256x512xbf16, #tpu.memory_space<vmem>>, vector<256x512xbf16>
    %cst_8 = arith.constant dense<0.000000e+00> : vector<256x512xf32>
    %11 = tpu.matmul %9, %10, %cst_8 {dimension_numbers = #tpu.dot_dimension_numbers<[1], [0], [0], [1], [0, 0, 1, 1], [], []>} : vector<256x256xbf16>, vector<256x512xbf16>, vector<256x512xf32> -> vector<256x512xf32>
    %12 = arith.truncf %11 : vector<256x512xf32> to vector<256x512xbf16>
    %c0_9 = arith.constant 0 : index
    %c0_10 = arith.constant 0 : index
    %13 = vector.load %arg5[%c0_9, %c0_10] : memref<1x512xbf16, #tpu.memory_space<vmem>>, vector<1x512xbf16>
    %14 = vector.broadcast %13 : vector<1x512xbf16> to vector<256x512xbf16>
    %15 = arith.addf %12, %14 : vector<256x512xbf16>
    %cst_11 = arith.constant 0.000000e+00 : bf16
    %16 = vector.broadcast %cst_11 : bf16 to vector<256x512xbf16>
    %17 = arith.maximumf %15, %16 : vector<256x512xbf16>
    %c0_12 = arith.constant 0 : index
    %c0_13 = arith.constant 0 : index
    %18 = vector.load %arg6[%c0_12, %c0_13] : memref<512x512xbf16, #tpu.memory_space<vmem>>, vector<512x512xbf16>
    %cst_14 = arith.constant dense<0.000000e+00> : vector<256x512xf32>
    %19 = tpu.matmul %17, %18, %cst_14 {dimension_numbers = #tpu.dot_dimension_numbers<[1], [0], [0], [1], [0, 0, 1, 1], [], []>} : vector<256x512xbf16>, vector<512x512xbf16>, vector<256x512xf32> -> vector<256x512xf32>
    %20 = arith.truncf %19 : vector<256x512xf32> to vector<256x512xbf16>
    %c0_15 = arith.constant 0 : index
    %c0_16 = arith.constant 0 : index
    %21 = vector.load %arg7[%c0_15, %c0_16] : memref<1x512xbf16, #tpu.memory_space<vmem>>, vector<1x512xbf16>
    %22 = vector.broadcast %21 : vector<1x512xbf16> to vector<256x512xbf16>
    %23 = arith.addf %20, %22 : vector<256x512xbf16>
    %cst_17 = arith.constant 0.000000e+00 : bf16
    %24 = vector.broadcast %cst_17 : bf16 to vector<256x512xbf16>
    %25 = arith.maximumf %23, %24 : vector<256x512xbf16>
    %c0_18 = arith.constant 0 : index
    %c0_19 = arith.constant 0 : index
    %26 = vector.load %arg8[%c0_18, %c0_19] : memref<512x256xbf16, #tpu.memory_space<vmem>>, vector<512x256xbf16>
    %cst_20 = arith.constant dense<0.000000e+00> : vector<256x256xf32>
    %27 = tpu.matmul %25, %26, %cst_20 {dimension_numbers = #tpu.dot_dimension_numbers<[1], [0], [0], [1], [0, 0, 1, 1], [], []>} : vector<256x512xbf16>, vector<512x256xbf16>, vector<256x256xf32> -> vector<256x256xf32>
    %28 = arith.truncf %27 : vector<256x256xf32> to vector<256x256xbf16>
    %c0_21 = arith.constant 0 : index
    %c0_22 = arith.constant 0 : index
    %29 = vector.load %arg9[%c0_21, %c0_22] : memref<1x256xbf16, #tpu.memory_space<vmem>>, vector<1x256xbf16>
    %30 = vector.broadcast %29 : vector<1x256xbf16> to vector<256x256xbf16>
    %31 = arith.addf %28, %30 : vector<256x256xbf16>
    %cst_23 = arith.constant 0.000000e+00 : bf16
    %32 = vector.broadcast %cst_23 : bf16 to vector<256x256xbf16>
    %33 = arith.maximumf %31, %32 : vector<256x256xbf16>
    %c0_24 = arith.constant 0 : index
    %c0_25 = arith.constant 0 : index
    %34 = vector.load %arg10[%c0_24, %c0_25] : memref<256x128xbf16, #tpu.memory_space<vmem>>, vector<256x128xbf16>
    %cst_26 = arith.constant dense<0.000000e+00> : vector<256x128xf32>
    %35 = tpu.matmul %33, %34, %cst_26 {dimension_numbers = #tpu.dot_dimension_numbers<[1], [0], [0], [1], [0, 0, 1, 1], [], []>} : vector<256x256xbf16>, vector<256x128xbf16>, vector<256x128xf32> -> vector<256x128xf32>
    %c0_27 = arith.constant 0 : index
    %c0_28 = arith.constant 0 : index
    %36 = vector.load %arg11[%c0_27, %c0_28] : memref<1x128xf32, #tpu.memory_space<vmem>>, vector<1x128xf32>
    %37 = vector.broadcast %36 : vector<1x128xf32> to vector<256x128xf32>
    %38 = arith.addf %35, %37 : vector<256x128xf32>
    %c0_29 = arith.constant 0 : index
    %c0_30 = arith.constant 0 : index
    %39 = vector.load %arg12[%c0_29, %c0_30] : memref<256x128xf32, #tpu.memory_space<vmem>>, vector<256x128xf32>
    tpu.vector_store %arg12[%c0_29, %c0_30], %38 {strides = array<i32>} : memref<256x128xf32, #tpu.memory_space<vmem>>, vector<256x128xf32>,
    %cst_31 = arith.constant 0.000000e+00 : f32
    %40 = vector.broadcast %cst_31 : f32 to vector<256x128xf32>
    %41 = arith.subf %40, %38 : vector<256x128xf32>
    %42 = math.exp %41 : vector<256x128xf32>
    %cst_32 = arith.constant 1.000000e+00 : f32
    %43 = vector.broadcast %cst_32 : f32 to vector<256x128xf32>
    %44 = arith.addf %43, %42 : vector<256x128xf32>
    %45 = tpu.reciprocal %44 {approx = true} : vector<256x128xf32> -> vector<256x128xf32>
    %c0_33 = arith.constant 0 : index
    %c0_34 = arith.constant 0 : index
    %46 = vector.load %arg13[%c0_33, %c0_34] : memref<256x128xf32, #tpu.memory_space<vmem>>, vector<256x128xf32>
    tpu.vector_store %arg13[%c0_33, %c0_34], %45 {strides = array<i32>} : memref<256x128xf32, #tpu.memory_space<vmem>>, vector<256x128xf32>,
    return
  }
  func.func @transform_0(%arg0: i32) -> (i32, i32) {
    %c0_i32 = arith.constant 0 : i32
    %c0_i32_0 = arith.constant 0 : i32
    return %arg0, %c0_i32 : i32, i32
  }
  func.func @transform_1(%arg0: i32) -> (i32, i32) {
    %c0_i32 = arith.constant 0 : i32
    %c0_i32_0 = arith.constant 0 : i32
    %c0_i32_1 = arith.constant 0 : i32
    return %c0_i32, %c0_i32_0 : i32, i32
  }
  func.func @transform_2(%arg0: i32) -> (i32, i32) {
    %c0_i32 = arith.constant 0 : i32
    %c0_i32_0 = arith.constant 0 : i32
    %c0_i32_1 = arith.constant 0 : i32
    return %c0_i32, %c0_i32_0 : i32, i32
  }
  func.func @transform_3(%arg0: i32) -> (i32, i32) {
    %c0_i32 = arith.constant 0 : i32
    %c0_i32_0 = arith.constant 0 : i32
    %c0_i32_1 = arith.constant 0 : i32
    return %c0_i32, %c0_i32_0 : i32, i32
  }
  func.func @transform_4(%arg0: i32) -> (i32, i32) {
    %c0_i32 = arith.constant 0 : i32
    %c0_i32_0 = arith.constant 0 : i32
    %c0_i32_1 = arith.constant 0 : i32
    return %c0_i32, %c0_i32_0 : i32, i32
  }
  func.func @transform_5(%arg0: i32) -> (i32, i32) {
    %c0_i32 = arith.constant 0 : i32
    %c0_i32_0 = arith.constant 0 : i32
    %c0_i32_1 = arith.constant 0 : i32
    return %c0_i32, %c0_i32_0 : i32, i32
  }
  func.func @transform_6(%arg0: i32) -> (i32, i32) {
    %c0_i32 = arith.constant 0 : i32
    %c0_i32_0 = arith.constant 0 : i32
    %c0_i32_1 = arith.constant 0 : i32
    return %c0_i32, %c0_i32_0 : i32, i32
  }
  func.func @transform_7(%arg0: i32) -> (i32, i32) {
    %c0_i32 = arith.constant 0 : i32
    %c0_i32_0 = arith.constant 0 : i32
    %c0_i32_1 = arith.constant 0 : i32
    return %c0_i32, %c0_i32_0 : i32, i32
  }
  func.func @transform_8(%arg0: i32) -> (i32, i32) {
    %c0_i32 = arith.constant 0 : i32
    %c0_i32_0 = arith.constant 0 : i32
    %c0_i32_1 = arith.constant 0 : i32
    return %c0_i32, %c0_i32_0 : i32, i32
  }
  func.func @transform_9(%arg0: i32) -> (i32, i32) {
    %c0_i32 = arith.constant 0 : i32
    %c0_i32_0 = arith.constant 0 : i32
    %c0_i32_1 = arith.constant 0 : i32
    return %c0_i32, %c0_i32_0 : i32, i32
  }
  func.func @transform_10(%arg0: i32) -> (i32, i32) {
    %c0_i32 = arith.constant 0 : i32
    %c0_i32_0 = arith.constant 0 : i32
    %c0_i32_1 = arith.constant 0 : i32
    return %c0_i32, %c0_i32_0 : i32, i32
  }
  func.func @transform_11(%arg0: i32) -> (i32, i32) {
    %c0_i32 = arith.constant 0 : i32
    %c0_i32_0 = arith.constant 0 : i32
    return %arg0, %c0_i32 : i32, i32
  }
  func.func @transform_12(%arg0: i32) -> (i32, i32) {
    %c0_i32 = arith.constant 0 : i32
    %c0_i32_0 = arith.constant 0 : i32
    return %arg0, %c0_i32 : i32, i32
  }
}

</mosaic_0001>

<bundles_post_ra>
// kernel: generator_forward.1
= control target key start
LH: loop header
LB: loop body
LE: loop exit
PB: predicated region body
PF: predicated region fallthrough
CT: control target
= control target key end

     0   :  { %s8511_s0 = inlined_call_operand.vmem [shape: f32[512,32], index: 0, kind: input, shape index: {}]   ;;  %s8512_s1 = inlined_call_operand.hbm [shape: bf16[32,256], index: 1, kind: input, shape index: {}]   ;;  %s8513_s2 = inlined_call_operand.vmem [shape: bf16[1,256], index: 2, kind: input, shape index: {}]   ;;  %s8514_s3 = inlined_call_operand.vmem [shape: bf16[256,512], index: 3, kind: input, shape index: {}]   ;;  %s8515_s4 = inlined_call_operand.vmem [shape: bf16[1,512], index: 4, kind: input, shape index: {}]   ;;  %s8516_s5 = inlined_call_operand.hbm [shape: bf16[512,512], index: 5, kind: input, shape index: {}]   ;;  %s8517_s6 = inlined_call_operand.vmem [shape: bf16[1,512], index: 6, kind: input, shape index: {}]   ;;  %s8518_s7 = inlined_call_operand.hbm [shape: bf16[512,256], index: 7, kind: input, shape index: {}]   ;;  %s8519_s8 = inlined_call_operand.vmem [shape: bf16[1,256], index: 8, kind: input, shape index: {}]   ;;  %s8520_s9 = inlined_call_operand.vmem [shape: bf16[256,128], index: 9, kind: input, shape index: {}]   ;;  %s8521_s10 = inlined_call_operand.vmem [shape: f32[1,128], index: 10, kind: input, shape index: {}]   ;;  %s8522_s11 = inlined_call_operand.hbm [shape: f32[512,128], index: 11, kind: output, shape index: {0}]   ;;  %s8523_s12 = inlined_call_operand.hbm [shape: f32[512,128], index: 12, kind: output, shape index: {1}]  }
   0x1   :  { %8577 = sst [smem:[#allocation41_spill]] %s8516_s5 }
   0x2   :  { %8578 = sst [smem:[#allocation42_spill]] %s8523_s12 }
   0x3   :  { %18 = vsyncpa [#allocation3], 0 }
   0x4   :  { %19 = vsyncpa [#allocation6], 0 }
   0x5   :  { %20 = vsyncpa [#allocation4], 0 }
   0x6   :  { %22 = vsyncpa [#allocation4 + $0x1], 0 }
   0x7   :  { %23 = vsyncpa [#allocation10], 0 }
   0x8   :  { %25 = vsyncpa [#allocation10 + $0x1], 0  ;;  %s6814_s21 = smov 0   ;;  %s6816_s22 = smov 0  }
   0x9   :  { %s6818_s23 = smov 0   ;;  %s6820_s24 = smov 0  }
   0xa LB: > { %8579 = sst [smem:[#allocation15_spill]] %s6722_s21  ;;  %s6835_s25 = sadd.s32 4294967295, %s6734_s24   ;;  %s6734_s24 = sphi %s6820_s24, %s8745_s24   ;;  %s6730_s23 = sphi %s6818_s23, %s8747_s23   ;;  %s6726_s22 = sphi %s6816_s22, %s8749_s22   ;;  %s6722_s21 = sphi %s6814_s21, %s8748_s21  }
   0xb   : > { %8580 = sst [smem:[#allocation16_spill]] %s6730_s23  ;;  %s5306_s26 = sadd.s32 4294967294, %s6734_s24  }
   0xc   : > { %8581 = sst [smem:[#allocation17_spill]] %s6734_s24  ;;  %s6839_s27 = sadd.s32 1, %s6734_s24  }
   0xd   : > { %8582 = sst [smem:[#allocation18_spill]] %s6839_s27  ;;  %s274_s28 = sadd.s32 1, %s6730_s23 }
   0xe   : > { %s271_s29 = ssub.s32 %s6734_s24, %s6839_s27  ;;  %p284_p0 = scmp.ne.s32.totalorder %s6730_s23, %s6726_s22 }
   0xf   : > { %p272_p1 = scmp.eq.s32.totalorder %s271_s29, 0  ;;  %p285_p2 = scmp.eq.s32.totalorder %s6835_s25, 1 }
  0x10   : > { %p290_p3 = scmp.ne.s32.totalorder %s6726_s22, %s6722_s21  ;;  %p291_p4 = scmp.eq.s32.totalorder %s5306_s26, 1 }
  0x11   : > { %s6850_s30 = scalar_select %p272_p1, %s6730_s23, %s274_s28  }
  0x12   : > { %p6852_p5 = por %p285_p2, %p284_p0  ;;  %p6856_p6 = por %p291_p4, %p290_p3 }
  0x13   : > { %8583 = sst [smem:[#allocation19_spill]] %s6850_s30  ;;  %p5307_p7 = scmp.ge.s32.totalorder %s6734_s24, 1 }
  0x14   : > { %s8584_s13 = scalar_select %p6852_p5, 1, 0 }
  0x15   : > { %s8585_s14 = scalar_select %p6856_p6, 1, 0 }
  0x16   : > { %p324_p8 = scmp.lt.s32.totalorder %s6734_s24, 3  ;;  %p8527_p9 = scmp.eq.s32.totalorder %s6835_s25, 0 }
  0x17   : > { %8586 = sst [smem:[#allocation20_spill]] %s8585_s14  ;;  %s6736_s16 = smov [#allocation5]  }
  0x18   : > { %p6863_p10 = pnand %p5307_p7, %p324_p8  ;;  %s358_s17 = sshll.u32 %s6736_s16, 4  ;;  %s359_s17 = int_to_ptr.vmem [resolvable:$true] %s358_s17 }
  0x19   : > { %s6737_s19 = smov [#allocation2]   ;;  %s8589_s5 = sld [smem:[#allocation41_spill]] }
  0x1a   : > { %s8587_s15 = scalar_select %p6863_p10, 1, 0 }
  0x1b   : > { %p5947_p11 = pneg %p6863_p10  ;;  %s336_s20 = sshll.u32 %s6737_s19, 4  ;;  %s6875_s20 = int_to_ptr.vmem [resolvable:$true] %s336_s20 }
  0x1d   : > { %p6871_p12 = pnand %p8527_p9, %p5947_p11 }
  0x1f   : > { %s6548_s29 = scalar_lea.hbm %s8589_s5, 16384  ;;  %p6885_p0 = pneg %p6871_p12 }
  0x20   : > { %p6549_p13 = scmp.ne.s32.totalorder %s8589_s5, %s6548_s29  ;;  %p6555_p3 = scmp.lt.u32.totalorder %s6548_s29, %s8589_s5 }
  0x22   : > { %p6551_p1 = pnand %p6885_p0, %p6549_p13 }
  0x24   : > { %p6552_p2 = pneg %p6551_p1 }
  0x26   : > { %p6557_p4 = pnand %p6555_p3, %p6552_p2 }
  0x28   : > { %6560 = shalt.err (!%p6557_p4)
}
  0x29   : > { %s6561_s26 = scalar_lea.vmem %s359_s17, 16384  ;;  %p6569_p9 = scmp.lt.s32.totalorder %s359_s17, %s359_s17 }
  0x2a   : > { %p6562_p7 = scmp.ne.s32.totalorder %s359_s17, %s6561_s26  ;;  %p6570_p6 = scmp.lt.s32.totalorder %s6561_s26, %s6561_s26 }
  0x2c   : > { %p6564_p8 = pnand %p6562_p7, %p6885_p0  ;;  %p6571_p5 = por %p6570_p6, %p6569_p9 }
  0x2e   : > { %p6565_p11 = pneg %p6564_p8 }
  0x30   : > { %p6572_p10 = pnand %p6571_p5, %p6565_p11 }
  0x32   : > { %6575 = shalt.err (!%p6572_p10)
}
  0x33   : > { %s6738_s23 = smov 256   ;;  %s6739_s30 = smov 16  }
  0x34   : > { %5953 = dma.hbm_to_vmem [thread:$0]  (!%p6871_p12), %s8589_s5, 16384, %s359_s17, [#allocation6], %s6738_s23, %s6738_s23, %s6739_s30  }
  0x35   : > { %s6576_s14 = scalar_lea.hbm %s8512_s1, 512 }
  0x36   : > { %p6577_p13 = scmp.ne.s32.totalorder %s8512_s1, %s6576_s14  ;;  %p6583_p9 = scmp.lt.u32.totalorder %s6576_s14, %s8512_s1 }
  0x38   : > { %p6579_p5 = pnand %p6577_p13, %p6885_p0 }
  0x3a   : > { %p6580_p6 = pneg %p6579_p5 }
  0x3c   : > { %p6585_p10 = pnand %p6583_p9, %p6580_p6 }
  0x3e   : > { %6588 = shalt.err (!%p6585_p10)
}
  0x3f   : > { %s6589_s17 = scalar_lea.vmem %s6875_s20, 512  ;;  %p6597_p4 = scmp.lt.s32.totalorder %s6875_s20, %s6875_s20 }
  0x40   : > { %p6590_p1 = scmp.ne.s32.totalorder %s6875_s20, %s6589_s17  ;;  %p6598_p7 = scmp.lt.s32.totalorder %s6589_s17, %s6589_s17 }
  0x42   : > { %p6592_p2 = pnand %p6590_p1, %p6885_p0  ;;  %p6599_p8 = por %p6598_p7, %p6597_p4 }
  0x44   : > { %p6593_p3 = pneg %p6592_p2 }
  0x46   : > { %p6600_p11 = pnand %p6599_p8, %p6593_p3 }
  0x48   : > { %6603 = shalt.err (!%p6600_p11)
}
  0x49   : > { %s6740_s21 = smov 128   ;;  %s6741_s12 = smov 8  }
  0x4a   : > { %5950 = dma.hbm_to_vmem [thread:$0]  (!%p6871_p12), %s8512_s1, 512, %s6875_s20, [#allocation3], %s6740_s21, %s6740_s21, %s6741_s12  }
  0x4b   : > { %s6742_s23 = smov [#allocation7]   ;;  %s6604_s29 = scalar_lea.hbm %s8518_s7, 8192 }
  0x4c   : > { %s374_s30 = sshll.u32 %s6742_s23, 4  ;;  %p6605_p13 = scmp.ne.s32.totalorder %s8518_s7, %s6604_s29  ;;  %s375_s30 = int_to_ptr.vmem [resolvable:$true] %s374_s30 }
  0x4d   : > { %p6611_p9 = scmp.lt.u32.totalorder %s6604_s29, %s8518_s7 }
  0x4e   : > { %p6607_p5 = pnand %p6605_p13, %p6885_p0 }
  0x50   : > { %p6608_p6 = pneg %p6607_p5 }
  0x52   : > { %p6613_p10 = pnand %p6611_p9, %p6608_p6 }
  0x54   : > { %6616 = shalt.err (!%p6613_p10)
}
  0x55   : > { %s6617_s20 = scalar_lea.vmem %s375_s30, 8192  ;;  %p6625_p4 = scmp.lt.s32.totalorder %s375_s30, %s375_s30 }
  0x56   : > { %p6618_p1 = scmp.ne.s32.totalorder %s375_s30, %s6617_s20  ;;  %p6626_p7 = scmp.lt.s32.totalorder %s6617_s20, %s6617_s20 }
  0x58   : > { %p6620_p2 = pnand %p6618_p1, %p6885_p0  ;;  %p6627_p8 = por %p6626_p7, %p6625_p4 }
  0x5a   : > { %p6621_p3 = pneg %p6620_p2 }
  0x5c   : > { %p6628_p11 = pnand %p6627_p8, %p6621_p3 }
  0x5e   : > { %6631 = shalt.err (!%p6628_p11)
}
  0x5f   : > { %5956 = dma.hbm_to_vmem [thread:$0]  (!%p6871_p12), %s8518_s7, 8192, %s375_s30, [#allocation6], %s6740_s21, %s6740_s21, %s6741_s12  }
  0x60   : > { %p8591_p13 = scmp.ne.s32.totalorder %s8587_s15, 0 }
  0x62   : > { %408 = sbr.rel (%p8591_p13) target bundleno = 1658 (0x67a), region = 64 }
  0x69   : > { %p8592_p5 = scmp.eq.s32.totalorder %s6835_s25, 0 }
  0x6b   : > { %6705 = dma.done.wait (%p8592_p5), [#allocation3], 512   ;;  %p8593_p0 = pmov %p8592_p5 }
  0x6d   : > { %6707 = vsyncadd (%p8593_p0), [#allocation3], 4294966784  ;;  %p8594_p6 = pmov %p8593_p0 }
  0x6e   : > { %p8595_p9 = pmov %p8593_p0 }
  0x6f   : > { %6709 = dma.done.wait (%p8594_p6), [#allocation6], 24576  }
  0x70   : > { %6711 = vsyncadd (%p8595_p9), [#allocation6], 4294942720  ;;  %s5318_s5 = sshll.u32 %s6835_s25, 5  ;;  %v8534_v0 = vmov 0   ;;  %v6014_v1 = vld [vmem:[#allocation2 + $0x4] ss:$8 sps:$4 sm:$0xff]  }
  0x71   : > { %625 = vmatprep.mubr.bf16.mxu0 %v8534_v0  ;;  %p464_p12 = scmp.lt.s32.totalorder %s5318_s5, 63  ;;  %v6016_v2 = vld [vmem:[#allocation2] ss:$8 sps:$4 sm:$0xff]   ;;  %593 = vmatprep.subr.bf16.mxu0 %v6014_v1  ;;  %v6017_v3 = vld [vmem:[#allocation2 + $0x14] ss:$8 sps:$4 sm:$0xff]   ;;  %vm544_vm0 = vcmask 261120  }
  0x72   : > { %594 = vmatpush1.bf16.msra.mxu0 %v6016_v2  ;;  %v6019_v4 = vld [vmem:[#allocation2 + $0x10] ss:$8 sps:$4 sm:$0xff]   ;;  %v6020_v11 = vld [vmem:[%s8514_s3 + $0x4] ss:$16 sps:$4 sm:$0xff]   ;;  %v6024_v13 = vld [vmem:[%s8514_s3 + $0xc] ss:$16 sps:$4 sm:$0xff]  }
  0x73   : > { %s8751_s5 = smov (!%p464_p12, %s5318_s5), 63  ;;  %595 = vmatprep.subr.bf16.mxu0 %v6017_v3  ;;  %v6022_v12 = vld [vmem:[%s8514_s3 + $0x8] ss:$16 sps:$4 sm:$0xff]   ;;  %v6025_v14 = vld [vmem:[%s8514_s3] ss:$16 sps:$4 sm:$0xff]   ;;  %1304 = vmatprep.subr.bf16.mxu1 %v6020_v11  ;;  %s8307_s29 = sand.u32 1, %s6726_s22  }
  0x74   : > { %s5319_s15 = sshll.u32 %s8751_s5, 3  ;;  %v6026_v15 = vld [vmem:[%s8514_s3 + $0x24] ss:$16 sps:$4 sm:$0xff]   ;;  %1305 = vmatpush1.bf16.msra.mxu1 %v6025_v14  ;;  %v6028_v18 = vld [vmem:[%s8514_s3 + $0x28] ss:$16 sps:$4 sm:$0xff]   ;;  %s5316_s19 = sshll.u32 %s8307_s29, 8 }
  0x75   : > { %s6957_s21 = scalar_lea.vmem %s8511_s0, %s5319_s15  ;;  %1306 = vmatprep.subr.bf16.mxu1 %v6026_v15  ;;  %v6030_v19 = vld [vmem:[%s8514_s3 + $0x2c] ss:$16 sps:$4 sm:$0xff]   ;;  %v6031_v20 = vld [vmem:[%s8514_s3 + $0x20] ss:$16 sps:$4 sm:$0xff]   ;;  %v6032_v21 = vld [vmem:[%s8514_s3 + $0x44] ss:$16 sps:$4 sm:$0xff]  }
  0x76   : > { %v472_v5 = vld [vmem:[%s6957_s21] sm:$0xff]  ;;  %v473_v6 = vld [vmem:[%s6957_s21 + $0x8] sm:$0xff]  ;;  %596 = vmatpush1.bf16.msra.mxu0 %v6019_v4  ;;  %v474_v8 = vld [vmem:[%s6957_s21 + $0x10] sm:$0xff]  ;;  %s8318_s20 = scalar_lea.vmem [#allocation8], %s5316_s19  ;;  %s8337_s24 = scalar_lea.vmem [#allocation9], %s5316_s19 }
  0x77   : > { %v504_v7 = vpack.c.bf16 %v473_v6, %v472_v5  ;;  %v475_v9 = vld [vmem:[%s6957_s21 + $0x18] sm:$0xff]  ;;  %v476_v16 = vld [vmem:[%s6957_s21 + $0x20] sm:$0xff]  ;;  %v477_v17 = vld [vmem:[%s6957_s21 + $0x28] sm:$0xff]  ;;  %1497 = vmatprep.subr.bf16.mxu0 %v6024_v13  ;;  %s5625_s14 = sshll.u32 %s6835_s25, 12  ;;  %s5165_s5 = sshll.u32 %s8318_s20, 4  ;;  %s8417_s5 = int_to_ptr.vmem [resolvable:$true] %s5165_s5 }
  0x78   : > { %v505_v10 = vpack.c.bf16 %v475_v9, %v474_v8  ;;  %v6036_v22 = vld [vmem:[%s8514_s3 + $0x4c] ss:$16 sps:$4 sm:$0xff]   ;;  %1307 = vmatpush1.bf16.msra.mxu1 %v6031_v20  ;;  %v6037_v23 = vld [vmem:[%s8514_s3 + $0x40] ss:$16 sps:$4 sm:$0xff]   ;;  %v506_v24 = vpack.c.bf16 %v477_v17, %v476_v16  ;;  %v6038_v25 = vld [vmem:[%s8514_s3 + $0x64] ss:$16 sps:$4 sm:$0xff]   ;;  %s8415_s16 = scalar_lea.hbm %s8522_s11, %s5625_s14 }
  0x79   : > { %5324 = vmatmul.mubr.msk.bf16.vlgmr.msra.gmra.mrb[0].mxu0 %vm544_vm0, %v504_v7  ;;  %1308 = vmatprep.subr.bf16.mxu1 %v6032_v21  ;;  %v6034_v26 = vld [vmem:[%s8514_s3 + $0x48] ss:$16 sps:$4 sm:$0xff]   ;;  %v6042_v27 = vld [vmem:[%s8514_s3 + $0x6c] ss:$16 sps:$4 sm:$0xff]   ;;  %v478_v28 = vld [vmem:[%s6957_s21 + $0x30] sm:$0xff]  ;;  %s5147_s12 = scalar_lea.sflag [#allocation4], %s8307_s29 }
  0x7a   : > { %635 = vmatprep.mubr.bf16.mxu0 %v8534_v0  ;;  %1498 = vmatpush1.bf16.msra.mxu0 %v6022_v12  ;;  %v6043_v29 = vld [vmem:[%s8514_s3 + $0x60] ss:$16 sps:$4 sm:$0xff]   ;;  %v479_v30 = vld [vmem:[%s6957_s21 + $0x38] sm:$0xff]  ;;  %v6044_v31 = vld [vmem:[%s8514_s3 + $0x84] ss:$16 sps:$4 sm:$0xff]   ;;  %s6632_s23 = scalar_lea.vmem %s8417_s5, 4096 }
  0x7b   : > { %1499 = vmatprep.subr.bf16.mxu0 %v6030_v19  ;;  %v6040_v32 = vld [vmem:[%s8514_s3 + $0x68] ss:$16 sps:$4 sm:$0xff]   ;;  %v6048_v33 = vld [vmem:[%s8514_s3 + $0x8c] ss:$16 sps:$4 sm:$0xff]   ;;  %v6049_v34 = vld [vmem:[%s8514_s3 + $0x80] ss:$16 sps:$4 sm:$0xff]   ;;  %v507_v35 = vpack.c.bf16 %v479_v30, %v478_v28  ;;  %p6633_p10 = scmp.ne.s32.totalorder %s8417_s5, %s6632_s23 }
  0x7c   : > { %1309 = vmatpush1.bf16.msra.mxu1 %v6037_v23  ;;  %v6050_v36 = vld [vmem:[%s8514_s3 + $0xa4] ss:$16 sps:$4 sm:$0xff]   ;;  %v6046_v37 = vld [vmem:[%s8514_s3 + $0x88] ss:$16 sps:$4 sm:$0xff]   ;;  %v6054_v38 = vld [vmem:[%s8514_s3 + $0xac] ss:$16 sps:$4 sm:$0xff]  }
  0x7d   : > { %1310 = vmatprep.subr.bf16.mxu1 %v6038_v25  ;;  %v480_v39 = vld [vmem:[%s6957_s21 + $0x40] sm:$0xff]  ;;  %v481_v41 = vld [vmem:[%s6957_s21 + $0x48] sm:$0xff]  ;;  %v482_v50 = vld [vmem:[%s6957_s21 + $0x50] sm:$0xff]  ;;  %p8738_p1 = scmp.ne.s32.totalorder %s8584_s13, 0 }
  0x7e   : > { %1500 = vmatpush1.bf16.msra.mxu0 %v6028_v18  ;;  %v6055_v40 = vld [vmem:[%s8514_s3 + $0xa0] ss:$16 sps:$4 sm:$0xff]   ;;  %v6056_v42 = vld [vmem:[%s8514_s3 + $0xc4] ss:$16 sps:$4 sm:$0xff]   ;;  %v6052_v43 = vld [vmem:[%s8514_s3 + $0xa8] ss:$16 sps:$4 sm:$0xff]   ;;  %v508_v46 = vpack.c.bf16 %v481_v41, %v480_v39 }
  0x7f   : > { %1501 = vmatprep.subr.bf16.mxu0 %v6036_v22  ;;  %v6060_v44 = vld [vmem:[%s8514_s3 + $0xcc] ss:$16 sps:$4 sm:$0xff]   ;;  %v6061_v45 = vld [vmem:[%s8514_s3 + $0xc0] ss:$16 sps:$4 sm:$0xff]   ;;  %v6062_v47 = vld [vmem:[%s8514_s3 + $0xe4] ss:$16 sps:$4 sm:$0xff]   ;;  %p6634_p2 = pnand %p6633_p10, %p8738_p1 }
  0x80   : > { %1311 = vmatpush1.bf16.msra.mxu1 %v6043_v29  ;;  %v6058_v48 = vld [vmem:[%s8514_s3 + $0xc8] ss:$16 sps:$4 sm:$0xff]   ;;  %v6066_v49 = vld [vmem:[%s8514_s3 + $0xec] ss:$16 sps:$4 sm:$0xff]   ;;  %v6067_v51 = vld [vmem:[%s8514_s3 + $0xe0] ss:$16 sps:$4 sm:$0xff]  }
  0x81   : > { %5325 = vmatmul.mubr.msk.bf16.gmra.mrb[4].mxu0 %vm544_vm0, %v505_v10  ;;  %1312 = vmatprep.subr.bf16.mxu1 %v6044_v31  ;;  %v483_v52 = vld [vmem:[%s6957_s21 + $0x58] sm:$0xff]  ;;  %v6068_v53 = vld [vmem:[%s8514_s3 + $0x104] ss:$16 sps:$4 sm:$0xff]   ;;  %v6073_v56 = vld [vmem:[%s8514_s3 + $0x100] ss:$16 sps:$4 sm:$0xff]   ;;  %p6635_p3 = pneg %p6634_p2 }
  0x82   : > { %645 = vmatprep.mubr.bf16.mxu0 %v8534_v0  ;;  %1502 = vmatpush1.bf16.msra.mxu0 %v6034_v26  ;;  %v6064_v54 = vld [vmem:[%s8514_s3 + $0xe8] ss:$16 sps:$4 sm:$0xff]   ;;  %v6072_v55 = vld [vmem:[%s8514_s3 + $0x10c] ss:$16 sps:$4 sm:$0xff]   ;;  %v509_v57 = vpack.c.bf16 %v483_v52, %v482_v50  ;;  %v6074_v58 = vld [vmem:[%s8514_s3 + $0x124] ss:$16 sps:$4 sm:$0xff]  }
  0x83   : > { %1503 = vmatprep.subr.bf16.mxu0 %v6042_v27  ;;  %v6070_v59 = vld [vmem:[%s8514_s3 + $0x108] ss:$16 sps:$4 sm:$0xff]   ;;  %v6078_v60 = vld [vmem:[%s8514_s3 + $0x12c] ss:$16 sps:$4 sm:$0xff]   ;;  %v6079_v61 = vld [vmem:[%s8514_s3 + $0x120] ss:$16 sps:$4 sm:$0xff]  }
  0x84   : > { %1313 = vmatpush1.bf16.msra.mxu1 %v6049_v34  ;;  %v484_v62 = vld [vmem:[%s6957_s21 + $0x60] sm:$0xff]  ;;  %v485_v63 = vld [vmem:[%s6957_s21 + $0x68] sm:$0xff]  ;;  %v486_v11 = vld [vmem:[%s6957_s21 + $0x70] sm:$0xff] }
  0x85   : > { %1314 = vmatprep.subr.bf16.mxu1 %v6050_v36  ;;  %v6076_v1 = vld [vmem:[%s8514_s3 + $0x128] ss:$16 sps:$4 sm:$0xff]   ;;  %v6080_v2 = vld [vmem:[%s8514_s3 + $0x144] ss:$16 sps:$4 sm:$0xff]   ;;  %v6084_v3 = vld [vmem:[%s8514_s3 + $0x14c] ss:$16 sps:$4 sm:$0xff]   ;;  %v510_v7 = vpack.c.bf16 %v485_v63, %v484_v62 }
  0x86   : > { %1504 = vmatpush1.bf16.msra.mxu0 %v6040_v32  ;;  %v6085_v4 = vld [vmem:[%s8514_s3 + $0x140] ss:$16 sps:$4 sm:$0xff]   ;;  %v6086_v5 = vld [vmem:[%s8514_s3 + $0x164] ss:$16 sps:$4 sm:$0xff]   ;;  %v6082_v6 = vld [vmem:[%s8514_s3 + $0x148] ss:$16 sps:$4 sm:$0xff]  }
  0x87   : > { %1505 = vmatprep.subr.bf16.mxu0 %v6048_v33  ;;  %v6090_v8 = vld [vmem:[%s8514_s3 + $0x16c] ss:$16 sps:$4 sm:$0xff]   ;;  %v6091_v9 = vld [vmem:[%s8514_s3 + $0x160] ss:$16 sps:$4 sm:$0xff]   ;;  %v6092_v10 = vld [vmem:[%s8514_s3 + $0x184] ss:$16 sps:$4 sm:$0xff]  }
  0x88   : > { %1315 = vmatpush1.bf16.msra.mxu1 %v6055_v40  ;;  %v487_v12 = vld [vmem:[%s6957_s21 + $0x78] sm:$0xff]  ;;  %v6097_v15 = vld [vmem:[%s8514_s3 + $0x180] ss:$16 sps:$4 sm:$0xff]   ;;  %v6098_v16 = vld [vmem:[%s8514_s3 + $0x1a4] ss:$16 sps:$4 sm:$0xff]  }
  0x89   : > { %5326 = vmatmul.mubr.msk.bf16.gmra.mrb[8].mxu0 %vm544_vm0, %v506_v24  ;;  %1316 = vmatprep.subr.bf16.mxu1 %v6056_v42  ;;  %v6088_v13 = vld [vmem:[%s8514_s3 + $0x168] ss:$16 sps:$4 sm:$0xff]   ;;  %v6096_v14 = vld [vmem:[%s8514_s3 + $0x18c] ss:$16 sps:$4 sm:$0xff]   ;;  %v511_v18 = vpack.c.bf16 %v487_v12, %v486_v11  ;;  %v488_v20 = vld [vmem:[%s6957_s21 + $0x80] sm:$0xff] }
  0x8a   : > { %655 = vmatprep.mubr.bf16.mxu0 %v8534_v0  ;;  %1506 = vmatpush1.bf16.msra.mxu0 %v6046_v37  ;;  %v6094_v17 = vld [vmem:[%s8514_s3 + $0x188] ss:$16 sps:$4 sm:$0xff]   ;;  %v6102_v19 = vld [vmem:[%s8514_s3 + $0x1ac] ss:$16 sps:$4 sm:$0xff]   ;;  %v490_v24 = vld [vmem:[%s6957_s21 + $0x90] sm:$0xff] }
  0x8b   : > { %1507 = vmatprep.subr.bf16.mxu0 %v6054_v38  ;;  %v489_v21 = vld [vmem:[%s6957_s21 + $0x88] sm:$0xff]  ;;  %v491_v25 = vld [vmem:[%s6957_s21 + $0x98] sm:$0xff]  ;;  %v492_v27 = vld [vmem:[%s6957_s21 + $0xa0] sm:$0xff] }
  0x8c   : > { %1317 = vmatpush1.bf16.msra.mxu1 %v6061_v45  ;;  %v6100_v22 = vld [vmem:[%s8514_s3 + $0x1a8] ss:$16 sps:$4 sm:$0xff]   ;;  %v512_v23 = vpack.c.bf16 %v489_v21, %v488_v20  ;;  %v513_v26 = vpack.c.bf16 %v491_v25, %v490_v24  ;;  %v494_v30 = vld [vmem:[%s6957_s21 + $0xb0] sm:$0xff]  ;;  %v496_v38 = vld [vmem:[%s6957_s21 + $0xc0] sm:$0xff] }
  0x8d   : > { %1318 = vmatprep.subr.bf16.mxu1 %v6062_v47  ;;  %v493_v28 = vld [vmem:[%s6957_s21 + $0xa8] sm:$0xff]  ;;  %v495_v31 = vld [vmem:[%s6957_s21 + $0xb8] sm:$0xff]  ;;  %v6103_v32 = vld [vmem:[%s8514_s3 + $0x1a0] ss:$16 sps:$4 sm:$0xff]  }
  0x8e   : > { %1508 = vmatpush1.bf16.msra.mxu0 %v6052_v43  ;;  %v514_v29 = vpack.c.bf16 %v493_v28, %v492_v27  ;;  %v515_v33 = vpack.c.bf16 %v495_v31, %v494_v30  ;;  %v6104_v34 = vld [vmem:[%s8514_s3 + $0x1c4] ss:$16 sps:$4 sm:$0xff]   ;;  %v6106_v36 = vld [vmem:[%s8514_s3 + $0x1c8] ss:$16 sps:$4 sm:$0xff]   ;;  %v6109_v37 = vld [vmem:[%s8514_s3 + $0x1c0] ss:$16 sps:$4 sm:$0xff]  }
  0x8f   : > { %1509 = vmatprep.subr.bf16.mxu0 %v6060_v44  ;;  %v497_v39 = vld [vmem:[%s6957_s21 + $0xc8] sm:$0xff]  ;;  %v6110_v40 = vld [vmem:[%s8514_s3 + $0x1e4] ss:$16 sps:$4 sm:$0xff]   ;;  %v6115_v43 = vld [vmem:[%s8514_s3 + $0x1e0] ss:$16 sps:$4 sm:$0xff]  }
  0x90   : > { %1319 = vmatpush1.bf16.msra.mxu1 %v6067_v51  ;;  %v6114_v41 = vld [vmem:[%s8514_s3 + $0x1ec] ss:$16 sps:$4 sm:$0xff]   ;;  %v6112_v42 = vld [vmem:[%s8514_s3 + $0x1e8] ss:$16 sps:$4 sm:$0xff]   ;;  %v516_v44 = vpack.c.bf16 %v497_v39, %v496_v38  ;;  %v498_v45 = vld [vmem:[%s6957_s21 + $0xd0] sm:$0xff] }
  0x91   : > { %5327 = vmatmul.mubr.msk.bf16.gmra.mrb[12].mxu0 %vm544_vm0, %v507_v35  ;;  %1320 = vmatprep.subr.bf16.mxu1 %v6068_v53  ;;  %v6108_v35 = vld [vmem:[%s8514_s3 + $0x1cc] ss:$16 sps:$4 sm:$0xff]   ;;  %v502_v51 = vld [vmem:[%s6957_s21 + $0xf0] sm:$0xff] }
  0x92   : > { %665 = vmatprep.mubr.bf16.mxu0 %v8534_v0  ;;  %1510 = vmatpush1.bf16.msra.mxu0 %v6058_v48  ;;  %v500_v48 = vld [vmem:[%s6957_s21 + $0xe0] sm:$0xff]  ;;  %v503_v52 = vld [vmem:[%s6957_s21 + $0xf8] sm:$0xff] }
  0x93   : > { %1511 = vmatprep.subr.bf16.mxu0 %v6066_v49  ;;  %v501_v49 = vld [vmem:[%s6957_s21 + $0xe8] sm:$0xff]  ;;  %v519_v53 = vpack.c.bf16 %v503_v52, %v502_v51  ;;  %v6119_v28 = vld [vmem:[#allocation5 + $0x20] ss:$16 sps:$4 sm:$0xff]   ;;  %v6124_v31 = vld [vmem:[#allocation5 + $0x44] ss:$16 sps:$4 sm:$0xff]  }
  0x94   : > { %1321 = vmatpush1.bf16.msra.mxu1 %v6073_v56  ;;  %v518_v50 = vpack.c.bf16 %v501_v49, %v500_v48  ;;  %v6130_v49 = vld [vmem:[#allocation5 + $0x84] ss:$16 sps:$4 sm:$0xff]  }
  0x95   : > { %1322 = vmatprep.subr.bf16.mxu1 %v6074_v58 }
  0x96   : > { %1512 = vmatpush1.bf16.msra.mxu0 %v6064_v54  ;;  %v6118_v54 = vld [vmem:[#allocation5 + $0x4] ss:$16 sps:$4 sm:$0xff]  }
  0x97   : > { %1513 = vmatprep.subr.bf16.mxu0 %v6072_v55  ;;  %v6744_v55 = vmov 1966171168  }
  0x98   : > { %1323 = vmatpush1.bf16.msra.mxu1 %v6079_v61  ;;  %v829_v56 = vunpack.c.l.s4 %v6744_v55  ;;  %v6161_v55 = vld [vmem:[#allocation5 + $0x88] ss:$16 sps:$4 sm:$0xff]  }
  0x99   : > { %5328 = vmatmul.mubr.msk.bf16.gmra.mrb[16].mxu0 %vm544_vm0, %v508_v46  ;;  %1324 = vmatprep.subr.bf16.mxu1 %v6080_v2  ;;  %v499_v46 = vld [vmem:[%s6957_s21 + $0xd8] sm:$0xff]  ;;  %s6745_s21 = smov [#allocation8]  }
  0x9a   : > { %675 = vmatprep.mubr.bf16.mxu0 %v8534_v0  ;;  %1514 = vmatpush1.bf16.msra.mxu0 %v6070_v59  ;;  %v517_v47 = vpack.c.bf16 %v499_v46, %v498_v45  ;;  %v830_v58 = vunpack.c.0.s8 %v829_v56  ;;  %v6125_v46 = vld [vmem:[#allocation5 + $0x60] ss:$16 sps:$4 sm:$0xff]   ;;  %s6636_s30 = sshll.u32 %s6745_s21, 4  ;;  %s6637_s30 = int_to_ptr.vmem [resolvable:$false] %s6636_s30 }
  0x9b   : > { %1515 = vmatprep.subr.bf16.mxu0 %v6078_v60  ;;  %v5340_v60 = vld.sshfl [vmem:[%s8513_s2] sm:$0x11 pattern:$0x75316420]  ;;  %s6638_s27 = scalar_lea.vmem %s6637_s30, 8192  ;;  %p6639_p4 = scmp.lt.s32.totalorder %s8417_s5, %s6637_s30 }
  0x9c   : > { %1325 = vmatpush1.bf16.msra.mxu1 %v6085_v4  ;;  %v827_v62 = vcombine.high %v5340_v60, %v5340_v60  ;;  %p6640_p7 = scmp.lt.s32.totalorder %s6638_s27, %s6632_s23 }
  0x9d   : > { %1326 = vmatprep.subr.bf16.mxu1 %v6086_v5 }
  0x9e   : > { %1516 = vmatpush1.bf16.msra.mxu0 %v6076_v1  ;;  %p6641_p8 = por %p6640_p7, %p6639_p4 }
  0x9f   : > { %1517 = vmatprep.subr.bf16.mxu0 %v6084_v3 }
  0xa0   : > { %1327 = vmatpush1.bf16.msra.mxu1 %v6091_v9  ;;  %p6642_p11 = pnand %p6641_p8, %p6635_p3 }
  0xa1   : > { %5329 = vmatmul.mubr.msk.bf16.gmra.mrb[20].mxu0 %vm544_vm0, %v509_v57  ;;  %1328 = vmatprep.subr.bf16.mxu1 %v6092_v10  ;;  %v831_v57 = vlaneseq }
  0xa2   : > { %685 = vmatprep.mubr.bf16.mxu0 %v8534_v0  ;;  %1518 = vmatpush1.bf16.msra.mxu0 %v6082_v6 }
  0xa3   : > { %1519 = vmatprep.subr.bf16.mxu0 %v6090_v8  ;;  %v832_v59 = vshrl.u32 %v831_v57, 7 }
  0xa4   : > { %1329 = vmatpush1.bf16.msra.mxu1 %v6097_v15  ;;  %v6145_v15 = vld [vmem:[#allocation5 + $0xc] ss:$16 sps:$4 sm:$0xff]  }
  0xa5   : > { %1330 = vmatprep.subr.bf16.mxu1 %v6098_v16  ;;  %v7217_v61 = vsub.s32 %v830_v58, %v832_v59  ;;  %v7221_v3 = vsub.s32 0, %v832_v59  ;;  %v6133_v58 = vld [vmem:[#allocation5 + $0xa4] ss:$16 sps:$4 sm:$0xff]   ;;  %v6166_v59 = vld [vmem:[#allocation5 + $0xac] ss:$16 sps:$4 sm:$0xff]  }
  0xa6   : > { %1520 = vmatpush1.bf16.msra.mxu0 %v6088_v13 }
  0xa7   : > { %1521 = vmatprep.subr.bf16.mxu0 %v6096_v14  ;;  %8596 = vst [vmem:[#allocation21_spill] sm:$0xff] %v7217_v61  ;;  %v834_v63 = vrot.slane %v5340_v60, %v7217_v61  ;;  %v841_v1 = vrot.slane %v827_v62, %v7217_v61 }
  0xa8   : > { %1331 = vmatpush1.bf16.msra.mxu1 %v6103_v32  ;;  %v6154_v32 = vld [vmem:[#allocation5 + $0x4c] ss:$16 sps:$4 sm:$0xff]  }
  0xa9   : > { %5330 = vmatmul.mubr.msk.bf16.gmra.mrb[24].mxu0 %vm544_vm0, %v510_v7  ;;  %1332 = vmatprep.subr.bf16.mxu1 %v6104_v34  ;;  %v843_v2 = vpack.i.b16 %v834_v63, %v834_v63  ;;  %v850_v4 = vpack.i.b16 %v841_v1, %v841_v1 }
  0xaa   : > { %695 = vmatprep.mubr.bf16.mxu0 %v8534_v0  ;;  %1522 = vmatpush1.bf16.msra.mxu0 %v6094_v17 }
  0xab   : > { %1523 = vmatprep.subr.bf16.mxu0 %v6102_v19  ;;  %v7224_v7 = vrot.slane %v843_v2, %v7221_v3  ;;  %v7227_v9 = vrot.slane %v850_v4, %v7221_v3  ;;  %v6143_v19 = vld [vmem:[#allocation5 + $0x8] ss:$16 sps:$4 sm:$0xff]   ;;  %v6131_v2 = vld [vmem:[#allocation5 + $0xa0] ss:$16 sps:$4 sm:$0xff]  }
  0xac   : > { %1333 = vmatpush1.bf16.msra.mxu1 %v6109_v37  ;;  %v6152_v37 = vld [vmem:[#allocation5 + $0x48] ss:$16 sps:$4 sm:$0xff]  }
  0xad   : > { %1334 = vmatprep.subr.bf16.mxu1 %v6110_v40  ;;  %v6127_v40 = vld [vmem:[#allocation5 + $0x64] ss:$16 sps:$4 sm:$0xff]   ;;  %v6164_v4 = vld [vmem:[#allocation5 + $0xa8] ss:$16 sps:$4 sm:$0xff]  }
  0xae   : > { %1524 = vmatpush1.bf16.msra.mxu0 %v6100_v22  ;;  %v6121_v22 = vld [vmem:[#allocation5 + $0x24] ss:$16 sps:$4 sm:$0xff]  }
  0xaf   : > { %1525 = vmatprep.subr.bf16.mxu0 %v6108_v35 }
  0xb0   : > { %1335 = vmatpush1.bf16.msra.mxu1 %v6115_v43 }
  0xb1   : > { %5331 = vmatmul.mubr.msk.bf16.gmra.mrb[28].mxu0 %vm544_vm0, %v511_v18  ;;  %2704 = vmatprep.subr.bf16.mxu1 %v6118_v54  ;;  %v6116_v18 = vld [vmem:[#allocation5] ss:$16 sps:$4 sm:$0xff]  }
  0xb2   : > { %705 = vmatprep.mubr.bf16.mxu0 %v8534_v0  ;;  %1526 = vmatpush1.bf16.msra.mxu0 %v6106_v36  ;;  %v6122_v36 = vld [vmem:[#allocation5 + $0x40] ss:$16 sps:$4 sm:$0xff]  }
  0xb3   : > { %1527 = vmatprep.subr.bf16.mxu0 %v6114_v41  ;;  %v6157_v41 = vld [vmem:[#allocation5 + $0x6c] ss:$16 sps:$4 sm:$0xff]   ;;  %v6128_v54 = vld [vmem:[#allocation5 + $0x80] ss:$16 sps:$4 sm:$0xff]  }
  0xb6   : > { %1528 = vmatpush1.bf16.msra.mxu0 %v6112_v42 }
  0xb7   : > { %3090 = vmatprep.subr.bf16.mxu0 %v6145_v15 }
  0xb9   : > { %5332 = vmatmul.mubr.msk.bf16.gmra.mrb[32].mxu0 %vm544_vm0, %v512_v23  ;;  %v6148_v23 = vld [vmem:[#allocation5 + $0x2c] ss:$16 sps:$4 sm:$0xff]  }
  0xba   : > { %715 = vmatprep.mubr.bf16.mxu0 %v8534_v0 }
  0xc1   : > { %5333 = vmatmul.mubr.msk.bf16.gmra.mrb[36].mxu0 %vm544_vm0, %v513_v26 }
  0xc2   : > { %725 = vmatprep.mubr.bf16.mxu0 %v8534_v0 }
  0xc9   : > { %5334 = vmatmul.mubr.msk.bf16.gmra.mrb[40].mxu0 %vm544_vm0, %v514_v29  ;;  %v6146_v29 = vld [vmem:[#allocation5 + $0x28] ss:$16 sps:$4 sm:$0xff]  }
  0xca   : > { %735 = vmatprep.mubr.bf16.mxu0 %v8534_v0 }
  0xd1   : > { %5335 = vmatmul.mubr.msk.bf16.gmra.mrb[44].mxu0 %vm544_vm0, %v515_v33 }
  0xd2   : > { %745 = vmatprep.mubr.bf16.mxu0 %v8534_v0 }
  0xd9   : > { %5336 = vmatmul.mubr.msk.bf16.gmra.mrb[48].mxu0 %vm544_vm0, %v516_v44 }
  0xda   : > { %755 = vmatprep.mubr.bf16.mxu0 %v8534_v0 }
  0xe1   : > { %5337 = vmatmul.mubr.msk.bf16.gmra.mrb[52].mxu0 %vm544_vm0, %v517_v47  ;;  %v6155_v47 = vld [vmem:[#allocation5 + $0x68] ss:$16 sps:$4 sm:$0xff]  }
  0xe2   : > { %765 = vmatprep.mubr.bf16.mxu0 %v8534_v0 }
  0xe9   : > { %5338 = vmatmul.mubr.msk.bf16.gmra.mrb[56].mxu0 %vm544_vm0, %v518_v50  ;;  %v6163_v50 = vld [vmem:[#allocation5 + $0x8c] ss:$16 sps:$4 sm:$0xff]  }
  0xea   : > { %775 = vmatprep.mubr.bf16.mxu0 %v8534_v0 }
  0xf1   : > { %5339 = vmatmul.mubr.msk.bf16.gmra.mrb[60].mxu0 %vm544_vm0, %v519_v53 }
 0x14c   : > { %v627_v5 = vpop.f32.mrb[0].mxu0 }
 0x14d   : > { %v629_v6 = vpop.f32.mrb[1].mxu0 }
 0x14e   : > { %v631_v8 = vpop.f32.mrb[2].mxu0 }
 0x14f   : > { %v786_v10 = vpack.c.bf16 %v631_v8, %v627_v5  ;;  %v633_v11 = vpop.f32.mrb[3].mxu0  ;;  %v6172_v8 = vld [vmem:[#allocation5 + $0xcc] ss:$16 sps:$4 sm:$0xff]  }
 0x150   : > { %v787_v12 = vpack.c.bf16 %v633_v11, %v629_v6  ;;  %v6136_v6 = vld [vmem:[#allocation5 + $0xc4] ss:$16 sps:$4 sm:$0xff]  }
 0x151   : > { %v856_v13 = vadd.bf16 %v7224_v7, %v786_v10 }
 0x152   : > { %v857_v14 = vadd.bf16 %v7227_v9, %v787_v12 }
 0x153   : > { %v888_v21 = vmax.bf16 %v8534_v0, %v856_v13  ;;  %v6134_v13 = vld [vmem:[#allocation5 + $0xc0] ss:$16 sps:$4 sm:$0xff]  }
 0x154   : > { %v637_v16 = vpop.f32.mrb[4].mxu0  ;;  %v889_v17 = vmax.bf16 %v8534_v0, %v857_v14  ;;  %v6170_v14 = vld [vmem:[#allocation5 + $0xc8] ss:$16 sps:$4 sm:$0xff]  }
 0x155   : > { %v639_v20 = vpop.f32.mrb[5].mxu0 }
 0x156   : > { %v641_v24 = vpop.f32.mrb[6].mxu0  ;;  %1336 = vmatprep.mubr.bf16.mxu1 %v889_v17  ;;  %1529 = vmatprep.mubr.bf16.mxu0 %v889_v17  ;;  %v6139_v17 = vld [vmem:[#allocation5 + $0xe4] ss:$16 sps:$4 sm:$0xff]  }
 0x157   : > { %v788_v25 = vpack.c.bf16 %v641_v24, %v637_v16  ;;  %v643_v26 = vpop.f32.mrb[7].mxu0  ;;  %1337 = vmatmul.mubr.bf16.vlgmr.msra.gmra.mrb[0].mxu1 %v888_v21  ;;  %1530 = vmatmul.mubr.bf16.vlgmr.msra.gmra.mrb[64].mxu0 %v888_v21  ;;  %v6173_v24 = vld [vmem:[#allocation5 + $0xe8] ss:$16 sps:$4 sm:$0xff]  }
 0x158   : > { %v789_v27 = vpack.c.bf16 %v643_v26, %v639_v20  ;;  %2705 = vmatpush1.bf16.msra.mxu1 %v6116_v18  ;;  %3091 = vmatpush1.bf16.msra.mxu0 %v6143_v19  ;;  %v6175_v18 = vld [vmem:[#allocation5 + $0xec] ss:$16 sps:$4 sm:$0xff]   ;;  %v6142_v26 = vld [vmem:[#allocation5 + $0x104] ss:$16 sps:$4 sm:$0xff]  }
 0x159   : > { %v858_v30 = vadd.bf16 %v7224_v7, %v788_v25  ;;  %2706 = vmatprep.subr.bf16.mxu1 %v6121_v22  ;;  %3092 = vmatprep.subr.bf16.mxu0 %v6148_v23  ;;  %v6137_v23 = vld [vmem:[#allocation5 + $0xe0] ss:$16 sps:$4 sm:$0xff]  }
 0x15a   : > { %v859_v33 = vadd.bf16 %v7227_v9, %v789_v27  ;;  %v6181_v27 = vld [vmem:[#allocation5 + $0x10c] ss:$16 sps:$4 sm:$0xff]  }
 0x15b   : > { %v890_v39 = vmax.bf16 %v8534_v0, %v858_v30 }
 0x15c   : > { %v647_v34 = vpop.f32.mrb[8].mxu0  ;;  %v891_v35 = vmax.bf16 %v8534_v0, %v859_v33  ;;  %2707 = vmatpush1.bf16.msra.mxu1 %v6119_v28  ;;  %3093 = vmatpush1.bf16.msra.mxu0 %v6146_v29 }
 0x15d   : > { %v649_v38 = vpop.f32.mrb[9].mxu0  ;;  %2708 = vmatprep.subr.bf16.mxu1 %v6124_v31  ;;  %3094 = vmatprep.subr.bf16.mxu0 %v6154_v32  ;;  %v6140_v31 = vld [vmem:[#allocation5 + $0x100] ss:$16 sps:$4 sm:$0xff]   ;;  %v6179_v32 = vld [vmem:[#allocation5 + $0x108] ss:$16 sps:$4 sm:$0xff]  }
 0x15e   : > { %v651_v42 = vpop.f32.mrb[10].mxu0  ;;  %1346 = vmatprep.mubr.bf16.mxu1 %v891_v35  ;;  %1539 = vmatprep.mubr.bf16.mxu0 %v891_v35  ;;  %v6151_v35 = vld [vmem:[#allocation5 + $0x124] ss:$16 sps:$4 sm:$0xff]  }
 0x15f   : > { %v790_v43 = vpack.c.bf16 %v651_v42, %v647_v34  ;;  %v653_v44 = vpop.f32.mrb[11].mxu0  ;;  %1347 = vmatmul.mubr.bf16.gmra.mrb[4].mxu1 %v890_v39  ;;  %1540 = vmatmul.mubr.bf16.gmra.mrb[68].mxu0 %v890_v39  ;;  %v6182_v42 = vld [vmem:[#allocation5 + $0x128] ss:$16 sps:$4 sm:$0xff]  }
 0x160   : > { %v791_v45 = vpack.c.bf16 %v653_v44, %v649_v38  ;;  %2709 = vmatpush1.bf16.msra.mxu1 %v6122_v36  ;;  %3095 = vmatpush1.bf16.msra.mxu0 %v6152_v37  ;;  %v6184_v36 = vld [vmem:[#allocation5 + $0x12c] ss:$16 sps:$4 sm:$0xff]   ;;  %v6160_v44 = vld [vmem:[#allocation5 + $0x144] ss:$16 sps:$4 sm:$0xff]  }
 0x161   : > { %v860_v48 = vadd.bf16 %v7224_v7, %v790_v43  ;;  %2710 = vmatprep.subr.bf16.mxu1 %v6127_v40  ;;  %3096 = vmatprep.subr.bf16.mxu0 %v6157_v41  ;;  %v6149_v41 = vld [vmem:[#allocation5 + $0x120] ss:$16 sps:$4 sm:$0xff]  }
 0x162   : > { %v861_v51 = vadd.bf16 %v7227_v9, %v791_v45  ;;  %v6190_v45 = vld [vmem:[#allocation5 + $0x14c] ss:$16 sps:$4 sm:$0xff]  }
 0x163   : > { %v892_v57 = vmax.bf16 %v8534_v0, %v860_v48 }
 0x164   : > { %v657_v52 = vpop.f32.mrb[12].mxu0  ;;  %v893_v53 = vmax.bf16 %v8534_v0, %v861_v51  ;;  %2711 = vmatpush1.bf16.msra.mxu1 %v6125_v46  ;;  %3097 = vmatpush1.bf16.msra.mxu0 %v6155_v47 }
 0x165   : > { %v659_v56 = vpop.f32.mrb[13].mxu0  ;;  %2712 = vmatprep.subr.bf16.mxu1 %v6130_v49  ;;  %3098 = vmatprep.subr.bf16.mxu0 %v6163_v50  ;;  %v6158_v49 = vld [vmem:[#allocation5 + $0x140] ss:$16 sps:$4 sm:$0xff]   ;;  %v6188_v50 = vld [vmem:[#allocation5 + $0x148] ss:$16 sps:$4 sm:$0xff]  }
 0x166   : > { %v661_v60 = vpop.f32.mrb[14].mxu0  ;;  %1356 = vmatprep.mubr.bf16.mxu1 %v893_v53  ;;  %1549 = vmatprep.mubr.bf16.mxu0 %v893_v53  ;;  %v6169_v53 = vld [vmem:[#allocation5 + $0x164] ss:$16 sps:$4 sm:$0xff]  }
 0x167   : > { %v792_v62 = vpack.c.bf16 %v661_v60, %v657_v52  ;;  %v663_v63 = vpop.f32.mrb[15].mxu0  ;;  %1357 = vmatmul.mubr.bf16.gmra.mrb[8].mxu1 %v892_v57  ;;  %1550 = vmatmul.mubr.bf16.gmra.mrb[72].mxu0 %v892_v57  ;;  %v6191_v60 = vld [vmem:[#allocation5 + $0x168] ss:$16 sps:$4 sm:$0xff]  }
 0x168   : > { %v793_v1 = vpack.c.bf16 %v663_v63, %v659_v56  ;;  %2713 = vmatpush1.bf16.msra.mxu1 %v6128_v54  ;;  %3099 = vmatpush1.bf16.msra.mxu0 %v6161_v55  ;;  %v6193_v54 = vld [vmem:[#allocation5 + $0x16c] ss:$16 sps:$4 sm:$0xff]   ;;  %v6178_v63 = vld [vmem:[#allocation5 + $0x184] ss:$16 sps:$4 sm:$0xff]  }
 0x169   : > { %v862_v5 = vadd.bf16 %v7224_v7, %v792_v62  ;;  %2714 = vmatprep.subr.bf16.mxu1 %v6133_v58  ;;  %3100 = vmatprep.subr.bf16.mxu0 %v6166_v59  ;;  %v6167_v59 = vld [vmem:[#allocation5 + $0x160] ss:$16 sps:$4 sm:$0xff]  }
 0x16a   : > { %v863_v10 = vadd.bf16 %v7227_v9, %v793_v1  ;;  %v6199_v1 = vld [vmem:[#allocation5 + $0x18c] ss:$16 sps:$4 sm:$0xff]  }
 0x16b   : > { %v894_v16 = vmax.bf16 %v8534_v0, %v862_v5 }
 0x16c   : > { %v667_v11 = vpop.f32.mrb[16].mxu0  ;;  %v895_v12 = vmax.bf16 %v8534_v0, %v863_v10  ;;  %2715 = vmatpush1.bf16.msra.mxu1 %v6131_v2  ;;  %3101 = vmatpush1.bf16.msra.mxu0 %v6164_v4 }
 0x16d   : > { %v669_v15 = vpop.f32.mrb[17].mxu0  ;;  %2716 = vmatprep.subr.bf16.mxu1 %v6136_v6  ;;  %3102 = vmatprep.subr.bf16.mxu0 %v6172_v8  ;;  %v6176_v6 = vld [vmem:[#allocation5 + $0x180] ss:$16 sps:$4 sm:$0xff]   ;;  %v6197_v8 = vld [vmem:[#allocation5 + $0x188] ss:$16 sps:$4 sm:$0xff]  }
 0x16e   : > { %v671_v19 = vpop.f32.mrb[18].mxu0  ;;  %1366 = vmatprep.mubr.bf16.mxu1 %v895_v12  ;;  %1559 = vmatprep.mubr.bf16.mxu0 %v895_v12  ;;  %v6187_v12 = vld [vmem:[#allocation5 + $0x1a4] ss:$16 sps:$4 sm:$0xff]  }
 0x16f   : > { %v794_v20 = vpack.c.bf16 %v671_v19, %v667_v11  ;;  %v673_v21 = vpop.f32.mrb[19].mxu0  ;;  %1367 = vmatmul.mubr.bf16.gmra.mrb[12].mxu1 %v894_v16  ;;  %1560 = vmatmul.mubr.bf16.gmra.mrb[76].mxu0 %v894_v16  ;;  %v6200_v19 = vld [vmem:[#allocation5 + $0x1a8] ss:$16 sps:$4 sm:$0xff]  }
 0x170   : > { %v795_v22 = vpack.c.bf16 %v673_v21, %v669_v15  ;;  %2717 = vmatpush1.bf16.msra.mxu1 %v6134_v13  ;;  %3103 = vmatpush1.bf16.msra.mxu0 %v6170_v14  ;;  %v6202_v13 = vld [vmem:[#allocation5 + $0x1ac] ss:$16 sps:$4 sm:$0xff]   ;;  %v6196_v21 = vld [vmem:[#allocation5 + $0x1c4] ss:$16 sps:$4 sm:$0xff]  }
 0x171   : > { %v864_v25 = vadd.bf16 %v7224_v7, %v794_v20  ;;  %2718 = vmatprep.subr.bf16.mxu1 %v6139_v17  ;;  %3104 = vmatprep.subr.bf16.mxu0 %v6175_v18  ;;  %v6185_v18 = vld [vmem:[#allocation5 + $0x1a0] ss:$16 sps:$4 sm:$0xff]  }
 0x172   : > { %v865_v28 = vadd.bf16 %v7227_v9, %v795_v22 }
 0x173   : > { %v896_v34 = vmax.bf16 %v8534_v0, %v864_v25  ;;  %v6194_v25 = vld [vmem:[#allocation5 + $0x1c0] ss:$16 sps:$4 sm:$0xff]  }
 0x174   : > { %v677_v29 = vpop.f32.mrb[20].mxu0  ;;  %v897_v30 = vmax.bf16 %v8534_v0, %v865_v28  ;;  %2719 = vmatpush1.bf16.msra.mxu1 %v6137_v23  ;;  %3105 = vmatpush1.bf16.msra.mxu0 %v6173_v24 }
 0x175   : > { %v679_v33 = vpop.f32.mrb[21].mxu0  ;;  %2720 = vmatprep.subr.bf16.mxu1 %v6142_v26  ;;  %3106 = vmatprep.subr.bf16.mxu0 %v6181_v27 }
 0x176   : > { %v681_v37 = vpop.f32.mrb[22].mxu0  ;;  %1376 = vmatprep.mubr.bf16.mxu1 %v897_v30  ;;  %1569 = vmatprep.mubr.bf16.mxu0 %v897_v30 }
 0x177   : > { %v796_v38 = vpack.c.bf16 %v681_v37, %v677_v29  ;;  %v683_v39 = vpop.f32.mrb[23].mxu0  ;;  %1377 = vmatmul.mubr.bf16.gmra.mrb[16].mxu1 %v896_v34  ;;  %1570 = vmatmul.mubr.bf16.gmra.mrb[80].mxu0 %v896_v34 }
 0x178   : > { %v797_v40 = vpack.c.bf16 %v683_v39, %v679_v33  ;;  %2721 = vmatpush1.bf16.msra.mxu1 %v6140_v31  ;;  %3107 = vmatpush1.bf16.msra.mxu0 %v6179_v32 }
 0x179   : > { %v866_v43 = vadd.bf16 %v7224_v7, %v796_v38  ;;  %2722 = vmatprep.subr.bf16.mxu1 %v6151_v35  ;;  %3108 = vmatprep.subr.bf16.mxu0 %v6184_v36 }
 0x17a   : > { %v867_v46 = vadd.bf16 %v7227_v9, %v797_v40 }
 0x17b   : > { %v898_v52 = vmax.bf16 %v8534_v0, %v866_v43 }
 0x17c   : > { %v687_v47 = vpop.f32.mrb[24].mxu0  ;;  %v899_v48 = vmax.bf16 %v8534_v0, %v867_v46  ;;  %2723 = vmatpush1.bf16.msra.mxu1 %v6149_v41  ;;  %3109 = vmatpush1.bf16.msra.mxu0 %v6182_v42 }
 0x17d   : > { %v689_v51 = vpop.f32.mrb[25].mxu0  ;;  %2724 = vmatprep.subr.bf16.mxu1 %v6160_v44  ;;  %3110 = vmatprep.subr.bf16.mxu0 %v6190_v45 }
 0x17e   : > { %v691_v55 = vpop.f32.mrb[26].mxu0  ;;  %1386 = vmatprep.mubr.bf16.mxu1 %v899_v48  ;;  %1579 = vmatprep.mubr.bf16.mxu0 %v899_v48 }
 0x17f   : > { %v798_v56 = vpack.c.bf16 %v691_v55, %v687_v47  ;;  %v693_v57 = vpop.f32.mrb[27].mxu0  ;;  %1387 = vmatmul.mubr.bf16.gmra.mrb[20].mxu1 %v898_v52  ;;  %1580 = vmatmul.mubr.bf16.gmra.mrb[84].mxu0 %v898_v52 }
 0x180   : > { %v799_v58 = vpack.c.bf16 %v693_v57, %v689_v51  ;;  %2725 = vmatpush1.bf16.msra.mxu1 %v6158_v49  ;;  %3111 = vmatpush1.bf16.msra.mxu0 %v6188_v50 }
 0x181   : > { %v868_v62 = vadd.bf16 %v7224_v7, %v798_v56  ;;  %2726 = vmatprep.subr.bf16.mxu1 %v6169_v53  ;;  %3112 = vmatprep.subr.bf16.mxu0 %v6193_v54 }
 0x182   : > { %v869_v2 = vadd.bf16 %v7227_v9, %v799_v58 }
 0x183   : > { %v900_v11 = vmax.bf16 %v8534_v0, %v868_v62 }
 0x184   : > { %v697_v4 = vpop.f32.mrb[28].mxu0  ;;  %v901_v5 = vmax.bf16 %v8534_v0, %v869_v2  ;;  %2727 = vmatpush1.bf16.msra.mxu1 %v6167_v59  ;;  %3113 = vmatpush1.bf16.msra.mxu0 %v6191_v60  ;;  %v6208_v2 = vld [vmem:[#allocation5 + $0x1cc] ss:$16 sps:$4 sm:$0xff]  }
 0x185   : > { %v699_v10 = vpop.f32.mrb[29].mxu0  ;;  %2728 = vmatprep.subr.bf16.mxu1 %v6178_v63  ;;  %3114 = vmatprep.subr.bf16.mxu0 %v6199_v1 }
 0x186   : > { %v701_v14 = vpop.f32.mrb[30].mxu0  ;;  %1396 = vmatprep.mubr.bf16.mxu1 %v901_v5  ;;  %1589 = vmatprep.mubr.bf16.mxu0 %v901_v5 }
 0x187   : > { %v800_v15 = vpack.c.bf16 %v701_v14, %v697_v4  ;;  %v703_v16 = vpop.f32.mrb[31].mxu0  ;;  %1397 = vmatmul.mubr.bf16.gmra.mrb[24].mxu1 %v900_v11  ;;  %1590 = vmatmul.mubr.bf16.gmra.mrb[88].mxu0 %v900_v11  ;;  %v6205_v14 = vld [vmem:[#allocation5 + $0x1e4] ss:$16 sps:$4 sm:$0xff]  }
 0x188   : > { %v801_v17 = vpack.c.bf16 %v703_v16, %v699_v10  ;;  %2729 = vmatpush1.bf16.msra.mxu1 %v6176_v6  ;;  %3115 = vmatpush1.bf16.msra.mxu0 %v6197_v8  ;;  %v6206_v6 = vld [vmem:[#allocation5 + $0x1c8] ss:$16 sps:$4 sm:$0xff]  }
 0x189   : > { %v870_v20 = vadd.bf16 %v7224_v7, %v800_v15  ;;  %2730 = vmatprep.subr.bf16.mxu1 %v6187_v12  ;;  %3116 = vmatprep.subr.bf16.mxu0 %v6202_v13  ;;  %v6211_v15 = vld [vmem:[#allocation5 + $0x1ec] ss:$16 sps:$4 sm:$0xff]  }
 0x18a   : > { %v871_v22 = vadd.bf16 %v7227_v9, %v801_v17  ;;  %v6203_v17 = vld [vmem:[#allocation5 + $0x1e0] ss:$16 sps:$4 sm:$0xff]  }
 0x18b   : > { %v902_v27 = vmax.bf16 %v8534_v0, %v870_v20 }
 0x18c   : > { %v707_v23 = vpop.f32.mrb[32].mxu0  ;;  %v903_v24 = vmax.bf16 %v8534_v0, %v871_v22  ;;  %2731 = vmatpush1.bf16.msra.mxu1 %v6185_v18  ;;  %3117 = vmatpush1.bf16.msra.mxu0 %v6200_v19  ;;  %v6209_v18 = vld [vmem:[#allocation5 + $0x1e8] ss:$16 sps:$4 sm:$0xff]  }
 0x18d   : > { %v709_v26 = vpop.f32.mrb[33].mxu0  ;;  %2732 = vmatprep.subr.bf16.mxu1 %v6196_v21  ;;  %3118 = vmatprep.subr.bf16.mxu0 %v6208_v2 }
 0x18e   : > { %v711_v28 = vpop.f32.mrb[34].mxu0  ;;  %1406 = vmatprep.mubr.bf16.mxu1 %v903_v24  ;;  %1599 = vmatprep.mubr.bf16.mxu0 %v903_v24 }
 0x18f   : > { %v802_v29 = vpack.c.bf16 %v711_v28, %v707_v23  ;;  %v713_v30 = vpop.f32.mrb[35].mxu0  ;;  %1407 = vmatmul.mubr.bf16.gmra.mrb[28].mxu1 %v902_v27  ;;  %1600 = vmatmul.mubr.bf16.gmra.mrb[92].mxu0 %v902_v27  ;;  %v6214_v28 = vld [vmem:[#allocation5 + $0x204] ss:$16 sps:$4 sm:$0xff]  }
 0x190   : > { %v803_v31 = vpack.c.bf16 %v713_v30, %v709_v26  ;;  %2733 = vmatpush1.bf16.msra.mxu1 %v6194_v25  ;;  %3119 = vmatpush1.bf16.msra.mxu0 %v6206_v6 }
 0x191   : > { %v872_v32 = vadd.bf16 %v7224_v7, %v802_v29  ;;  %2734 = vmatprep.subr.bf16.mxu1 %v6205_v14  ;;  %3120 = vmatprep.subr.bf16.mxu0 %v6211_v15 }
 0x192   : > { %v873_v33 = vadd.bf16 %v7227_v9, %v803_v31 }
 0x193   : > { %v904_v37 = vmax.bf16 %v8534_v0, %v872_v32 }
 0x194   : > { %v717_v34 = vpop.f32.mrb[36].mxu0  ;;  %v905_v35 = vmax.bf16 %v8534_v0, %v873_v33  ;;  %2735 = vmatpush1.bf16.msra.mxu1 %v6203_v17  ;;  %3121 = vmatpush1.bf16.msra.mxu0 %v6209_v18 }
 0x195   : > { %v719_v36 = vpop.f32.mrb[37].mxu0  ;;  %2897 = vmatprep.subr.bf16.mxu1 %v6214_v28 }
 0x196   : > { %v721_v38 = vpop.f32.mrb[38].mxu0  ;;  %1416 = vmatprep.mubr.bf16.mxu1 %v905_v35  ;;  %1609 = vmatprep.mubr.bf16.mxu0 %v905_v35 }
 0x197   : > { %v804_v39 = vpack.c.bf16 %v721_v38, %v717_v34  ;;  %v723_v40 = vpop.f32.mrb[39].mxu0  ;;  %1417 = vmatmul.mubr.bf16.gmra.mrb[32].mxu1 %v904_v37  ;;  %1610 = vmatmul.mubr.bf16.gmra.mrb[96].mxu0 %v904_v37 }
 0x198   : > { %v805_v41 = vpack.c.bf16 %v723_v40, %v719_v36 }
 0x199   : > { %v874_v42 = vadd.bf16 %v7224_v7, %v804_v39 }
 0x19a   : > { %v875_v43 = vadd.bf16 %v7227_v9, %v805_v41 }
 0x19b   : > { %v906_v47 = vmax.bf16 %v8534_v0, %v874_v42 }
 0x19c   : > { %v727_v44 = vpop.f32.mrb[40].mxu0  ;;  %v907_v45 = vmax.bf16 %v8534_v0, %v875_v43 }
 0x19d   : > { %v729_v46 = vpop.f32.mrb[41].mxu0 }
 0x19e   : > { %v731_v48 = vpop.f32.mrb[42].mxu0  ;;  %1426 = vmatprep.mubr.bf16.mxu1 %v907_v45  ;;  %1619 = vmatprep.mubr.bf16.mxu0 %v907_v45 }
 0x19f   : > { %v806_v49 = vpack.c.bf16 %v731_v48, %v727_v44  ;;  %v733_v50 = vpop.f32.mrb[43].mxu0  ;;  %1427 = vmatmul.mubr.bf16.gmra.mrb[36].mxu1 %v906_v47  ;;  %1620 = vmatmul.mubr.bf16.gmra.mrb[100].mxu0 %v906_v47 }
 0x1a0   : > { %v807_v51 = vpack.c.bf16 %v733_v50, %v729_v46 }
 0x1a1   : > { %v876_v52 = vadd.bf16 %v7224_v7, %v806_v49 }
 0x1a2   : > { %v877_v53 = vadd.bf16 %v7227_v9, %v807_v51 }
 0x1a3   : > { %v908_v57 = vmax.bf16 %v8534_v0, %v876_v52 }
 0x1a4   : > { %v737_v54 = vpop.f32.mrb[44].mxu0  ;;  %v909_v55 = vmax.bf16 %v8534_v0, %v877_v53 }
 0x1a5   : > { %v739_v56 = vpop.f32.mrb[45].mxu0 }
 0x1a6   : > { %v741_v58 = vpop.f32.mrb[46].mxu0  ;;  %1436 = vmatprep.mubr.bf16.mxu1 %v909_v55  ;;  %1629 = vmatprep.mubr.bf16.mxu0 %v909_v55  ;;  %v5405_v55 = vld.sshfl [vmem:[%s8515_s4] sm:$0x33 pattern:$0x75316420] }
 0x1a7   : > { %v808_v59 = vpack.c.bf16 %v741_v58, %v737_v54  ;;  %v743_v60 = vpop.f32.mrb[47].mxu0  ;;  %1437 = vmatmul.mubr.bf16.gmra.mrb[40].mxu1 %v908_v57  ;;  %1630 = vmatmul.mubr.bf16.gmra.mrb[104].mxu0 %v908_v57  ;;  %v6241_v54 = vld [vmem:[#allocation5 + $0x20c] ss:$16 sps:$4 sm:$0xff]   ;;  %v7297_v57 = vrot.slane %v5405_v55, %v7217_v61 }
 0x1a8   : > { %v809_v62 = vpack.c.bf16 %v743_v60, %v739_v56  ;;  %3283 = vmatprep.subr.bf16.mxu0 %v6241_v54  ;;  %v1763_v56 = vcombine.high %v5405_v55, %v5405_v55 }
 0x1a9   : > { %v878_v63 = vadd.bf16 %v7224_v7, %v808_v59 }
 0x1aa   : > { %v879_v1 = vadd.bf16 %v7227_v9, %v809_v62 }
 0x1ab   : > { %v910_v10 = vmax.bf16 %v8534_v0, %v878_v63 }
 0x1ac   : > { %v747_v4 = vpop.f32.mrb[48].mxu0  ;;  %v911_v5 = vmax.bf16 %v8534_v0, %v879_v1 }
 0x1ad   : > { %v749_v8 = vpop.f32.mrb[49].mxu0 }
 0x1ae   : > { %v751_v11 = vpop.f32.mrb[50].mxu0  ;;  %1446 = vmatprep.mubr.bf16.mxu1 %v911_v5  ;;  %1639 = vmatprep.mubr.bf16.mxu0 %v911_v5 }
 0x1af   : > { %v810_v12 = vpack.c.bf16 %v751_v11, %v747_v4  ;;  %v753_v13 = vpop.f32.mrb[51].mxu0  ;;  %1447 = vmatmul.mubr.bf16.gmra.mrb[44].mxu1 %v910_v10  ;;  %1640 = vmatmul.mubr.bf16.gmra.mrb[108].mxu0 %v910_v10 }
 0x1b0   : > { %v811_v16 = vpack.c.bf16 %v753_v13, %v749_v8 }
 0x1b1   : > { %v880_v19 = vadd.bf16 %v7224_v7, %v810_v12 }
 0x1b2   : > { %v881_v20 = vadd.bf16 %v7227_v9, %v811_v16 }
 0x1b3   : > { %v912_v24 = vmax.bf16 %v8534_v0, %v880_v19  ;;  %v6212_v19 = vld [vmem:[#allocation5 + $0x200] ss:$16 sps:$4 sm:$0xff]  }
 0x1b4   : > { %v757_v21 = vpop.f32.mrb[52].mxu0  ;;  %v913_v22 = vmax.bf16 %v8534_v0, %v881_v20  ;;  %v6239_v20 = vld [vmem:[#allocation5 + $0x208] ss:$16 sps:$4 sm:$0xff]  }
 0x1b5   : > { %v759_v23 = vpop.f32.mrb[53].mxu0 }
 0x1b6   : > { %v761_v25 = vpop.f32.mrb[54].mxu0  ;;  %1456 = vmatprep.mubr.bf16.mxu1 %v913_v22  ;;  %1649 = vmatprep.mubr.bf16.mxu0 %v913_v22 }
 0x1b7   : > { %v812_v26 = vpack.c.bf16 %v761_v25, %v757_v21  ;;  %v763_v27 = vpop.f32.mrb[55].mxu0  ;;  %1457 = vmatmul.mubr.bf16.gmra.mrb[48].mxu1 %v912_v24  ;;  %1650 = vmatmul.mubr.bf16.gmra.mrb[112].mxu0 %v912_v24  ;;  %v6217_v24 = vld [vmem:[#allocation5 + $0x224] ss:$16 sps:$4 sm:$0xff]   ;;  %v6244_v25 = vld [vmem:[#allocation5 + $0x22c] ss:$16 sps:$4 sm:$0xff]  }
 0x1b8   : > { %v813_v29 = vpack.c.bf16 %v763_v27, %v759_v23 }
 0x1b9   : > { %v882_v30 = vadd.bf16 %v7224_v7, %v812_v26 }
 0x1ba   : > { %v883_v31 = vadd.bf16 %v7227_v9, %v813_v29 }
 0x1bb   : > { %v914_v35 = vmax.bf16 %v8534_v0, %v882_v30 }
 0x1bc   : > { %v767_v32 = vpop.f32.mrb[56].mxu0  ;;  %v915_v33 = vmax.bf16 %v8534_v0, %v883_v31 }
 0x1bd   : > { %v769_v34 = vpop.f32.mrb[57].mxu0 }
 0x1be   : > { %v771_v36 = vpop.f32.mrb[58].mxu0  ;;  %1466 = vmatprep.mubr.bf16.mxu1 %v915_v33  ;;  %1659 = vmatprep.mubr.bf16.mxu0 %v915_v33 }
 0x1bf   : > { %v814_v37 = vpack.c.bf16 %v771_v36, %v767_v32  ;;  %v773_v38 = vpop.f32.mrb[59].mxu0  ;;  %1467 = vmatmul.mubr.bf16.gmra.mrb[52].mxu1 %v914_v35  ;;  %1660 = vmatmul.mubr.bf16.gmra.mrb[116].mxu0 %v914_v35  ;;  %v6242_v35 = vld [vmem:[#allocation5 + $0x228] ss:$16 sps:$4 sm:$0xff]  }
 0x1c0   : > { %v815_v39 = vpack.c.bf16 %v773_v38, %v769_v34  ;;  %v6215_v34 = vld [vmem:[#allocation5 + $0x220] ss:$16 sps:$4 sm:$0xff]   ;;  %v6250_v38 = vld [vmem:[#allocation5 + $0x24c] ss:$16 sps:$4 sm:$0xff]  }
 0x1c1   : > { %v884_v40 = vadd.bf16 %v7224_v7, %v814_v37  ;;  %v6220_v37 = vld [vmem:[#allocation5 + $0x244] ss:$16 sps:$4 sm:$0xff]  }
 0x1c2   : > { %v885_v41 = vadd.bf16 %v7227_v9, %v815_v39 }
 0x1c3   : > { %v916_v45 = vmax.bf16 %v8534_v0, %v884_v40 }
 0x1c4   : > { %v777_v42 = vpop.f32.mrb[60].mxu0  ;;  %v917_v43 = vmax.bf16 %v8534_v0, %v885_v41 }
 0x1c5   : > { %v779_v44 = vpop.f32.mrb[61].mxu0 }
 0x1c6   : > { %v781_v46 = vpop.f32.mrb[62].mxu0  ;;  %1476 = vmatprep.mubr.bf16.mxu1 %v917_v43  ;;  %1669 = vmatprep.mubr.bf16.mxu0 %v917_v43  ;;  %v6218_v43 = vld [vmem:[#allocation5 + $0x240] ss:$16 sps:$4 sm:$0xff]  }
 0x1c7   : > { %v816_v47 = vpack.c.bf16 %v781_v46, %v777_v42  ;;  %v783_v48 = vpop.f32.mrb[63].mxu0  ;;  %1477 = vmatmul.mubr.bf16.gmra.mrb[56].mxu1 %v916_v45  ;;  %1670 = vmatmul.mubr.bf16.gmra.mrb[120].mxu0 %v916_v45 }
 0x1c8   : > { %v817_v49 = vpack.c.bf16 %v783_v48, %v779_v44  ;;  %v6248_v44 = vld [vmem:[#allocation5 + $0x248] ss:$16 sps:$4 sm:$0xff]   ;;  %v6223_v48 = vld [vmem:[#allocation5 + $0x264] ss:$16 sps:$4 sm:$0xff]  }
 0x1c9   : > { %v886_v50 = vadd.bf16 %v7224_v7, %v816_v47  ;;  %v7300_v7 = vrot.slane %v1763_v56, %v7217_v61 }
 0x1ca   : > { %v887_v51 = vadd.bf16 %v7227_v9, %v817_v49  ;;  %v1781_v9 = vpack.i.b16 %v7297_v57, %v7297_v57  ;;  %v6253_v49 = vld [vmem:[#allocation5 + $0x26c] ss:$16 sps:$4 sm:$0xff]  }
 0x1cb   : > { %v918_v53 = vmax.bf16 %v8534_v0, %v886_v50  ;;  %v1788_v58 = vpack.i.b16 %v7300_v7, %v7300_v7 }
 0x1cc   : > { %v919_v52 = vmax.bf16 %v8534_v0, %v887_v51  ;;  %v7311_v1 = vrot.slane %v1781_v9, %v7221_v3 }
 0x1cd   : > { %v7316_v5 = vrot.slane %v1788_v58, %v7221_v3  ;;  %v6221_v58 = vld [vmem:[#allocation5 + $0x260] ss:$16 sps:$4 sm:$0xff]  }
 0x1ce   : > { %1486 = vmatprep.mubr.bf16.mxu1 %v919_v52  ;;  %1679 = vmatprep.mubr.bf16.mxu0 %v919_v52 }
 0x1cf   : > { %1487 = vmatmul.mubr.bf16.gmra.mrb[60].mxu1 %v918_v53  ;;  %1680 = vmatmul.mubr.bf16.gmra.mrb[124].mxu0 %v918_v53 }
 0x22a   : > { %v1338_v59 = vpop.f32.mrb[0].mxu1  ;;  %v7306_v60 = vpop.f32.mrb[64].mxu0 }
 0x22b   : > { %v1340_v62 = vpop.f32.mrb[1].mxu1  ;;  %v7308_v63 = vpop.f32.mrb[65].mxu0 }
 0x22c   : > { %v1342_v2 = vpop.f32.mrb[2].mxu1  ;;  %v7313_v4 = vpop.f32.mrb[66].mxu0 }
 0x22d   : > { %v1690_v6 = vpack.c.bf16 %v1342_v2, %v1338_v59  ;;  %v1344_v10 = vpop.f32.mrb[3].mxu1  ;;  %v7320_v11 = vpop.f32.mrb[67].mxu0  ;;  %v6251_v59 = vld [vmem:[#allocation5 + $0x268] ss:$16 sps:$4 sm:$0xff]   ;;  %v6226_v2 = vld [vmem:[#allocation5 + $0x284] ss:$16 sps:$4 sm:$0xff]  }
 0x22e   : > { %v1691_v12 = vpack.c.bf16 %v1344_v10, %v1340_v62 }
 0x22f   : > { %v1808_v14 = vadd.bf16 %v7311_v1, %v1690_v6  ;;  %v6259_v6 = vld [vmem:[#allocation5 + $0x28c] ss:$16 sps:$4 sm:$0xff]  }
 0x230   : > { %v1809_v15 = vadd.bf16 %v7316_v5, %v1691_v12 }
 0x231   : > { %v1872_v21 = vmax.bf16 %v8534_v0, %v1808_v14 }
 0x232   : > { %v1348_v16 = vpop.f32.mrb[4].mxu1  ;;  %v7326_v17 = vpop.f32.mrb[68].mxu0  ;;  %v1873_v18 = vmax.bf16 %v8534_v0, %v1809_v15 }
 0x233   : > { %v1350_v22 = vpop.f32.mrb[5].mxu1  ;;  %v7330_v23 = vpop.f32.mrb[69].mxu0 }
 0x234   : > { %v1352_v26 = vpop.f32.mrb[6].mxu1  ;;  %v7332_v27 = vpop.f32.mrb[70].mxu0  ;;  %2736 = vmatprep.mubr.bf16.mxu1 %v1873_v18  ;;  %3122 = vmatprep.mubr.bf16.mxu0 %v1873_v18  ;;  %v6257_v18 = vld [vmem:[#allocation5 + $0x288] ss:$16 sps:$4 sm:$0xff]  }
 0x235   : > { %v1694_v28 = vpack.c.bf16 %v1352_v26, %v1348_v16  ;;  %v1354_v30 = vpop.f32.mrb[7].mxu1  ;;  %v7336_v31 = vpop.f32.mrb[71].mxu0  ;;  %2737 = vmatmul.mubr.bf16.vlgmr.msra.gmra.mrb[64].mxu1 %v1872_v21  ;;  %3123 = vmatmul.mubr.bf16.vlgmr.msra.gmra.mrb[128].mxu0 %v1872_v21  ;;  %v6224_v16 = vld [vmem:[#allocation5 + $0x280] ss:$16 sps:$4 sm:$0xff]  }
 0x236   : > { %v1695_v32 = vpack.c.bf16 %v1354_v30, %v1350_v22  ;;  %2898 = vmatpush1.bf16.msra.mxu1 %v6212_v19  ;;  %3284 = vmatpush1.bf16.msra.mxu0 %v6239_v20  ;;  %v6229_v22 = vld [vmem:[#allocation5 + $0x2a4] ss:$16 sps:$4 sm:$0xff]  }
 0x237   : > { %v1812_v36 = vadd.bf16 %v7311_v1, %v1694_v28  ;;  %2899 = vmatprep.subr.bf16.mxu1 %v6217_v24  ;;  %3285 = vmatprep.subr.bf16.mxu0 %v6244_v25  ;;  %v6262_v24 = vld [vmem:[#allocation5 + $0x2ac] ss:$16 sps:$4 sm:$0xff]  }
 0x238   : > { %v1813_v39 = vadd.bf16 %v7316_v5, %v1695_v32 }
 0x239   : > { %v1876_v47 = vmax.bf16 %v8534_v0, %v1812_v36 }
 0x23a   : > { %v1358_v40 = vpop.f32.mrb[8].mxu1  ;;  %v7342_v41 = vpop.f32.mrb[72].mxu0  ;;  %v1877_v42 = vmax.bf16 %v8534_v0, %v1813_v39  ;;  %2900 = vmatpush1.bf16.msra.mxu1 %v6215_v34  ;;  %3286 = vmatpush1.bf16.msra.mxu0 %v6242_v35 }
 0x23b   : > { %v1360_v45 = vpop.f32.mrb[9].mxu1  ;;  %v7345_v46 = vpop.f32.mrb[73].mxu0  ;;  %2901 = vmatprep.subr.bf16.mxu1 %v6220_v37  ;;  %3287 = vmatprep.subr.bf16.mxu0 %v6250_v38  ;;  %v6227_v37 = vld [vmem:[#allocation5 + $0x2a0] ss:$16 sps:$4 sm:$0xff]   ;;  %v6260_v38 = vld [vmem:[#allocation5 + $0x2a8] ss:$16 sps:$4 sm:$0xff]  }
 0x23c   : > { %v1362_v50 = vpop.f32.mrb[10].mxu1  ;;  %v7348_v51 = vpop.f32.mrb[74].mxu0  ;;  %2746 = vmatprep.mubr.bf16.mxu1 %v1877_v42  ;;  %3132 = vmatprep.mubr.bf16.mxu0 %v1877_v42  ;;  %v6268_v42 = vld [vmem:[#allocation5 + $0x2cc] ss:$16 sps:$4 sm:$0xff]  }
 0x23d   : > { %v1698_v52 = vpack.c.bf16 %v1362_v50, %v1358_v40  ;;  %v1364_v54 = vpop.f32.mrb[11].mxu1  ;;  %v7352_v55 = vpop.f32.mrb[75].mxu0  ;;  %2747 = vmatmul.mubr.bf16.gmra.mrb[68].mxu1 %v1876_v47  ;;  %3133 = vmatmul.mubr.bf16.gmra.mrb[132].mxu0 %v1876_v47  ;;  %v6232_v40 = vld [vmem:[#allocation5 + $0x2c4] ss:$16 sps:$4 sm:$0xff]  }
 0x23e   : > { %v1699_v56 = vpack.c.bf16 %v1364_v54, %v1360_v45  ;;  %2902 = vmatpush1.bf16.msra.mxu1 %v6218_v43  ;;  %3288 = vmatpush1.bf16.msra.mxu0 %v6248_v44 }
 0x23f   : > { %v1816_v62 = vadd.bf16 %v7311_v1, %v1698_v52  ;;  %2903 = vmatprep.subr.bf16.mxu1 %v6223_v48  ;;  %3289 = vmatprep.subr.bf16.mxu0 %v6253_v49  ;;  %v6230_v48 = vld [vmem:[#allocation5 + $0x2c0] ss:$16 sps:$4 sm:$0xff]   ;;  %v6266_v49 = vld [vmem:[#allocation5 + $0x2c8] ss:$16 sps:$4 sm:$0xff]  }
 0x240   : > { %v1817_v10 = vadd.bf16 %v7316_v5, %v1699_v56  ;;  %v6235_v56 = vld [vmem:[#allocation5 + $0x2e4] ss:$16 sps:$4 sm:$0xff]  }
 0x241   : > { %v1880_v21 = vmax.bf16 %v8534_v0, %v1816_v62 }
 0x242   : > { %v1368_v12 = vpop.f32.mrb[12].mxu1  ;;  %v7358_v14 = vpop.f32.mrb[76].mxu0  ;;  %v1881_v15 = vmax.bf16 %v8534_v0, %v1817_v10  ;;  %2904 = vmatpush1.bf16.msra.mxu1 %v6221_v58  ;;  %3290 = vmatpush1.bf16.msra.mxu0 %v6251_v59  ;;  %v6271_v58 = vld [vmem:[#allocation5 + $0x2ec] ss:$16 sps:$4 sm:$0xff]  }
 0x243   : > { %v1370_v19 = vpop.f32.mrb[13].mxu1  ;;  %v7361_v20 = vpop.f32.mrb[77].mxu0  ;;  %2905 = vmatprep.subr.bf16.mxu1 %v6226_v2  ;;  %3291 = vmatprep.subr.bf16.mxu0 %v6259_v6 }
 0x244   : > { %v1372_v25 = vpop.f32.mrb[14].mxu1  ;;  %v7364_v26 = vpop.f32.mrb[78].mxu0  ;;  %2756 = vmatprep.mubr.bf16.mxu1 %v1881_v15  ;;  %3142 = vmatprep.mubr.bf16.mxu0 %v1881_v15 }
 0x245   : > { %v1702_v28 = vpack.c.bf16 %v1372_v25, %v1368_v12  ;;  %v1374_v32 = vpop.f32.mrb[15].mxu1  ;;  %v7368_v34 = vpop.f32.mrb[79].mxu0  ;;  %2757 = vmatmul.mubr.bf16.gmra.mrb[72].mxu1 %v1880_v21  ;;  %3143 = vmatmul.mubr.bf16.gmra.mrb[136].mxu0 %v1880_v21 }
 0x246   : > { %v1703_v35 = vpack.c.bf16 %v1374_v32, %v1370_v19  ;;  %2906 = vmatpush1.bf16.msra.mxu1 %v6224_v16  ;;  %3292 = vmatpush1.bf16.msra.mxu0 %v6257_v18  ;;  %v6233_v18 = vld [vmem:[#allocation5 + $0x2e0] ss:$16 sps:$4 sm:$0xff]   ;;  %v6269_v19 = vld [vmem:[#allocation5 + $0x2e8] ss:$16 sps:$4 sm:$0xff]  }
 0x247   : > { %v1820_v39 = vadd.bf16 %v7311_v1, %v1702_v28  ;;  %2907 = vmatprep.subr.bf16.mxu1 %v6229_v22  ;;  %3293 = vmatprep.subr.bf16.mxu0 %v6262_v24  ;;  %v6238_v22 = vld [vmem:[#allocation5 + $0x304] ss:$16 sps:$4 sm:$0xff]   ;;  %v6277_v24 = vld [vmem:[#allocation5 + $0x30c] ss:$16 sps:$4 sm:$0xff]  }
 0x248   : > { %v1821_v43 = vadd.bf16 %v7316_v5, %v1703_v35 }
 0x249   : > { %v1884_v54 = vmax.bf16 %v8534_v0, %v1820_v39 }
 0x24a   : > { %v1378_v44 = vpop.f32.mrb[16].mxu1  ;;  %v7374_v45 = vpop.f32.mrb[80].mxu0  ;;  %v1885_v47 = vmax.bf16 %v8534_v0, %v1821_v43  ;;  %2908 = vmatpush1.bf16.msra.mxu1 %v6227_v37  ;;  %3294 = vmatpush1.bf16.msra.mxu0 %v6260_v38  ;;  %v6236_v37 = vld [vmem:[#allocation5 + $0x300] ss:$16 sps:$4 sm:$0xff]   ;;  %v6275_v38 = vld [vmem:[#allocation5 + $0x308] ss:$16 sps:$4 sm:$0xff]  }
 0x24b   : > { %v1380_v50 = vpop.f32.mrb[17].mxu1  ;;  %v7377_v52 = vpop.f32.mrb[81].mxu0  ;;  %2909 = vmatprep.subr.bf16.mxu1 %v6232_v40  ;;  %3295 = vmatprep.subr.bf16.mxu0 %v6268_v42  ;;  %v6247_v43 = vld [vmem:[#allocation5 + $0x324] ss:$16 sps:$4 sm:$0xff]  }
 0x24c   : > { %v1382_v59 = vpop.f32.mrb[18].mxu1  ;;  %v7380_v62 = vpop.f32.mrb[82].mxu0  ;;  %2766 = vmatprep.mubr.bf16.mxu1 %v1885_v47  ;;  %3152 = vmatprep.mubr.bf16.mxu0 %v1885_v47 }
 0x24d   : > { %v1706_v2 = vpack.c.bf16 %v1382_v59, %v1378_v44  ;;  %v1384_v10 = vpop.f32.mrb[19].mxu1  ;;  %v7384_v12 = vpop.f32.mrb[83].mxu0  ;;  %2767 = vmatmul.mubr.bf16.gmra.mrb[76].mxu1 %v1884_v54  ;;  %3153 = vmatmul.mubr.bf16.gmra.mrb[140].mxu0 %v1884_v54  ;;  %v6280_v44 = vld [vmem:[#allocation5 + $0x32c] ss:$16 sps:$4 sm:$0xff]  }
 0x24e   : > { %v1707_v15 = vpack.c.bf16 %v1384_v10, %v1380_v50  ;;  %2910 = vmatpush1.bf16.msra.mxu1 %v6230_v48  ;;  %3296 = vmatpush1.bf16.msra.mxu0 %v6266_v49  ;;  %v6278_v10 = vld [vmem:[#allocation5 + $0x328] ss:$16 sps:$4 sm:$0xff]  }
 0x24f   : > { %v1824_v21 = vadd.bf16 %v7311_v1, %v1706_v2  ;;  %2911 = vmatprep.subr.bf16.mxu1 %v6235_v56  ;;  %3297 = vmatprep.subr.bf16.mxu0 %v6271_v58  ;;  %v6245_v2 = vld [vmem:[#allocation5 + $0x320] ss:$16 sps:$4 sm:$0xff]  }
 0x250   : > { %v1825_v25 = vadd.bf16 %v7316_v5, %v1707_v15 }
 0x251   : > { %v1888_v42 = vmax.bf16 %v8534_v0, %v1824_v21 }
 0x252   : > { %v1388_v28 = vpop.f32.mrb[20].mxu1  ;;  %v7390_v32 = vpop.f32.mrb[84].mxu0  ;;  %v1889_v35 = vmax.bf16 %v8534_v0, %v1825_v25  ;;  %2912 = vmatpush1.bf16.msra.mxu1 %v6233_v18  ;;  %3298 = vmatpush1.bf16.msra.mxu0 %v6269_v19  ;;  %v6256_v18 = vld [vmem:[#allocation5 + $0x344] ss:$16 sps:$4 sm:$0xff]   ;;  %v6286_v19 = vld [vmem:[#allocation5 + $0x34c] ss:$16 sps:$4 sm:$0xff]  }
 0x253   : > { %v1390_v39 = vpop.f32.mrb[21].mxu1  ;;  %v7393_v40 = vpop.f32.mrb[85].mxu0  ;;  %2913 = vmatprep.subr.bf16.mxu1 %v6238_v22  ;;  %3299 = vmatprep.subr.bf16.mxu0 %v6277_v24 }
 0x254   : > { %v1392_v47 = vpop.f32.mrb[22].mxu1  ;;  %v7396_v48 = vpop.f32.mrb[86].mxu0  ;;  %2776 = vmatprep.mubr.bf16.mxu1 %v1889_v35  ;;  %3162 = vmatprep.mubr.bf16.mxu0 %v1889_v35  ;;  %v6284_v35 = vld [vmem:[#allocation5 + $0x348] ss:$16 sps:$4 sm:$0xff]  }
 0x255   : > { %v1710_v49 = vpack.c.bf16 %v1392_v47, %v1388_v28  ;;  %v1394_v54 = vpop.f32.mrb[23].mxu1  ;;  %v7400_v56 = vpop.f32.mrb[87].mxu0  ;;  %2777 = vmatmul.mubr.bf16.gmra.mrb[80].mxu1 %v1888_v42  ;;  %3163 = vmatmul.mubr.bf16.gmra.mrb[144].mxu0 %v1888_v42  ;;  %v6254_v28 = vld [vmem:[#allocation5 + $0x340] ss:$16 sps:$4 sm:$0xff]   ;;  %v6265_v42 = vld [vmem:[#allocation5 + $0x364] ss:$16 sps:$4 sm:$0xff]  }
 0x256   : > { %v1711_v58 = vpack.c.bf16 %v1394_v54, %v1390_v39  ;;  %2914 = vmatpush1.bf16.msra.mxu1 %v6236_v37  ;;  %3300 = vmatpush1.bf16.msra.mxu0 %v6275_v38 }
 0x257   : > { %v1828_v15 = vadd.bf16 %v7311_v1, %v1710_v49  ;;  %2915 = vmatprep.subr.bf16.mxu1 %v6247_v43  ;;  %3301 = vmatprep.subr.bf16.mxu0 %v6280_v44  ;;  %v6289_v43 = vld [vmem:[#allocation5 + $0x36c] ss:$16 sps:$4 sm:$0xff]  }
 0x258   : > { %v1829_v21 = vadd.bf16 %v7316_v5, %v1711_v58 }
 0x259   : > { %v1892_v39 = vmax.bf16 %v8534_v0, %v1828_v15 }
 0x25a   : > { %v1398_v22 = vpop.f32.mrb[24].mxu1  ;;  %v7406_v24 = vpop.f32.mrb[88].mxu0  ;;  %v1893_v25 = vmax.bf16 %v8534_v0, %v1829_v21  ;;  %2916 = vmatpush1.bf16.msra.mxu1 %v6245_v2  ;;  %3302 = vmatpush1.bf16.msra.mxu0 %v6278_v10 }
 0x25b   : > { %v1400_v37 = vpop.f32.mrb[25].mxu1  ;;  %v7409_v38 = vpop.f32.mrb[89].mxu0  ;;  %2917 = vmatprep.subr.bf16.mxu1 %v6256_v18  ;;  %3303 = vmatprep.subr.bf16.mxu0 %v6286_v19  ;;  %v6263_v18 = vld [vmem:[#allocation5 + $0x360] ss:$16 sps:$4 sm:$0xff]   ;;  %v6287_v19 = vld [vmem:[#allocation5 + $0x368] ss:$16 sps:$4 sm:$0xff]  }
 0x25c   : > { %v1402_v44 = vpop.f32.mrb[26].mxu1  ;;  %v7412_v47 = vpop.f32.mrb[90].mxu0  ;;  %2786 = vmatprep.mubr.bf16.mxu1 %v1893_v25  ;;  %3172 = vmatprep.mubr.bf16.mxu0 %v1893_v25  ;;  %v6295_v25 = vld [vmem:[#allocation5 + $0x38c] ss:$16 sps:$4 sm:$0xff]  }
 0x25d   : > { %v1714_v49 = vpack.c.bf16 %v1402_v44, %v1398_v22  ;;  %v1404_v58 = vpop.f32.mrb[27].mxu1  ;;  %v7416_v2 = vpop.f32.mrb[91].mxu0  ;;  %2787 = vmatmul.mubr.bf16.gmra.mrb[84].mxu1 %v1892_v39  ;;  %3173 = vmatmul.mubr.bf16.gmra.mrb[148].mxu0 %v1892_v39  ;;  %v6274_v22 = vld [vmem:[#allocation5 + $0x384] ss:$16 sps:$4 sm:$0xff]   ;;  %v6272_v39 = vld [vmem:[#allocation5 + $0x380] ss:$16 sps:$4 sm:$0xff]  }
 0x25e   : > { %v1715_v10 = vpack.c.bf16 %v1404_v58, %v1400_v37  ;;  %2918 = vmatpush1.bf16.msra.mxu1 %v6254_v28  ;;  %3304 = vmatpush1.bf16.msra.mxu0 %v6284_v35  ;;  %v6293_v28 = vld [vmem:[#allocation5 + $0x388] ss:$16 sps:$4 sm:$0xff]  }
 0x25f   : > { %v1832_v21 = vadd.bf16 %v7311_v1, %v1714_v49  ;;  %2919 = vmatprep.subr.bf16.mxu1 %v6265_v42  ;;  %3305 = vmatprep.subr.bf16.mxu0 %v6289_v43  ;;  %v6283_v42 = vld [vmem:[#allocation5 + $0x3a4] ss:$16 sps:$4 sm:$0xff]   ;;  %v6298_v43 = vld [vmem:[#allocation5 + $0x3ac] ss:$16 sps:$4 sm:$0xff]  }
 0x260   : > { %v1833_v44 = vadd.bf16 %v7316_v5, %v1715_v10 }
 0x261   : > { %v1896_v49 = vmax.bf16 %v8534_v0, %v1832_v21 }
 0x262   : > { %v1408_v54 = vpop.f32.mrb[28].mxu1  ;;  %v7422_v50 = vpop.f32.mrb[92].mxu0  ;;  %v1897_v37 = vmax.bf16 %v8534_v0, %v1833_v44  ;;  %2920 = vmatpush1.bf16.msra.mxu1 %v6263_v18  ;;  %3306 = vmatpush1.bf16.msra.mxu0 %v6287_v19 }
 0x263   : > { %v1410_v58 = vpop.f32.mrb[29].mxu1  ;;  %v7425_v35 = vpop.f32.mrb[93].mxu0  ;;  %2921 = vmatprep.subr.bf16.mxu1 %v6274_v22  ;;  %3307 = vmatprep.subr.bf16.mxu0 %v6295_v25  ;;  %v6281_v22 = vld [vmem:[#allocation5 + $0x3a0] ss:$16 sps:$4 sm:$0xff]   ;;  %v6296_v25 = vld [vmem:[#allocation5 + $0x3a8] ss:$16 sps:$4 sm:$0xff]  }
 0x264   : > { %v1412_v15 = vpop.f32.mrb[30].mxu1  ;;  %v7428_v10 = vpop.f32.mrb[94].mxu0  ;;  %2796 = vmatprep.mubr.bf16.mxu1 %v1897_v37  ;;  %3182 = vmatprep.mubr.bf16.mxu0 %v1897_v37 }
 0x265   : > { %v1718_v59 = vpack.c.bf16 %v1412_v15, %v1408_v54  ;;  %v1414_v19 = vpop.f32.mrb[31].mxu1  ;;  %v7432_v44 = vpop.f32.mrb[95].mxu0  ;;  %2797 = vmatmul.mubr.bf16.gmra.mrb[88].mxu1 %v1896_v49  ;;  %3183 = vmatmul.mubr.bf16.gmra.mrb[152].mxu0 %v1896_v49  ;;  %v6292_v54 = vld [vmem:[#allocation5 + $0x3c4] ss:$16 sps:$4 sm:$0xff]   ;;  %v6304_v15 = vld [vmem:[#allocation5 + $0x3cc] ss:$16 sps:$4 sm:$0xff]  }
 0x266   : > { %v1719_v6 = vpack.c.bf16 %v1414_v19, %v1410_v58  ;;  %2922 = vmatpush1.bf16.msra.mxu1 %v6272_v39  ;;  %3308 = vmatpush1.bf16.msra.mxu0 %v6293_v28  ;;  %v6290_v49 = vld [vmem:[#allocation5 + $0x3c0] ss:$16 sps:$4 sm:$0xff]   ;;  %v6302_v39 = vld [vmem:[#allocation5 + $0x3c8] ss:$16 sps:$4 sm:$0xff]  }
 0x267   : > { %v1836_v16 = vadd.bf16 %v7311_v1, %v1718_v59  ;;  %2923 = vmatprep.subr.bf16.mxu1 %v6283_v42  ;;  %3309 = vmatprep.subr.bf16.mxu0 %v6298_v43  ;;  %v6301_v42 = vld [vmem:[#allocation5 + $0x3e4] ss:$16 sps:$4 sm:$0xff]   ;;  %v6307_v43 = vld [vmem:[#allocation5 + $0x3ec] ss:$16 sps:$4 sm:$0xff]  }
 0x268   : > { %v1837_v37 = vadd.bf16 %v7316_v5, %v1719_v6 }
 0x269   : > { %v1900_v59 = vmax.bf16 %v8534_v0, %v1836_v16 }
 0x26a   : > { %v1418_v18 = vpop.f32.mrb[32].mxu1  ;;  %v7438_v30 = vpop.f32.mrb[96].mxu0  ;;  %v1901_v58 = vmax.bf16 %v8534_v0, %v1837_v37  ;;  %2924 = vmatpush1.bf16.msra.mxu1 %v6281_v22  ;;  %3310 = vmatpush1.bf16.msra.mxu0 %v6296_v25 }
 0x26b   : > { %v1420_v19 = vpop.f32.mrb[33].mxu1  ;;  %v7441_v28 = vpop.f32.mrb[97].mxu0  ;;  %2925 = vmatprep.subr.bf16.mxu1 %v6292_v54  ;;  %3311 = vmatprep.subr.bf16.mxu0 %v6304_v15  ;;  %v6299_v54 = vld [vmem:[#allocation5 + $0x3e0] ss:$16 sps:$4 sm:$0xff]   ;;  %v6305_v15 = vld [vmem:[#allocation5 + $0x3e8] ss:$16 sps:$4 sm:$0xff]  }
 0x26c   : > { %v1422_v21 = vpop.f32.mrb[34].mxu1  ;;  %v7444_v6 = vpop.f32.mrb[98].mxu0  ;;  %2806 = vmatprep.mubr.bf16.mxu1 %v1901_v58  ;;  %3192 = vmatprep.mubr.bf16.mxu0 %v1901_v58 }
 0x26d   : > { %v1722_v36 = vpack.c.bf16 %v1422_v21, %v1418_v18  ;;  %v1424_v25 = vpop.f32.mrb[35].mxu1  ;;  %v7448_v37 = vpop.f32.mrb[99].mxu0  ;;  %2807 = vmatmul.mubr.bf16.gmra.mrb[92].mxu1 %v1900_v59  ;;  %3193 = vmatmul.mubr.bf16.gmra.mrb[156].mxu0 %v1900_v59 }
 0x26e   : > { %v1723_v53 = vpack.c.bf16 %v1424_v25, %v1420_v19  ;;  %2926 = vmatpush1.bf16.msra.mxu1 %v6290_v49  ;;  %3312 = vmatpush1.bf16.msra.mxu0 %v6302_v39 }
 0x26f   : > { %v1840_v9 = vadd.bf16 %v7311_v1, %v1722_v36  ;;  %2927 = vmatprep.subr.bf16.mxu1 %v6301_v42  ;;  %3313 = vmatprep.subr.bf16.mxu0 %v6307_v43 }
 0x270   : > { %v1841_v18 = vadd.bf16 %v7316_v5, %v1723_v53 }
 0x271   : > { %v1904_v49 = vmax.bf16 %v8534_v0, %v1840_v9 }
 0x272   : > { %v1428_v21 = vpop.f32.mrb[36].mxu1  ;;  %v7454_v58 = vpop.f32.mrb[100].mxu0  ;;  %v1905_v22 = vmax.bf16 %v8534_v0, %v1841_v18  ;;  %2928 = vmatpush1.bf16.msra.mxu1 %v6299_v54  ;;  %3314 = vmatpush1.bf16.msra.mxu0 %v6305_v15 }
 0x273   : > { %v1430_v19 = vpop.f32.mrb[37].mxu1  ;;  %v7457_v59 = vpop.f32.mrb[101].mxu0 }
 0x274   : > { %v1432_v39 = vpop.f32.mrb[38].mxu1  ;;  %v7460_v25 = vpop.f32.mrb[102].mxu0  ;;  %2816 = vmatprep.mubr.bf16.mxu1 %v1905_v22  ;;  %3202 = vmatprep.mubr.bf16.mxu0 %v1905_v22 }
 0x275   : > { %v1726_v36 = vpack.c.bf16 %v1432_v39, %v1428_v21  ;;  %v1434_v42 = vpop.f32.mrb[39].mxu1  ;;  %v7464_v43 = vpop.f32.mrb[103].mxu0  ;;  %2817 = vmatmul.mubr.bf16.gmra.mrb[96].mxu1 %v1904_v49  ;;  %3203 = vmatmul.mubr.bf16.gmra.mrb[160].mxu0 %v1904_v49 }
 0x276   : > { %v1727_v54 = vpack.c.bf16 %v1434_v42, %v1430_v19 }
 0x277   : > { %v1844_v9 = vadd.bf16 %v7311_v1, %v1726_v36 }
 0x278   : > { %v1845_v18 = vadd.bf16 %v7316_v5, %v1727_v54 }
 0x279   : > { %v1908_v53 = vmax.bf16 %v8534_v0, %v1844_v9 }
 0x27a   : > { %v1438_v16 = vpop.f32.mrb[40].mxu1  ;;  %v7470_v29 = vpop.f32.mrb[104].mxu0  ;;  %v1909_v22 = vmax.bf16 %v8534_v0, %v1845_v18 }
 0x27b   : > { %8597 = vst [vmem:[#allocation22_spill] sm:$0xff] %v7470_v29  ;;  %v1440_v21 = vpop.f32.mrb[41].mxu1  ;;  %v7473_v39 = vpop.f32.mrb[105].mxu0 }
 0x27c   : > { %8598 = vst [vmem:[#allocation23_spill] sm:$0xff] %v7473_v39  ;;  %v1442_v33 = vpop.f32.mrb[42].mxu1  ;;  %v7476_v49 = vpop.f32.mrb[106].mxu0  ;;  %2826 = vmatprep.mubr.bf16.mxu1 %v1909_v22  ;;  %3212 = vmatprep.mubr.bf16.mxu0 %v1909_v22 }
 0x27d   : > { %8599 = vst [vmem:[#allocation24_spill] sm:$0xff] %v7476_v49  ;;  %v1730_v19 = vpack.c.bf16 %v1442_v33, %v1438_v16  ;;  %v1444_v42 = vpop.f32.mrb[43].mxu1  ;;  %v7480_v54 = vpop.f32.mrb[107].mxu0  ;;  %2827 = vmatmul.mubr.bf16.gmra.mrb[100].mxu1 %v1908_v53  ;;  %3213 = vmatmul.mubr.bf16.gmra.mrb[164].mxu0 %v1908_v53  ;;  %v8602_v33 = vmov 0  }
 0x27e   : > { %8600 = vst [vmem:[#allocation25_spill] sm:$0xff] %v7480_v54  ;;  %v1731_v18 = vpack.c.bf16 %v1444_v42, %v1440_v21 }
 0x27f   : > { %v1848_v9 = vadd.bf16 %v7311_v1, %v1730_v19 }
 0x280   : > { %v1849_v8 = vadd.bf16 %v7316_v5, %v1731_v18 }
 0x281   : > { %v1912_v61 = vmax.bf16 %v8602_v33, %v1848_v9 }
 0x282   : > { %v1448_v13 = vpop.f32.mrb[44].mxu1  ;;  %v7486_v0 = vpop.f32.mrb[108].mxu0  ;;  %v1913_v16 = vmax.bf16 %v8602_v33, %v1849_v8 }
 0x283   : > { %8601 = vst [vmem:[#allocation26_spill] sm:$0xff] %v7486_v0  ;;  %v1450_v22 = vpop.f32.mrb[45].mxu1  ;;  %v7489_v36 = vpop.f32.mrb[109].mxu0 }
 0x284   : > { %8603 = vst [vmem:[#allocation27_spill] sm:$0xff] %v7489_v36  ;;  %v1452_v29 = vpop.f32.mrb[46].mxu1  ;;  %v7492_v53 = vpop.f32.mrb[110].mxu0  ;;  %2836 = vmatprep.mubr.bf16.mxu1 %v1913_v16  ;;  %3222 = vmatprep.mubr.bf16.mxu0 %v1913_v16 }
 0x285   : > { %8604 = vst [vmem:[#allocation28_spill] sm:$0xff] %v7492_v53  ;;  %v1734_v21 = vpack.c.bf16 %v1452_v29, %v1448_v13  ;;  %v1454_v42 = vpop.f32.mrb[47].mxu1  ;;  %v7496_v18 = vpop.f32.mrb[111].mxu0  ;;  %2837 = vmatmul.mubr.bf16.gmra.mrb[104].mxu1 %v1912_v61  ;;  %3223 = vmatmul.mubr.bf16.gmra.mrb[168].mxu0 %v1912_v61  ;;  %v6310_v53 = vld [vmem:[#allocation7 + $0x4] ss:$8 sps:$4 sm:$0xff]  }
 0x286   : > { %8605 = vst [vmem:[#allocation29_spill] sm:$0xff] %v7496_v18  ;;  %v1735_v8 = vpack.c.bf16 %v1454_v42, %v1450_v22  ;;  %4106 = vmatprep.subr.bf16.mxu1 %v6310_v53 }
 0x287   : > { %v1852_v9 = vadd.bf16 %v7311_v1, %v1734_v21 }
 0x288   : > { %v1853_v49 = vadd.bf16 %v7316_v5, %v1735_v8 }
 0x289   : > { %v1916_v19 = vmax.bf16 %v8602_v33, %v1852_v9 }
 0x28a   : > { %v1458_v39 = vpop.f32.mrb[48].mxu1  ;;  %v7502_v54 = vpop.f32.mrb[112].mxu0  ;;  %v1917_v13 = vmax.bf16 %v8602_v33, %v1853_v49 }
 0x28b   : > { %8606 = vst [vmem:[#allocation30_spill] sm:$0xff] %v7502_v54  ;;  %v1460_v29 = vpop.f32.mrb[49].mxu1  ;;  %v7505_v16 = vpop.f32.mrb[113].mxu0 }
 0x28c   : > { %8607 = vst [vmem:[#allocation31_spill] sm:$0xff] %v7505_v16  ;;  %v1462_v0 = vpop.f32.mrb[50].mxu1  ;;  %v7508_v61 = vpop.f32.mrb[114].mxu0  ;;  %2846 = vmatprep.mubr.bf16.mxu1 %v1917_v13  ;;  %3232 = vmatprep.mubr.bf16.mxu0 %v1917_v13 }
 0x28d   : > { %8608 = vst [vmem:[#allocation32_spill] sm:$0xff] %v7508_v61  ;;  %v1738_v22 = vpack.c.bf16 %v1462_v0, %v1458_v39  ;;  %v1464_v42 = vpop.f32.mrb[51].mxu1  ;;  %v7512_v8 = vpop.f32.mrb[115].mxu0  ;;  %2847 = vmatmul.mubr.bf16.gmra.mrb[108].mxu1 %v1916_v19  ;;  %3233 = vmatmul.mubr.bf16.gmra.mrb[172].mxu0 %v1916_v19 }
 0x28e   : > { %8609 = vst [vmem:[#allocation33_spill] sm:$0xff] %v7512_v8  ;;  %v1739_v49 = vpack.c.bf16 %v1464_v42, %v1460_v29 }
 0x28f   : > { %v1856_v9 = vadd.bf16 %v7311_v1, %v1738_v22 }
 0x290   : > { %v1857_v36 = vadd.bf16 %v7316_v5, %v1739_v49 }
 0x291   : > { %v1920_v19 = vmax.bf16 %v8602_v33, %v1856_v9 }
 0x292   : > { %v1468_v13 = vpop.f32.mrb[52].mxu1  ;;  %v7518_v0 = vpop.f32.mrb[116].mxu0  ;;  %v1921_v39 = vmax.bf16 %v8602_v33, %v1857_v36 }
 0x293   : > { %8610 = vst [vmem:[#allocation34_spill] sm:$0xff] %v7518_v0  ;;  %v1470_v21 = vpop.f32.mrb[53].mxu1  ;;  %v7521_v54 = vpop.f32.mrb[117].mxu0 }
 0x294   : > { %8611 = vst [vmem:[#allocation35_spill] sm:$0xff] %v7521_v54  ;;  %v1472_v29 = vpop.f32.mrb[54].mxu1  ;;  %v7524_v42 = vpop.f32.mrb[118].mxu0  ;;  %2856 = vmatprep.mubr.bf16.mxu1 %v1921_v39  ;;  %3242 = vmatprep.mubr.bf16.mxu0 %v1921_v39 }
 0x295   : > { %8612 = vst [vmem:[#allocation36_spill] sm:$0xff] %v7524_v42  ;;  %v1742_v15 = vpack.c.bf16 %v1472_v29, %v1468_v13  ;;  %v1474_v53 = vpop.f32.mrb[55].mxu1  ;;  %v7528_v49 = vpop.f32.mrb[119].mxu0  ;;  %2857 = vmatmul.mubr.bf16.gmra.mrb[112].mxu1 %v1920_v19  ;;  %3243 = vmatmul.mubr.bf16.gmra.mrb[176].mxu0 %v1920_v19 }
 0x296   : > { %8613 = vst [vmem:[#allocation37_spill] sm:$0xff] %v7528_v49  ;;  %v1743_v36 = vpack.c.bf16 %v1474_v53, %v1470_v21  ;;  %v1779_v21 = vcombine.high %v7300_v7, %v7300_v7 }
 0x297   : > { %v1860_v9 = vadd.bf16 %v7311_v1, %v1742_v15 }
 0x298   : > { %v1861_v16 = vadd.bf16 %v7316_v5, %v1743_v36  ;;  %v1802_v42 = vpack.i.b16 %v1779_v21, %v1779_v21 }
 0x299   : > { %v1924_v22 = vmax.bf16 %v8602_v33, %v1860_v9 }
 0x29a   : > { %v1478_v8 = vpop.f32.mrb[56].mxu1  ;;  %v7534_v18 = vpop.f32.mrb[120].mxu0  ;;  %v1925_v13 = vmax.bf16 %v8602_v33, %v1861_v16 }
 0x29b   : > { %8614 = vst [vmem:[#allocation38_spill] sm:$0xff] %v7534_v18  ;;  %v1480_v39 = vpop.f32.mrb[57].mxu1  ;;  %v7537_v29 = vpop.f32.mrb[121].mxu0 }
 0x29c   : > { %8615 = vst [vmem:[#allocation39_spill] sm:$0xff] %v7537_v29  ;;  %v1482_v19 = vpop.f32.mrb[58].mxu1  ;;  %v7542_v53 = vpop.f32.mrb[122].mxu0  ;;  %2866 = vmatprep.mubr.bf16.mxu1 %v1925_v13  ;;  %3252 = vmatprep.mubr.bf16.mxu0 %v1925_v13  ;;  %v8617_v29 = vpack.c.bf16 %v7320_v11, %v7308_v63  ;;  %v8618_v63 = vpack.c.bf16 %v7313_v4, %v7306_v60 }
 0x29d   : > { %8616 = vst [vmem:[#allocation40_spill] sm:$0xff] %v7542_v53  ;;  %v1746_v15 = vpack.c.bf16 %v1482_v19, %v1478_v8  ;;  %v1484_v61 = vpop.f32.mrb[59].mxu1  ;;  %v7546_v0 = vpop.f32.mrb[123].mxu0  ;;  %2867 = vmatmul.mubr.bf16.gmra.mrb[116].mxu1 %v1924_v22  ;;  %3253 = vmatmul.mubr.bf16.gmra.mrb[180].mxu0 %v1924_v22  ;;  %v1778_v19 = vcombine.high %v7297_v57, %v7297_v57 }
 0x29e   : > { %v1747_v16 = vpack.c.bf16 %v1484_v61, %v1480_v39  ;;  %v7561_v22 = vrot.slane %v1802_v42, %v7221_v3  ;;  %v8620_v60 = vpack.c.bf16 %v7332_v27, %v7326_v17  ;;  %v8622_v17 = vpack.c.bf16 %v7348_v51, %v7342_v41 }
 0x29f   : > { %v1864_v7 = vadd.bf16 %v7311_v1, %v1746_v15  ;;  %v1795_v42 = vpack.i.b16 %v1778_v19, %v1778_v19  ;;  %v8624_v41 = vpack.c.bf16 %v7364_v26, %v7358_v14  ;;  %v8626_v14 = vpack.c.bf16 %v7380_v62, %v7374_v45 }
 0x2a0   : > { %v1865_v54 = vadd.bf16 %v7316_v5, %v1747_v16  ;;  %v8628_v45 = vpack.c.bf16 %v7396_v48, %v7390_v32  ;;  %v8630_v32 = vpack.c.bf16 %v7412_v47, %v7406_v24  ;;  %v8632_v24 = vpack.c.bf16 %v7428_v10, %v7422_v50 }
 0x2a1   : > { %v1928_v61 = vmax.bf16 %v8602_v33, %v1864_v7  ;;  %v8634_v50 = vpack.c.bf16 %v7444_v6, %v7438_v30  ;;  %v8637_v6 = vld [vmem:[#allocation25_spill] sm:$0xff] }
 0x2a2   : > { %v1488_v49 = vpop.f32.mrb[60].mxu1  ;;  %v7552_v13 = vpop.f32.mrb[124].mxu0  ;;  %v1929_v8 = vmax.bf16 %v8602_v33, %v1865_v54  ;;  %v7579_v54 = vrot.slane %v1795_v42, %v7221_v3 }
 0x2a3   : > { %v1490_v36 = vpop.f32.mrb[61].mxu1  ;;  %v7557_v18 = vpop.f32.mrb[125].mxu0 }
 0x2a4   : > { %v1492_v39 = vpop.f32.mrb[62].mxu1  ;;  %v7563_v21 = vpop.f32.mrb[126].mxu0  ;;  %2876 = vmatprep.mubr.bf16.mxu1 %v1929_v8  ;;  %3262 = vmatprep.mubr.bf16.mxu0 %v1929_v8  ;;  %v1814_v4 = vadd.bf16 %v7579_v54, %v8620_v60  ;;  %v1818_v27 = vadd.bf16 %v7579_v54, %v8622_v17  ;;  %v1822_v51 = vadd.bf16 %v7579_v54, %v8624_v41 }
 0x2a5   : > { %v1750_v15 = vpack.c.bf16 %v1492_v39, %v1488_v49  ;;  %v1494_v16 = vpop.f32.mrb[63].mxu1  ;;  %v7567_v9 = vpop.f32.mrb[127].mxu0  ;;  %2877 = vmatmul.mubr.bf16.gmra.mrb[120].mxu1 %v1928_v61  ;;  %3263 = vmatmul.mubr.bf16.gmra.mrb[184].mxu0 %v1928_v61  ;;  %v1811_v49 = vadd.bf16 %v7561_v22, %v8617_v29  ;;  %v1826_v26 = vadd.bf16 %v7579_v54, %v8626_v14 }
 0x2a6   : > { %v1751_v57 = vpack.c.bf16 %v1494_v16, %v1490_v36  ;;  %v1753_v7 = vpack.c.bf16 %v7567_v9, %v7557_v18  ;;  %v6311_v16 = vld [vmem:[#allocation7 + $0x10] ss:$8 sps:$4 sm:$0xff]   ;;  %v1878_v42 = vmax.bf16 %v8602_v33, %v1814_v4  ;;  %v6331_v4 = vld [vmem:[#allocation7 + $0x74] ss:$8 sps:$4 sm:$0xff]   ;;  %v1830_v62 = vadd.bf16 %v7579_v54, %v8628_v45  ;;  %v8647_v45 = vld [vmem:[#allocation26_spill] sm:$0xff] }
 0x2a7   : > { %v1868_v53 = vadd.bf16 %v7311_v1, %v1750_v15  ;;  %v1875_v19 = vmax.bf16 %v8602_v33, %v1811_v49  ;;  %v1810_v1 = vadd.bf16 %v7579_v54, %v8618_v63  ;;  %v6313_v15 = vld [vmem:[#allocation7 + $0x14] ss:$8 sps:$4 sm:$0xff]   ;;  %v6314_v49 = vld [vmem:[#allocation7 + $0x20] ss:$8 sps:$4 sm:$0xff]   ;;  %v1882_v63 = vmax.bf16 %v8602_v33, %v1818_v27 }
 0x2a8   : > { %v1869_v8 = vadd.bf16 %v7316_v5, %v1751_v57  ;;  %v8619_v5 = vpack.c.bf16 %v7336_v31, %v7330_v23  ;;  %v8621_v23 = vpack.c.bf16 %v7352_v55, %v7345_v46  ;;  %v6316_v57 = vld [vmem:[#allocation7 + $0x24] ss:$8 sps:$4 sm:$0xff]   ;;  %v6317_v46 = vld [vmem:[#allocation7 + $0x30] ss:$8 sps:$4 sm:$0xff]   ;;  %v8623_v55 = vpack.c.bf16 %v7368_v34, %v7361_v20  ;;  %v6338_v27 = vld [vmem:[#allocation7 + $0xa0] ss:$8 sps:$4 sm:$0xff]  }
 0x2a9   : > { %v1932_v36 = vmax.bf16 %v8602_v33, %v1868_v53  ;;  %v1874_v29 = vmax.bf16 %v8602_v33, %v1810_v1  ;;  %v6308_v53 = vld [vmem:[#allocation7] ss:$8 sps:$4 sm:$0xff]   ;;  %v6323_v20 = vld [vmem:[#allocation7 + $0x50] ss:$8 sps:$4 sm:$0xff]   ;;  %v8625_v34 = vpack.c.bf16 %v7384_v12, %v7377_v52  ;;  %v8627_v12 = vpack.c.bf16 %v7400_v56, %v7393_v40 }
 0x2aa   : > { %v1933_v39 = vmax.bf16 %v8602_v33, %v1869_v8  ;;  %v1815_v11 = vadd.bf16 %v7561_v22, %v8619_v5  ;;  %v1819_v31 = vadd.bf16 %v7561_v22, %v8621_v23  ;;  %v6320_v1 = vld [vmem:[#allocation7 + $0x40] ss:$8 sps:$4 sm:$0xff]   ;;  %v6329_v52 = vld [vmem:[#allocation7 + $0x70] ss:$8 sps:$4 sm:$0xff]   ;;  %v6334_v23 = vld [vmem:[#allocation7 + $0x84] ss:$8 sps:$4 sm:$0xff]   ;;  %v8629_v56 = vpack.c.bf16 %v7416_v2, %v7409_v38 }
 0x2ab   : > { %v6335_v40 = vld [vmem:[#allocation7 + $0x90] ss:$8 sps:$4 sm:$0xff]   ;;  %v1894_v17 = vmax.bf16 %v8602_v33, %v1830_v62  ;;  %v1834_v48 = vadd.bf16 %v7579_v54, %v8630_v32  ;;  %v8631_v2 = vpack.c.bf16 %v7432_v44, %v7425_v35  ;;  %v1838_v47 = vadd.bf16 %v7579_v54, %v8632_v24  ;;  %v5534_v18 = vld.sshfl [vmem:[%s8517_s6] sm:$0x33 pattern:$0x75316420] }
 0x2ac   : > { %2886 = vmatprep.mubr.bf16.mxu1 %v1933_v39  ;;  %3272 = vmatprep.mubr.bf16.mxu0 %v1933_v39  ;;  %v1879_v61 = vmax.bf16 %v8602_v33, %v1815_v11  ;;  %v1883_v8 = vmax.bf16 %v8602_v33, %v1819_v31  ;;  %v6319_v39 = vld [vmem:[#allocation7 + $0x34] ss:$8 sps:$4 sm:$0xff]   ;;  %v1890_v31 = vmax.bf16 %v8602_v33, %v1826_v26  ;;  %v6341_v38 = vld [vmem:[#allocation7 + $0xb0] ss:$8 sps:$4 sm:$0xff]  }
 0x2ad   : > { %2887 = vmatmul.mubr.bf16.gmra.mrb[124].mxu1 %v1932_v36  ;;  %3273 = vmatmul.mubr.bf16.gmra.mrb[188].mxu0 %v1932_v36  ;;  %v1823_v36 = vadd.bf16 %v7561_v22, %v8623_v55  ;;  %v6325_v11 = vld [vmem:[#allocation7 + $0x54] ss:$8 sps:$4 sm:$0xff]   ;;  %v6347_v35 = vld [vmem:[#allocation7 + $0xd0] ss:$8 sps:$4 sm:$0xff]   ;;  %v8633_v44 = vpack.c.bf16 %v7448_v37, %v7441_v28  ;;  %v1842_v10 = vadd.bf16 %v7579_v54, %v8634_v50 }
 0x2ae   : > { %2929 = vmatprep.mubr.bf16.mxu1 %v1875_v19  ;;  %3315 = vmatprep.mubr.bf16.mxu0 %v1875_v19  ;;  %v6322_v19 = vld [vmem:[#allocation7 + $0x44] ss:$8 sps:$4 sm:$0xff]   ;;  %v6343_v55 = vld [vmem:[#allocation7 + $0xb4] ss:$8 sps:$4 sm:$0xff]   ;;  %v8635_v28 = vpack.c.bf16 %v7464_v43, %v7457_v59  ;;  %v6353_v32 = vld [vmem:[#allocation7 + $0xf0] ss:$8 sps:$4 sm:$0xff]   ;;  %v3549_v9 = vcombine.high %v5534_v18, %v5534_v18 }
 0x2af   : > { %v1887_v5 = vmax.bf16 %v8602_v33, %v1823_v36  ;;  %v1839_v36 = vadd.bf16 %v7561_v22, %v8631_v2  ;;  %v1843_v41 = vadd.bf16 %v7561_v22, %v8633_v44  ;;  %v8640_v26 = vld [vmem:[#allocation24_spill] sm:$0xff]  ;;  %v8659_v44 = vld [vmem:[#allocation34_spill] sm:$0xff] }
 0x2b0   : > { %v1847_v37 = vadd.bf16 %v7561_v22, %v8635_v28  ;;  %v8663_v28 = vld [vmem:[#allocation40_spill] sm:$0xff] }
 0x2b5   : > { %2930 = vmatmul.mubr.bf16.vlgmr.msra.gmra.mrb[64].mxu1 %v1874_v29  ;;  %3316 = vmatmul.mubr.bf16.vlgmr.msra.gmra.mrb[128].mxu0 %v1874_v29  ;;  %v1827_v29 = vadd.bf16 %v7561_v22, %v8625_v34  ;;  %v6350_v34 = vld [vmem:[#allocation7 + $0xe0] ss:$8 sps:$4 sm:$0xff]  }
 0x2b6   : > { %2939 = vmatprep.mubr.bf16.mxu1 %v1879_v61  ;;  %3325 = vmatprep.mubr.bf16.mxu0 %v1879_v61  ;;  %v1886_v61 = vmax.bf16 %v8602_v33, %v1822_v51  ;;  %v6352_v51 = vld [vmem:[#allocation7 + $0xe4] ss:$8 sps:$4 sm:$0xff]  }
 0x2b7   : > { %4107 = vmatpush1.bf16.msra.mxu1 %v6308_v53  ;;  %v6328_v53 = vld [vmem:[#allocation7 + $0x64] ss:$8 sps:$4 sm:$0xff]   ;;  %v1891_v60 = vmax.bf16 %v8602_v33, %v1827_v29  ;;  %v1907_v29 = vmax.bf16 %v8602_v33, %v1843_v41 }
 0x2b8   : > { %4108 = vmatprep.subr.bf16.mxu1 %v6313_v15  ;;  %v6326_v15 = vld [vmem:[#allocation7 + $0x60] ss:$8 sps:$4 sm:$0xff]  }
 0x2bb   : > { %4109 = vmatpush1.bf16.msra.mxu1 %v6311_v16  ;;  %v1831_v16 = vadd.bf16 %v7561_v22, %v8627_v12 }
 0x2bc   : > { %4110 = vmatprep.subr.bf16.mxu1 %v6316_v57  ;;  %v6332_v57 = vld [vmem:[#allocation7 + $0x80] ss:$8 sps:$4 sm:$0xff]  }
 0x2bd   : > { %2940 = vmatmul.mubr.bf16.gmra.mrb[68].mxu1 %v1878_v42  ;;  %3326 = vmatmul.mubr.bf16.gmra.mrb[132].mxu0 %v1878_v42  ;;  %v1895_v42 = vmax.bf16 %v8602_v33, %v1831_v16  ;;  %v8644_v16 = vld [vmem:[#allocation27_spill] sm:$0xff] }
 0x2be   : > { %2949 = vmatprep.mubr.bf16.mxu1 %v1883_v8  ;;  %3335 = vmatprep.mubr.bf16.mxu0 %v1883_v8  ;;  %v1835_v8 = vadd.bf16 %v7561_v22, %v8629_v56  ;;  %v8649_v56 = vld [vmem:[#allocation33_spill] sm:$0xff] }
 0x2bf   : > { %4111 = vmatpush1.bf16.msra.mxu1 %v6314_v49  ;;  %v6337_v49 = vld [vmem:[#allocation7 + $0x94] ss:$8 sps:$4 sm:$0xff]  }
 0x2c0   : > { %4112 = vmatprep.subr.bf16.mxu1 %v6319_v39  ;;  %v6340_v39 = vld [vmem:[#allocation7 + $0xa4] ss:$8 sps:$4 sm:$0xff]  }
 0x2c3   : > { %4113 = vmatpush1.bf16.msra.mxu1 %v6317_v46  ;;  %v1899_v46 = vmax.bf16 %v8602_v33, %v1835_v8  ;;  %v8650_v8 = vld [vmem:[#allocation31_spill] sm:$0xff] }
 0x2c4   : > { %4114 = vmatprep.subr.bf16.mxu1 %v6322_v19  ;;  %v6346_v19 = vld [vmem:[#allocation7 + $0xc4] ss:$8 sps:$4 sm:$0xff]  }
 0x2c5   : > { %2950 = vmatmul.mubr.bf16.gmra.mrb[72].mxu1 %v1882_v63  ;;  %3336 = vmatmul.mubr.bf16.gmra.mrb[136].mxu0 %v1882_v63  ;;  %v1898_v63 = vmax.bf16 %v8602_v33, %v1834_v48  ;;  %v8652_v48 = vld [vmem:[#allocation32_spill] sm:$0xff] }
 0x2c6   : > { %2959 = vmatprep.mubr.bf16.mxu1 %v1887_v5  ;;  %3345 = vmatprep.mubr.bf16.mxu0 %v1887_v5  ;;  %v1903_v5 = vmax.bf16 %v8602_v33, %v1839_v36 }
 0x2c7   : > { %4115 = vmatpush1.bf16.msra.mxu1 %v6320_v1  ;;  %v6344_v1 = vld [vmem:[#allocation7 + $0xc0] ss:$8 sps:$4 sm:$0xff]  }
 0x2c8   : > { %4116 = vmatprep.subr.bf16.mxu1 %v6325_v11  ;;  %v6349_v11 = vld [vmem:[#allocation7 + $0xd4] ss:$8 sps:$4 sm:$0xff]  }
 0x2cb   : > { %4117 = vmatpush1.bf16.msra.mxu1 %v6323_v20  ;;  %v1902_v20 = vmax.bf16 %v8602_v33, %v1838_v47  ;;  %v6358_v47 = vld [vmem:[#allocation7 + $0x104] ss:$8 sps:$4 sm:$0xff]  }
 0x2cc   : > { %4118 = vmatprep.subr.bf16.mxu1 %v6328_v53  ;;  %v1906_v53 = vmax.bf16 %v8602_v33, %v1842_v10 }
 0x2cd   : > { %2960 = vmatmul.mubr.bf16.gmra.mrb[76].mxu1 %v1886_v61  ;;  %3346 = vmatmul.mubr.bf16.gmra.mrb[140].mxu0 %v1886_v61  ;;  %v1911_v61 = vmax.bf16 %v8602_v33, %v1847_v37  ;;  %v8664_v37 = vld [vmem:[#allocation38_spill] sm:$0xff] }
 0x2ce   : > { %2969 = vmatprep.mubr.bf16.mxu1 %v1891_v60  ;;  %3355 = vmatprep.mubr.bf16.mxu0 %v1891_v60  ;;  %v8638_v60 = vld [vmem:[#allocation23_spill] sm:$0xff] }
 0x2cf   : > { %4119 = vmatpush1.bf16.msra.mxu1 %v6326_v15  ;;  %v8636_v15 = vpack.c.bf16 %v7460_v25, %v7454_v58  ;;  %v8643_v25 = vld [vmem:[#allocation29_spill] sm:$0xff] }
 0x2d0   : > { %4120 = vmatprep.subr.bf16.mxu1 %v6331_v4  ;;  %v8639_v4 = vpack.c.bf16 %v8637_v6, %v8638_v60  ;;  %v8666_v6 = vpack.c.bf16 %v7563_v21, %v7552_v13 }
 0x2d1   : > { %v1846_v30 = vadd.bf16 %v7579_v54, %v8636_v15 }
 0x2d2   : > { %v1851_v59 = vadd.bf16 %v7561_v22, %v8639_v4  ;;  %v1870_v60 = vadd.bf16 %v7579_v54, %v8666_v6  ;;  %v6365_v6 = vld [vmem:[#allocation7 + $0x130] ss:$8 sps:$4 sm:$0xff]  }
 0x2d3   : > { %4121 = vmatpush1.bf16.msra.mxu1 %v6329_v52  ;;  %v1910_v43 = vmax.bf16 %v8602_v33, %v1846_v30  ;;  %v8641_v52 = vld [vmem:[#allocation22_spill] sm:$0xff] }
 0x2d4   : > { %4122 = vmatprep.subr.bf16.mxu1 %v6334_v23  ;;  %v1915_v14 = vmax.bf16 %v8602_v33, %v1851_v59  ;;  %v8642_v12 = vpack.c.bf16 %v8640_v26, %v8641_v52  ;;  %v8645_v23 = vpack.c.bf16 %v8643_v25, %v8644_v16  ;;  %v1934_v4 = vmax.bf16 %v8602_v33, %v1870_v60 }
 0x2d5   : > { %2970 = vmatmul.mubr.bf16.gmra.mrb[80].mxu1 %v1890_v31  ;;  %3356 = vmatmul.mubr.bf16.gmra.mrb[144].mxu0 %v1890_v31 }
 0x2d6   : > { %2979 = vmatprep.mubr.bf16.mxu1 %v1895_v42  ;;  %3365 = vmatprep.mubr.bf16.mxu0 %v1895_v42  ;;  %v1850_v58 = vadd.bf16 %v7579_v54, %v8642_v12  ;;  %v1855_v31 = vadd.bf16 %v7561_v22, %v8645_v23 }
 0x2d7   : > { %4123 = vmatpush1.bf16.msra.mxu1 %v6332_v57 }
 0x2d8   : > { %4124 = vmatprep.subr.bf16.mxu1 %v6337_v49  ;;  %v1914_v57 = vmax.bf16 %v8602_v33, %v1850_v58  ;;  %v1919_v42 = vmax.bf16 %v8602_v33, %v1855_v31  ;;  %v8646_v49 = vld [vmem:[#allocation28_spill] sm:$0xff] }
 0x2d9   : > { %v8648_v62 = vpack.c.bf16 %v8646_v49, %v8647_v45 }
 0x2db   : > { %4125 = vmatpush1.bf16.msra.mxu1 %v6335_v40  ;;  %v1854_v40 = vadd.bf16 %v7579_v54, %v8648_v62 }
 0x2dc   : > { %4126 = vmatprep.subr.bf16.mxu1 %v6340_v39  ;;  %v8651_v39 = vpack.c.bf16 %v8649_v56, %v8650_v8 }
 0x2dd   : > { %2980 = vmatmul.mubr.bf16.gmra.mrb[84].mxu1 %v1894_v17  ;;  %3366 = vmatmul.mubr.bf16.gmra.mrb[148].mxu0 %v1894_v17 }
 0x2de   : > { %2989 = vmatprep.mubr.bf16.mxu1 %v1899_v46  ;;  %3375 = vmatprep.mubr.bf16.mxu0 %v1899_v46  ;;  %v1859_v17 = vadd.bf16 %v7561_v22, %v8651_v39  ;;  %v6356_v39 = vld [vmem:[#allocation7 + $0x100] ss:$8 sps:$4 sm:$0xff]  }
 0x2df   : > { %4127 = vmatpush1.bf16.msra.mxu1 %v6338_v27  ;;  %v1918_v27 = vmax.bf16 %v8602_v33, %v1854_v40 }
 0x2e0   : > { %4128 = vmatprep.subr.bf16.mxu1 %v6343_v55  ;;  %v1923_v46 = vmax.bf16 %v8602_v33, %v1859_v17  ;;  %v6355_v55 = vld [vmem:[#allocation7 + $0xf4] ss:$8 sps:$4 sm:$0xff]  }
 0x2e3   : > { %4129 = vmatpush1.bf16.msra.mxu1 %v6341_v38  ;;  %v8653_v38 = vld [vmem:[#allocation30_spill] sm:$0xff] }
 0x2e4   : > { %4130 = vmatprep.subr.bf16.mxu1 %v6346_v19  ;;  %v8654_v2 = vpack.c.bf16 %v8652_v48, %v8653_v38  ;;  %v8655_v19 = vld [vmem:[#allocation37_spill] sm:$0xff] }
 0x2e5   : > { %2990 = vmatmul.mubr.bf16.gmra.mrb[88].mxu1 %v1898_v63  ;;  %3376 = vmatmul.mubr.bf16.gmra.mrb[152].mxu0 %v1898_v63  ;;  %v8656_v63 = vld [vmem:[#allocation35_spill] sm:$0xff] }
 0x2e6   : > { %2999 = vmatprep.mubr.bf16.mxu1 %v1903_v5  ;;  %3385 = vmatprep.mubr.bf16.mxu0 %v1903_v5  ;;  %v1858_v36 = vadd.bf16 %v7579_v54, %v8654_v2 }
 0x2e7   : > { %4131 = vmatpush1.bf16.msra.mxu1 %v6344_v1  ;;  %v8657_v1 = vpack.c.bf16 %v8655_v19, %v8656_v63 }
 0x2e8   : > { %4132 = vmatprep.subr.bf16.mxu1 %v6349_v11  ;;  %v1922_v11 = vmax.bf16 %v8602_v33, %v1858_v36 }
 0x2e9   : > { %v1863_v5 = vadd.bf16 %v7561_v22, %v8657_v1 }
 0x2eb   : > { %4133 = vmatpush1.bf16.msra.mxu1 %v6347_v35  ;;  %v1927_v24 = vmax.bf16 %v8602_v33, %v1863_v5  ;;  %v8658_v35 = vld [vmem:[#allocation36_spill] sm:$0xff] }
 0x2ec   : > { %4134 = vmatprep.subr.bf16.mxu1 %v6352_v51  ;;  %v8660_v41 = vpack.c.bf16 %v8658_v35, %v8659_v44  ;;  %v6359_v5 = vld [vmem:[#allocation7 + $0x110] ss:$8 sps:$4 sm:$0xff]  }
 0x2ed   : > { %3000 = vmatmul.mubr.bf16.gmra.mrb[92].mxu1 %v1902_v20  ;;  %3386 = vmatmul.mubr.bf16.gmra.mrb[156].mxu0 %v1902_v20  ;;  %v8661_v20 = vld [vmem:[#allocation39_spill] sm:$0xff] }
 0x2ee   : > { %3009 = vmatprep.mubr.bf16.mxu1 %v1907_v29  ;;  %3395 = vmatprep.mubr.bf16.mxu0 %v1907_v29  ;;  %v1862_v51 = vadd.bf16 %v7579_v54, %v8660_v41 }
 0x2ef   : > { %4135 = vmatpush1.bf16.msra.mxu1 %v6350_v34  ;;  %v8662_v34 = vpack.c.bf16 %v7546_v0, %v8661_v20  ;;  %v1871_v0 = vadd.bf16 %v7561_v22, %v1753_v7 }
 0x2f0   : > { %4136 = vmatprep.subr.bf16.mxu1 %v6355_v55  ;;  %v1926_v50 = vmax.bf16 %v8602_v33, %v1862_v51  ;;  %v6361_v55 = vld [vmem:[#allocation7 + $0x114] ss:$8 sps:$4 sm:$0xff]   ;;  %v6362_v51 = vld [vmem:[#allocation7 + $0x120] ss:$8 sps:$4 sm:$0xff]  }
 0x2f1   : > { %v1867_v29 = vadd.bf16 %v7561_v22, %v8662_v34  ;;  %v1935_v30 = vmax.bf16 %v8602_v33, %v1871_v0  ;;  %v8667_v22 = vld [vmem:[#allocation21_spill] sm:$0xff] }
 0x2f2   : > { %v7742_v7 = vrot.slane %v5534_v18, %v8667_v22  ;;  %v7745_v59 = vrot.slane %v3549_v9, %v8667_v22 }
 0x2f3   : > { %4137 = vmatpush1.bf16.msra.mxu1 %v6353_v32  ;;  %v1931_v10 = vmax.bf16 %v8602_v33, %v1867_v29 }
 0x2f4   : > { %4299 = vmatprep.subr.bf16.mxu1 %v6358_v47  ;;  %v3567_v13 = vpack.i.b16 %v7742_v7, %v7742_v7  ;;  %v3574_v21 = vpack.i.b16 %v7745_v59, %v7745_v59 }
 0x2f5   : > { %3010 = vmatmul.mubr.bf16.gmra.mrb[96].mxu1 %v1906_v53  ;;  %3396 = vmatmul.mubr.bf16.gmra.mrb[160].mxu0 %v1906_v53  ;;  %v8665_v53 = vpack.c.bf16 %v8663_v28, %v8664_v37 }
 0x2f6   : > { %3019 = vmatprep.mubr.bf16.mxu1 %v1911_v61  ;;  %3405 = vmatprep.mubr.bf16.mxu0 %v1911_v61  ;;  %v7756_v52 = vrot.slane %v3567_v13, %v7221_v3  ;;  %v7761_v25 = vrot.slane %v3574_v21, %v7221_v3 }
 0x2f7   : > { %v1866_v61 = vadd.bf16 %v7579_v54, %v8665_v53 }
 0x2f9   : > { %v1930_v15 = vmax.bf16 %v8602_v33, %v1866_v61 }
 0x2fd   : > { %3020 = vmatmul.mubr.bf16.gmra.mrb[100].mxu1 %v1910_v43  ;;  %3406 = vmatmul.mubr.bf16.gmra.mrb[164].mxu0 %v1910_v43 }
 0x2fe   : > { %3029 = vmatprep.mubr.bf16.mxu1 %v1915_v14  ;;  %3415 = vmatprep.mubr.bf16.mxu0 %v1915_v14 }
 0x305   : > { %3030 = vmatmul.mubr.bf16.gmra.mrb[104].mxu1 %v1914_v57  ;;  %3416 = vmatmul.mubr.bf16.gmra.mrb[168].mxu0 %v1914_v57 }
 0x306   : > { %3039 = vmatprep.mubr.bf16.mxu1 %v1919_v42  ;;  %3425 = vmatprep.mubr.bf16.mxu0 %v1919_v42 }
 0x30d   : > { %3040 = vmatmul.mubr.bf16.gmra.mrb[108].mxu1 %v1918_v27  ;;  %3426 = vmatmul.mubr.bf16.gmra.mrb[172].mxu0 %v1918_v27 }
 0x30e   : > { %3049 = vmatprep.mubr.bf16.mxu1 %v1923_v46  ;;  %3435 = vmatprep.mubr.bf16.mxu0 %v1923_v46 }
 0x315   : > { %3050 = vmatmul.mubr.bf16.gmra.mrb[112].mxu1 %v1922_v11  ;;  %3436 = vmatmul.mubr.bf16.gmra.mrb[176].mxu0 %v1922_v11 }
 0x316   : > { %3059 = vmatprep.mubr.bf16.mxu1 %v1927_v24  ;;  %3445 = vmatprep.mubr.bf16.mxu0 %v1927_v24  ;;  %v6364_v24 = vld [vmem:[#allocation7 + $0x124] ss:$8 sps:$4 sm:$0xff]  }
 0x31d   : > { %3060 = vmatmul.mubr.bf16.gmra.mrb[116].mxu1 %v1926_v50  ;;  %3446 = vmatmul.mubr.bf16.gmra.mrb[180].mxu0 %v1926_v50  ;;  %v6367_v50 = vld [vmem:[#allocation7 + $0x134] ss:$8 sps:$4 sm:$0xff]  }
 0x31e   : > { %3069 = vmatprep.mubr.bf16.mxu1 %v1931_v10  ;;  %3455 = vmatprep.mubr.bf16.mxu0 %v1931_v10 }
 0x325   : > { %3070 = vmatmul.mubr.bf16.gmra.mrb[120].mxu1 %v1930_v15  ;;  %3456 = vmatmul.mubr.bf16.gmra.mrb[184].mxu0 %v1930_v15 }
 0x326   : > { %3079 = vmatprep.mubr.bf16.mxu1 %v1935_v30  ;;  %3465 = vmatprep.mubr.bf16.mxu0 %v1935_v30 }
 0x32d   : > { %3080 = vmatmul.mubr.bf16.gmra.mrb[124].mxu1 %v1934_v4  ;;  %3466 = vmatmul.mubr.bf16.gmra.mrb[188].mxu0 %v1934_v4  ;;  %v6370_v4 = vld [vmem:[#allocation7 + $0x144] ss:$8 sps:$4 sm:$0xff]  }
 0x388   : > { %v2931_v54 = vpop.f32.mrb[64].mxu1  ;;  %v7751_v43 = vpop.f32.mrb[128].mxu0 }
 0x389   : > { %v2933_v14 = vpop.f32.mrb[65].mxu1  ;;  %v7753_v26 = vpop.f32.mrb[129].mxu0 }
 0x38a   : > { %v2935_v12 = vpop.f32.mrb[66].mxu1  ;;  %v7758_v58 = vpop.f32.mrb[130].mxu0 }
 0x38b   : > { %v3476_v16 = vpack.c.bf16 %v2935_v12, %v2931_v54  ;;  %v2937_v31 = vpop.f32.mrb[67].mxu1  ;;  %v7765_v57 = vpop.f32.mrb[131].mxu0  ;;  %v6368_v54 = vld [vmem:[#allocation7 + $0x140] ss:$8 sps:$4 sm:$0xff]  }
 0x38c   : > { %v3477_v42 = vpack.c.bf16 %v2937_v31, %v2933_v14  ;;  %v6373_v31 = vld [vmem:[#allocation7 + $0x154] ss:$8 sps:$4 sm:$0xff]  }
 0x38d   : > { %v3594_v45 = vadd.bf16 %v7756_v52, %v3476_v16 }
 0x38e   : > { %v3595_v62 = vadd.bf16 %v7761_v25, %v3477_v42 }
 0x38f   : > { %v3658_v17 = vmax.bf16 %v8602_v33, %v3594_v45 }
 0x390   : > { %v2941_v40 = vpop.f32.mrb[68].mxu1  ;;  %v7771_v56 = vpop.f32.mrb[132].mxu0  ;;  %v3659_v8 = vmax.bf16 %v8602_v33, %v3595_v62 }
 0x391   : > { %v2943_v27 = vpop.f32.mrb[69].mxu1  ;;  %v7775_v46 = vpop.f32.mrb[133].mxu0 }
 0x392   : > { %v2945_v32 = vpop.f32.mrb[70].mxu1  ;;  %v7777_v48 = vpop.f32.mrb[134].mxu0  ;;  %4138 = vmatprep.mubr.bf16.mxu1 %v3659_v8 }
 0x393   : > { %v3480_v38 = vpack.c.bf16 %v2945_v32, %v2941_v40  ;;  %v2947_v36 = vpop.f32.mrb[71].mxu1  ;;  %v7781_v19 = vpop.f32.mrb[135].mxu0  ;;  %4139 = vmatmul.mubr.bf16.vlgmr.msra.gmra.mrb[128].mxu1 %v3658_v17 }
 0x394   : > { %v3481_v63 = vpack.c.bf16 %v2947_v36, %v2943_v27  ;;  %4300 = vmatpush1.bf16.msra.mxu1 %v6356_v39 }
 0x395   : > { %v3598_v11 = vadd.bf16 %v7756_v52, %v3480_v38  ;;  %4301 = vmatprep.subr.bf16.mxu1 %v6361_v55  ;;  %v6371_v55 = vld [vmem:[#allocation7 + $0x150] ss:$8 sps:$4 sm:$0xff]   ;;  %v6376_v38 = vld [vmem:[#allocation7 + $0x164] ss:$8 sps:$4 sm:$0xff]  }
 0x396   : > { %v3599_v47 = vadd.bf16 %v7761_v25, %v3481_v63 }
 0x397   : > { %v3662_v29 = vmax.bf16 %v8602_v33, %v3598_v11 }
 0x398   : > { %v2951_v35 = vpop.f32.mrb[72].mxu1  ;;  %v7787_v44 = vpop.f32.mrb[136].mxu0  ;;  %v3663_v41 = vmax.bf16 %v8602_v33, %v3599_v47  ;;  %4302 = vmatpush1.bf16.msra.mxu1 %v6359_v5 }
 0x399   : > { %v2953_v20 = vpop.f32.mrb[73].mxu1  ;;  %v7790_v34 = vpop.f32.mrb[137].mxu0  ;;  %4303 = vmatprep.subr.bf16.mxu1 %v6364_v24  ;;  %v6374_v24 = vld [vmem:[#allocation7 + $0x160] ss:$8 sps:$4 sm:$0xff]  }
 0x39a   : > { %v2955_v10 = vpop.f32.mrb[74].mxu1  ;;  %v7793_v28 = vpop.f32.mrb[138].mxu0  ;;  %4148 = vmatprep.mubr.bf16.mxu1 %v3663_v41 }
 0x39b   : > { %v3484_v37 = vpack.c.bf16 %v2955_v10, %v2951_v35  ;;  %v2957_v61 = vpop.f32.mrb[75].mxu1  ;;  %v7797_v0 = vpop.f32.mrb[139].mxu0  ;;  %4149 = vmatmul.mubr.bf16.gmra.mrb[132].mxu1 %v3662_v29  ;;  %v6398_v10 = vld [vmem:[#allocation7 + $0x1e0] ss:$8 sps:$4 sm:$0xff]  }
 0x39c   : > { %v3485_v15 = vpack.c.bf16 %v2957_v61, %v2953_v20  ;;  %4304 = vmatpush1.bf16.msra.mxu1 %v6362_v51  ;;  %v6379_v51 = vld [vmem:[#allocation7 + $0x174] ss:$8 sps:$4 sm:$0xff]  }
 0x39d   : > { %v3602_v60 = vadd.bf16 %v7756_v52, %v3484_v37  ;;  %4305 = vmatprep.subr.bf16.mxu1 %v6367_v50 }
 0x39e   : > { %v3603_v18 = vadd.bf16 %v7761_v25, %v3485_v15 }
 0x39f   : > { %v3666_v16 = vmax.bf16 %v8602_v33, %v3602_v60  ;;  %v6377_v60 = vld [vmem:[#allocation7 + $0x170] ss:$8 sps:$4 sm:$0xff]  }
 0x3a0   : > { %v2961_v9 = vpop.f32.mrb[76].mxu1  ;;  %v7803_v13 = vpop.f32.mrb[140].mxu0  ;;  %v3667_v21 = vmax.bf16 %v8602_v33, %v3603_v18  ;;  %4306 = vmatpush1.bf16.msra.mxu1 %v6365_v6  ;;  %v6382_v18 = vld [vmem:[#allocation7 + $0x184] ss:$8 sps:$4 sm:$0xff]  }
 0x3a1   : > { %v2963_v14 = vpop.f32.mrb[77].mxu1  ;;  %v7806_v12 = vpop.f32.mrb[141].mxu0  ;;  %4307 = vmatprep.subr.bf16.mxu1 %v6370_v4 }
 0x3a2   : > { %v2965_v42 = vpop.f32.mrb[78].mxu1  ;;  %v7809_v45 = vpop.f32.mrb[142].mxu0  ;;  %4158 = vmatprep.mubr.bf16.mxu1 %v3667_v21 }
 0x3a3   : > { %v3488_v62 = vpack.c.bf16 %v2965_v42, %v2961_v9  ;;  %v2967_v8 = vpop.f32.mrb[79].mxu1  ;;  %v7813_v39 = vpop.f32.mrb[143].mxu0  ;;  %4159 = vmatmul.mubr.bf16.gmra.mrb[136].mxu1 %v3666_v16  ;;  %v6380_v16 = vld [vmem:[#allocation7 + $0x180] ss:$8 sps:$4 sm:$0xff]  }
 0x3a4   : > { %v3489_v17 = vpack.c.bf16 %v2967_v8, %v2963_v14  ;;  %4308 = vmatpush1.bf16.msra.mxu1 %v6368_v54  ;;  %v6385_v8 = vld [vmem:[#allocation7 + $0x194] ss:$8 sps:$4 sm:$0xff]  }
 0x3a5   : > { %v3606_v32 = vadd.bf16 %v7756_v52, %v3488_v62  ;;  %4309 = vmatprep.subr.bf16.mxu1 %v6373_v31 }
 0x3a6   : > { %v3607_v36 = vadd.bf16 %v7761_v25, %v3489_v17 }
 0x3a7   : > { %v3670_v41 = vmax.bf16 %v8602_v33, %v3606_v32 }
 0x3a8   : > { %v2971_v63 = vpop.f32.mrb[80].mxu1  ;;  %v7819_v5 = vpop.f32.mrb[144].mxu0  ;;  %v3671_v11 = vmax.bf16 %v8602_v33, %v3607_v36  ;;  %4310 = vmatpush1.bf16.msra.mxu1 %v6371_v55 }
 0x3a9   : > { %v2973_v47 = vpop.f32.mrb[81].mxu1  ;;  %v7822_v35 = vpop.f32.mrb[145].mxu0  ;;  %4311 = vmatprep.subr.bf16.mxu1 %v6376_v38 }
 0x3aa   : > { %v2975_v20 = vpop.f32.mrb[82].mxu1  ;;  %v7825_v29 = vpop.f32.mrb[146].mxu0  ;;  %4168 = vmatprep.mubr.bf16.mxu1 %v3671_v11 }
 0x3ab   : > { %v3492_v50 = vpack.c.bf16 %v2975_v20, %v2971_v63  ;;  %v2977_v37 = vpop.f32.mrb[83].mxu1  ;;  %v7829_v61 = vpop.f32.mrb[147].mxu0  ;;  %4169 = vmatmul.mubr.bf16.gmra.mrb[140].mxu1 %v3670_v41 }
 0x3ac   : > { %v3493_v15 = vpack.c.bf16 %v2977_v37, %v2973_v47  ;;  %4312 = vmatpush1.bf16.msra.mxu1 %v6374_v24  ;;  %v6383_v47 = vld [vmem:[#allocation7 + $0x190] ss:$8 sps:$4 sm:$0xff]   ;;  %v6400_v24 = vld [vmem:[#allocation7 + $0x1e4] ss:$8 sps:$4 sm:$0xff]  }
 0x3ad   : > { %v3610_v4 = vadd.bf16 %v7756_v52, %v3492_v50  ;;  %4313 = vmatprep.subr.bf16.mxu1 %v6379_v51  ;;  %v6388_v51 = vld [vmem:[#allocation7 + $0x1a4] ss:$8 sps:$4 sm:$0xff]  }
 0x3ae   : > { %v3611_v9 = vadd.bf16 %v7761_v25, %v3493_v15 }
 0x3af   : > { %v3674_v62 = vmax.bf16 %v8602_v33, %v3610_v4 }
 0x3b0   : > { %v2981_v21 = vpop.f32.mrb[84].mxu1  ;;  %v7835_v54 = vpop.f32.mrb[148].mxu0  ;;  %v3675_v14 = vmax.bf16 %v8602_v33, %v3611_v9  ;;  %4314 = vmatpush1.bf16.msra.mxu1 %v6377_v60  ;;  %v6386_v60 = vld [vmem:[#allocation7 + $0x1a0] ss:$8 sps:$4 sm:$0xff]  }
 0x3b1   : > { %v2983_v31 = vpop.f32.mrb[85].mxu1  ;;  %v7838_v42 = vpop.f32.mrb[149].mxu0  ;;  %4315 = vmatprep.subr.bf16.mxu1 %v6382_v18 }
 0x3b2   : > { %v2985_v17 = vpop.f32.mrb[86].mxu1  ;;  %v7841_v55 = vpop.f32.mrb[150].mxu0  ;;  %4178 = vmatprep.mubr.bf16.mxu1 %v3675_v14 }
 0x3b3   : > { %v3496_v32 = vpack.c.bf16 %v2985_v17, %v2981_v21  ;;  %v2987_v36 = vpop.f32.mrb[87].mxu1  ;;  %v7845_v63 = vpop.f32.mrb[151].mxu0  ;;  %4179 = vmatmul.mubr.bf16.gmra.mrb[144].mxu1 %v3674_v62  ;;  %v6391_v21 = vld [vmem:[#allocation7 + $0x1b4] ss:$8 sps:$4 sm:$0xff]  }
 0x3b4   : > { %v3497_v11 = vpack.c.bf16 %v2987_v36, %v2983_v31  ;;  %4316 = vmatpush1.bf16.msra.mxu1 %v6380_v16 }
 0x3b5   : > { %v3614_v41 = vadd.bf16 %v7756_v52, %v3496_v32  ;;  %4317 = vmatprep.subr.bf16.mxu1 %v6385_v8 }
 0x3b6   : > { %v3615_v20 = vadd.bf16 %v7761_v25, %v3497_v11  ;;  %v6389_v11 = vld [vmem:[#allocation7 + $0x1b0] ss:$8 sps:$4 sm:$0xff]  }
 0x3b7   : > { %v3678_v9 = vmax.bf16 %v8602_v33, %v3614_v41  ;;  %v6394_v41 = vld [vmem:[#allocation7 + $0x1c4] ss:$8 sps:$4 sm:$0xff]  }
 0x3b8   : > { %v2991_v50 = vpop.f32.mrb[88].mxu1  ;;  %v7851_v37 = vpop.f32.mrb[152].mxu0  ;;  %v3679_v15 = vmax.bf16 %v8602_v33, %v3615_v20  ;;  %4318 = vmatpush1.bf16.msra.mxu1 %v6383_v47 }
 0x3b9   : > { %v2993_v4 = vpop.f32.mrb[89].mxu1  ;;  %v7854_v18 = vpop.f32.mrb[153].mxu0  ;;  %4319 = vmatprep.subr.bf16.mxu1 %v6388_v51 }
 0x3ba   : > { %v2995_v14 = vpop.f32.mrb[90].mxu1  ;;  %v7857_v16 = vpop.f32.mrb[154].mxu0  ;;  %4188 = vmatprep.mubr.bf16.mxu1 %v3679_v15 }
 0x3bb   : > { %v3500_v31 = vpack.c.bf16 %v2995_v14, %v2991_v50  ;;  %v2997_v8 = vpop.f32.mrb[91].mxu1  ;;  %v7861_v17 = vpop.f32.mrb[155].mxu0  ;;  %4189 = vmatmul.mubr.bf16.gmra.mrb[148].mxu1 %v3678_v9  ;;  %v6392_v14 = vld [vmem:[#allocation7 + $0x1c0] ss:$8 sps:$4 sm:$0xff]  }
 0x3bc   : > { %v3501_v32 = vpack.c.bf16 %v2997_v8, %v2993_v4  ;;  %4320 = vmatpush1.bf16.msra.mxu1 %v6386_v60  ;;  %v6397_v60 = vld [vmem:[#allocation7 + $0x1d4] ss:$8 sps:$4 sm:$0xff]  }
 0x3bd   : > { %v3618_v47 = vadd.bf16 %v7756_v52, %v3500_v31  ;;  %4321 = vmatprep.subr.bf16.mxu1 %v6391_v21 }
 0x3be   : > { %v3619_v51 = vadd.bf16 %v7761_v25, %v3501_v32 }
 0x3bf   : > { %v3682_v8 = vmax.bf16 %v8602_v33, %v3618_v47  ;;  %v6395_v47 = vld [vmem:[#allocation7 + $0x1d0] ss:$8 sps:$4 sm:$0xff]  }
 0x3c0   : > { %v3001_v20 = vpop.f32.mrb[92].mxu1  ;;  %v7867_v50 = vpop.f32.mrb[156].mxu0  ;;  %v3683_v15 = vmax.bf16 %v8602_v33, %v3619_v51  ;;  %4322 = vmatpush1.bf16.msra.mxu1 %v6389_v11 }
 0x3c1   : > { %v3003_v9 = vpop.f32.mrb[93].mxu1  ;;  %v7870_v4 = vpop.f32.mrb[157].mxu0  ;;  %4323 = vmatprep.subr.bf16.mxu1 %v6394_v41 }
 0x3c2   : > { %v3005_v62 = vpop.f32.mrb[94].mxu1  ;;  %v7873_v31 = vpop.f32.mrb[158].mxu0  ;;  %4198 = vmatprep.mubr.bf16.mxu1 %v3683_v15 }
 0x3c3   : > { %v3504_v21 = vpack.c.bf16 %v3005_v62, %v3001_v20  ;;  %v3007_v36 = vpop.f32.mrb[95].mxu1  ;;  %v7877_v38 = vpop.f32.mrb[159].mxu0  ;;  %4199 = vmatmul.mubr.bf16.gmra.mrb[152].mxu1 %v3682_v8 }
 0x3c4   : > { %v3505_v11 = vpack.c.bf16 %v3007_v36, %v3003_v9  ;;  %4324 = vmatpush1.bf16.msra.mxu1 %v6392_v14  ;;  %v6403_v14 = vld [vmem:[#allocation7 + $0x1f4] ss:$8 sps:$4 sm:$0xff]  }
 0x3c5   : > { %v3622_v41 = vadd.bf16 %v7756_v52, %v3504_v21  ;;  %4325 = vmatprep.subr.bf16.mxu1 %v6397_v60 }
 0x3c6   : > { %v3623_v15 = vadd.bf16 %v7761_v25, %v3505_v11 }
 0x3c7   : > { %v3686_v9 = vmax.bf16 %v8602_v33, %v3622_v41  ;;  %v6401_v41 = vld [vmem:[#allocation7 + $0x1f0] ss:$8 sps:$4 sm:$0xff]  }
 0x3c8   : > { %v3011_v62 = vpop.f32.mrb[96].mxu1  ;;  %v7883_v20 = vpop.f32.mrb[160].mxu0  ;;  %v3687_v32 = vmax.bf16 %v8602_v33, %v3623_v15  ;;  %4326 = vmatpush1.bf16.msra.mxu1 %v6395_v47 }
 0x3c9   : > { %v3013_v8 = vpop.f32.mrb[97].mxu1  ;;  %v7886_v36 = vpop.f32.mrb[161].mxu0  ;;  %4327 = vmatprep.subr.bf16.mxu1 %v6400_v24 }
 0x3ca   : > { %v3015_v51 = vpop.f32.mrb[98].mxu1  ;;  %v7889_v21 = vpop.f32.mrb[162].mxu0  ;;  %4208 = vmatprep.mubr.bf16.mxu1 %v3687_v32 }
 0x3cb   : > { %v3508_v60 = vpack.c.bf16 %v3015_v51, %v3011_v62  ;;  %v3017_v6 = vpop.f32.mrb[99].mxu1  ;;  %v7893_v40 = vpop.f32.mrb[163].mxu0  ;;  %4209 = vmatmul.mubr.bf16.gmra.mrb[156].mxu1 %v3686_v9 }
 0x3cc   : > { %v3509_v47 = vpack.c.bf16 %v3017_v6, %v3013_v8  ;;  %4328 = vmatpush1.bf16.msra.mxu1 %v6398_v10 }
 0x3cd   : > { %v3626_v24 = vadd.bf16 %v7756_v52, %v3508_v60  ;;  %4329 = vmatprep.subr.bf16.mxu1 %v6403_v14 }
 0x3ce   : > { %v3627_v27 = vadd.bf16 %v7761_v25, %v3509_v47 }
 0x3cf   : > { %v3690_v6 = vmax.bf16 %v8602_v33, %v3626_v24 }
 0x3d0   : > { %v3021_v32 = vpop.f32.mrb[100].mxu1  ;;  %v7899_v51 = vpop.f32.mrb[164].mxu0  ;;  %v3691_v62 = vmax.bf16 %v8602_v33, %v3627_v27  ;;  %4330 = vmatpush1.bf16.msra.mxu1 %v6401_v41 }
 0x3d1   : > { %v3023_v11 = vpop.f32.mrb[101].mxu1  ;;  %v7902_v53 = vpop.f32.mrb[165].mxu0 }
 0x3d2   : > { %v3025_v8 = vpop.f32.mrb[102].mxu1  ;;  %v7905_v9 = vpop.f32.mrb[166].mxu0  ;;  %4218 = vmatprep.mubr.bf16.mxu1 %v3691_v62 }
 0x3d3   : > { %v3512_v10 = vpack.c.bf16 %v3025_v8, %v3021_v32  ;;  %v3027_v60 = vpop.f32.mrb[103].mxu1  ;;  %v7909_v47 = vpop.f32.mrb[167].mxu0  ;;  %4219 = vmatmul.mubr.bf16.gmra.mrb[160].mxu1 %v3690_v6 }
 0x3d4   : > { %v3513_v15 = vpack.c.bf16 %v3027_v60, %v3023_v11 }
 0x3d5   : > { %v3630_v41 = vadd.bf16 %v7756_v52, %v3512_v10 }
 0x3d6   : > { %v3631_v24 = vadd.bf16 %v7761_v25, %v3513_v15 }
 0x3d7   : > { %v3694_v14 = vmax.bf16 %v8602_v33, %v3630_v41 }
 0x3d8   : > { %v3031_v30 = vpop.f32.mrb[104].mxu1  ;;  %v7915_v2 = vpop.f32.mrb[168].mxu0  ;;  %v3695_v32 = vmax.bf16 %v8602_v33, %v3631_v24 }
 0x3d9   : > { %8668 = vst [vmem:[#allocation25_spill] sm:$0xff] %v7915_v2  ;;  %v3033_v62 = vpop.f32.mrb[105].mxu1  ;;  %v7918_v8 = vpop.f32.mrb[169].mxu0 }
 0x3da   : > { %8669 = vst [vmem:[#allocation23_spill] sm:$0xff] %v7918_v8  ;;  %v3035_v1 = vpop.f32.mrb[106].mxu1  ;;  %v7921_v6 = vpop.f32.mrb[170].mxu0  ;;  %4228 = vmatprep.mubr.bf16.mxu1 %v3695_v32 }
 0x3db   : > { %8670 = vst [vmem:[#allocation24_spill] sm:$0xff] %v7921_v6  ;;  %v3516_v11 = vpack.c.bf16 %v3035_v1, %v3031_v30  ;;  %v3037_v60 = vpop.f32.mrb[107].mxu1  ;;  %v7925_v15 = vpop.f32.mrb[171].mxu0  ;;  %4229 = vmatmul.mubr.bf16.gmra.mrb[164].mxu1 %v3694_v14 }
 0x3dc   : > { %8671 = vst [vmem:[#allocation22_spill] sm:$0xff] %v7925_v15  ;;  %v3517_v27 = vpack.c.bf16 %v3037_v60, %v3033_v62 }
 0x3dd   : > { %v3634_v23 = vadd.bf16 %v7756_v52, %v3516_v11 }
 0x3de   : > { %v3635_v41 = vadd.bf16 %v7761_v25, %v3517_v27 }
 0x3df   : > { %v3698_v10 = vmax.bf16 %v8602_v33, %v3634_v23 }
 0x3e0   : > { %v3041_v49 = vpop.f32.mrb[108].mxu1  ;;  %v7931_v22 = vpop.f32.mrb[172].mxu0  ;;  %v3699_v1 = vmax.bf16 %v8602_v33, %v3635_v41 }
 0x3e1   : > { %8672 = vst [vmem:[#allocation29_spill] sm:$0xff] %v7931_v22  ;;  %v3043_v30 = vpop.f32.mrb[109].mxu1  ;;  %v7934_v32 = vpop.f32.mrb[173].mxu0 }
 0x3e2   : > { %8673 = vst [vmem:[#allocation27_spill] sm:$0xff] %v7934_v32  ;;  %v3045_v2 = vpop.f32.mrb[110].mxu1  ;;  %v7937_v14 = vpop.f32.mrb[174].mxu0  ;;  %4238 = vmatprep.mubr.bf16.mxu1 %v3699_v1 }
 0x3e3   : > { %8674 = vst [vmem:[#allocation28_spill] sm:$0xff] %v7937_v14  ;;  %v3520_v62 = vpack.c.bf16 %v3045_v2, %v3041_v49  ;;  %v3047_v60 = vpop.f32.mrb[111].mxu1  ;;  %v7941_v27 = vpop.f32.mrb[175].mxu0  ;;  %4239 = vmatmul.mubr.bf16.gmra.mrb[168].mxu1 %v3698_v10 }
 0x3e4   : > { %8675 = vst [vmem:[#allocation26_spill] sm:$0xff] %v7941_v27  ;;  %v3521_v24 = vpack.c.bf16 %v3047_v60, %v3043_v30 }
 0x3e5   : > { %v3638_v6 = vadd.bf16 %v7756_v52, %v3520_v62 }
 0x3e6   : > { %v3639_v23 = vadd.bf16 %v7761_v25, %v3521_v24 }
 0x3e7   : > { %v3702_v11 = vmax.bf16 %v8602_v33, %v3638_v6  ;;  %v6404_v6 = vld [vmem:[%s8520_s9 + $0x40] sm:$0xff]  }
 0x3e8   : > { %v3051_v8 = vpop.f32.mrb[112].mxu1  ;;  %v7947_v15 = vpop.f32.mrb[176].mxu0  ;;  %v3703_v49 = vmax.bf16 %v8602_v33, %v3639_v23  ;;  %5627 = vmatprep.subr.bf16.mxu0 %v6404_v6 }
 0x3e9   : > { %8676 = vst [vmem:[#allocation33_spill] sm:$0xff] %v7947_v15  ;;  %v3053_v2 = vpop.f32.mrb[113].mxu1  ;;  %v7950_v1 = vpop.f32.mrb[177].mxu0 }
 0x3ea   : > { %8677 = vst [vmem:[#allocation31_spill] sm:$0xff] %v7950_v1  ;;  %v3055_v22 = vpop.f32.mrb[114].mxu1  ;;  %v7953_v10 = vpop.f32.mrb[178].mxu0  ;;  %4248 = vmatprep.mubr.bf16.mxu1 %v3703_v49  ;;  %v6405_v49 = vld [vmem:[%s8520_s9] sm:$0xff]  }
 0x3eb   : > { %8678 = vst [vmem:[#allocation32_spill] sm:$0xff] %v7953_v10  ;;  %v3524_v30 = vpack.c.bf16 %v3055_v22, %v3051_v8  ;;  %v3057_v60 = vpop.f32.mrb[115].mxu1  ;;  %v7957_v24 = vpop.f32.mrb[179].mxu0  ;;  %4249 = vmatmul.mubr.bf16.gmra.mrb[172].mxu1 %v3702_v11  ;;  %5628 = vmatpush3.bf16.msra.mxu0 %v6405_v49 }
 0x3ec   : > { %8679 = vst [vmem:[#allocation30_spill] sm:$0xff] %v7957_v24  ;;  %v3525_v41 = vpack.c.bf16 %v3057_v60, %v3053_v2 }
 0x3ed   : > { %v3642_v22 = vadd.bf16 %v7756_v52, %v3524_v30 }
 0x3ee   : > { %v3643_v8 = vadd.bf16 %v7761_v25, %v3525_v41 }
 0x3ef   : > { %v3706_v15 = vmax.bf16 %v8602_v33, %v3642_v22 }
 0x3f0   : > { %v3061_v62 = vpop.f32.mrb[116].mxu1  ;;  %v7969_v11 = vpop.f32.mrb[180].mxu0  ;;  %v3707_v2 = vmax.bf16 %v8602_v33, %v3643_v8 }
 0x3f1   : > { %8680 = vst [vmem:[#allocation37_spill] sm:$0xff] %v7969_v11  ;;  %v3063_v60 = vpop.f32.mrb[117].mxu1  ;;  %v7972_v23 = vpop.f32.mrb[181].mxu0 }
 0x3f2   : > { %8681 = vst [vmem:[#allocation35_spill] sm:$0xff] %v7972_v23  ;;  %v3065_v10 = vpop.f32.mrb[118].mxu1  ;;  %v7975_v1 = vpop.f32.mrb[182].mxu0  ;;  %4258 = vmatprep.mubr.bf16.mxu1 %v3707_v2  ;;  %v8687_v23 = vpack.c.bf16 %v7765_v57, %v7753_v26  ;;  %v6409_v26 = vld [vmem:[%s8520_s9 + $0x10] sm:$0xff]   ;;  %v8688_v57 = vpack.c.bf16 %v7758_v58, %v7751_v43 }
 0x3f3   : > { %8682 = vst [vmem:[#allocation36_spill] sm:$0xff] %v7975_v1  ;;  %v3528_v24 = vpack.c.bf16 %v3065_v10, %v3061_v62  ;;  %v3067_v30 = vpop.f32.mrb[119].mxu1  ;;  %v7979_v6 = vpop.f32.mrb[183].mxu0  ;;  %4259 = vmatmul.mubr.bf16.gmra.mrb[176].mxu1 %v3706_v15  ;;  %v3565_v15 = vcombine.high %v7745_v59, %v7745_v59  ;;  %v6406_v59 = vld [vmem:[%s8520_s9 + $0x48] sm:$0xff]  }
 0x3f4   : > { %v3529_v49 = vpack.c.bf16 %v3067_v30, %v3063_v60  ;;  %5629 = vmatprep.subr.bf16.mxu0 %v6406_v59 }
 0x3f5   : > { %v3646_v14 = vadd.bf16 %v7756_v52, %v3528_v24 }
 0x3f6   : > { %v3647_v22 = vadd.bf16 %v7761_v25, %v3529_v49  ;;  %v3564_v49 = vcombine.high %v7742_v7, %v7742_v7 }
 0x3f7   : > { %v3710_v41 = vmax.bf16 %v8602_v33, %v3646_v14  ;;  %v6407_v14 = vld [vmem:[%s8520_s9 + $0x8] sm:$0xff]  }
 0x3f8   : > { %v3071_v32 = vpop.f32.mrb[120].mxu1  ;;  %v7985_v27 = vpop.f32.mrb[184].mxu0  ;;  %v3711_v10 = vmax.bf16 %v8602_v33, %v3647_v22  ;;  %5630 = vmatpush3.bf16.msra.mxu0 %v6407_v14 }
 0x3f9   : > { %8683 = vst [vmem:[#allocation34_spill] sm:$0xff] %v7985_v27  ;;  %v3073_v62 = vpop.f32.mrb[121].mxu1  ;;  %v7988_v2 = vpop.f32.mrb[185].mxu0 }
 0x3fa   : > { %8684 = vst [vmem:[#allocation39_spill] sm:$0xff] %v7988_v2  ;;  %v3075_v60 = vpop.f32.mrb[122].mxu1  ;;  %v7993_v30 = vpop.f32.mrb[186].mxu0  ;;  %4268 = vmatprep.mubr.bf16.mxu1 %v3711_v10  ;;  %v3588_v10 = vpack.i.b16 %v3565_v15, %v3565_v15 }
 0x3fb   : > { %8685 = vst [vmem:[#allocation40_spill] sm:$0xff] %v7993_v30  ;;  %v3532_v24 = vpack.c.bf16 %v3075_v60, %v3071_v32  ;;  %v3077_v8 = vpop.f32.mrb[123].mxu1  ;;  %v7997_v11 = vpop.f32.mrb[187].mxu0  ;;  %4269 = vmatmul.mubr.bf16.gmra.mrb[180].mxu1 %v3710_v41 }
 0x3fc   : > { %8686 = vst [vmem:[#allocation38_spill] sm:$0xff] %v7997_v11  ;;  %v3533_v22 = vpack.c.bf16 %v3077_v8, %v3073_v62 }
 0x3fd   : > { %v3650_v32 = vadd.bf16 %v7756_v52, %v3532_v24  ;;  %v8018_v24 = vrot.slane %v3588_v10, %v7221_v3 }
 0x3fe   : > { %v3651_v60 = vadd.bf16 %v7761_v25, %v3533_v22 }
 0x3ff   : > { %v3714_v30 = vmax.bf16 %v8602_v33, %v3650_v32  ;;  %v3581_v32 = vpack.i.b16 %v3564_v49, %v3564_v49  ;;  %v8689_v49 = vpack.c.bf16 %v7781_v19, %v7775_v46  ;;  %v6413_v46 = vld [vmem:[%s8520_s9 + $0x20] sm:$0xff]   ;;  %v6414_v19 = vld [vmem:[%s8520_s9 + $0x68] sm:$0xff]  }
 0x400   : > { %v3081_v41 = vpop.f32.mrb[124].mxu1  ;;  %v8009_v8 = vpop.f32.mrb[188].mxu0  ;;  %v3715_v62 = vmax.bf16 %v8602_v33, %v3651_v60 }
 0x401   : > { %v3083_v1 = vpop.f32.mrb[125].mxu1  ;;  %v8014_v27 = vpop.f32.mrb[189].mxu0  ;;  %v8036_v14 = vrot.slane %v3581_v32, %v7221_v3  ;;  %v8690_v32 = vpack.c.bf16 %v7777_v48, %v7771_v56  ;;  %v6417_v48 = vld [vmem:[%s8520_s9 + $0x30] sm:$0xff]  }
 0x402   : > { %v3085_v15 = vpop.f32.mrb[126].mxu1  ;;  %v8020_v22 = vpop.f32.mrb[190].mxu0  ;;  %4278 = vmatprep.mubr.bf16.mxu1 %v3715_v62  ;;  %v3597_v62 = vadd.bf16 %v8018_v24, %v8687_v23 }
 0x403   : > { %v3536_v59 = vpack.c.bf16 %v3085_v15, %v3081_v41  ;;  %v3087_v60 = vpop.f32.mrb[127].mxu1  ;;  %v8024_v2 = vpop.f32.mrb[191].mxu0  ;;  %4279 = vmatmul.mubr.bf16.gmra.mrb[184].mxu1 %v3714_v30  ;;  %v3596_v23 = vadd.bf16 %v8036_v14, %v8688_v57  ;;  %v6419_v57 = vld [vmem:[%s8520_s9 + $0x38] sm:$0xff]  }
 0x404   : > { %v3537_v7 = vpack.c.bf16 %v3087_v60, %v3083_v1  ;;  %v3539_v11 = vpack.c.bf16 %v8024_v2, %v8014_v27  ;;  %v3661_v30 = vmax.bf16 %v8602_v33, %v3597_v62  ;;  %v6411_v60 = vld [vmem:[%s8520_s9 + $0x18] sm:$0xff]   ;;  %v8691_v62 = vpack.c.bf16 %v7797_v0, %v7790_v34  ;;  %v5599_v27 = vld.sshfl [vmem:[%s8519_s8] sm:$0x11 pattern:$0x75316420] }
 0x405   : > { %v3654_v10 = vadd.bf16 %v7756_v52, %v3536_v59  ;;  %v6408_v52 = vld [vmem:[%s8520_s9 + $0x50] sm:$0xff]   ;;  %v3601_v59 = vadd.bf16 %v8018_v24, %v8689_v49  ;;  %v3660_v43 = vmax.bf16 %v8602_v33, %v3596_v23  ;;  %v6418_v34 = vld [vmem:[%s8520_s9 + $0x78] sm:$0xff]   ;;  %v8692_v0 = vpack.c.bf16 %v7793_v28, %v7787_v44 }
 0x406   : > { %v3655_v41 = vadd.bf16 %v7761_v25, %v3537_v7  ;;  %v6410_v25 = vld [vmem:[%s8520_s9 + $0x58] sm:$0xff]   ;;  %5631 = vmatprep.subr.bf16.mxu0 %v6408_v52  ;;  %v6412_v7 = vld [vmem:[%s8520_s9 + $0x60] sm:$0xff]   ;;  %v8694_v44 = vpack.c.bf16 %v7809_v45, %v7803_v13  ;;  %v8697_v13 = vpack.c.bf16 %v7845_v63, %v7838_v42  ;;  %v4533_v2 = vcombine.high %v5599_v27, %v5599_v27 }
 0x407   : > { %v3718_v1 = vmax.bf16 %v8602_v33, %v3654_v10  ;;  %5632 = vmatpush3.bf16.msra.mxu0 %v6409_v26  ;;  %v3665_v58 = vmax.bf16 %v8602_v33, %v3601_v59  ;;  %v3600_v10 = vadd.bf16 %v8036_v14, %v8690_v32  ;;  %v3604_v52 = vadd.bf16 %v8036_v14, %v8692_v0  ;;  %v8711_v0 = vld [vmem:[#allocation25_spill] sm:$0xff] }
 0x408   : > { %v3719_v15 = vmax.bf16 %v8602_v33, %v3655_v41  ;;  %5633 = vmatprep.subr.bf16.mxu0 %v6410_v25  ;;  %v3605_v41 = vadd.bf16 %v8018_v24, %v8691_v62  ;;  %v8693_v26 = vpack.c.bf16 %v7813_v39, %v7806_v12  ;;  %v3608_v28 = vadd.bf16 %v8036_v14, %v8694_v44  ;;  %v8716_v44 = vld [vmem:[#allocation28_spill] sm:$0xff] }
 0x409   : > { %v3668_v23 = vmax.bf16 %v8602_v33, %v3604_v52  ;;  %v8695_v12 = vpack.c.bf16 %v7829_v61, %v7822_v35  ;;  %v3617_v45 = vadd.bf16 %v8018_v24, %v8697_v13 }
 0x40a   : > { %4288 = vmatprep.mubr.bf16.mxu1 %v3719_v15  ;;  %v6415_v15 = vld [vmem:[%s8520_s9 + $0x28] sm:$0xff]   ;;  %v3669_v56 = vmax.bf16 %v8602_v33, %v3605_v41  ;;  %v3609_v25 = vadd.bf16 %v8018_v24, %v8693_v26  ;;  %v3672_v59 = vmax.bf16 %v8602_v33, %v3608_v28  ;;  %v8704_v41 = vpack.c.bf16 %v7889_v21, %v7883_v20  ;;  %v8708_v20 = vld [vmem:[#allocation23_spill] sm:$0xff]  ;;  %v8717_v28 = vld [vmem:[#allocation29_spill] sm:$0xff] }
 0x40b   : > { %4289 = vmatmul.mubr.bf16.gmra.mrb[188].mxu1 %v3718_v1  ;;  %5634 = vmatpush3.bf16.msra.mxu0 %v6411_v60  ;;  %v6416_v1 = vld [vmem:[%s8520_s9 + $0x70] sm:$0xff]   ;;  %v3613_v39 = vadd.bf16 %v8018_v24, %v8695_v12  ;;  %v3681_v61 = vmax.bf16 %v8602_v33, %v3617_v45  ;;  %v8718_v12 = vpack.c.bf16 %v8716_v44, %v8717_v28 }
 0x40c   : > { %4331 = vmatprep.mubr.bf16.mxu1 %v3661_v30  ;;  %5635 = vmatprep.subr.bf16.mxu0 %v6412_v7  ;;  %v3664_v30 = vmax.bf16 %v8602_v33, %v3600_v10  ;;  %v3673_v49 = vmax.bf16 %v8602_v33, %v3609_v25  ;;  %v8696_v7 = vpack.c.bf16 %v7825_v29, %v7819_v5  ;;  %v8713_v25 = vld [vmem:[#allocation26_spill] sm:$0xff] }
 0x40d   : > { %v3677_v60 = vmax.bf16 %v8602_v33, %v3613_v39  ;;  %v8699_v5 = vpack.c.bf16 %v7861_v17, %v7854_v18  ;;  %v8702_v10 = vpack.c.bf16 %v7873_v31, %v7867_v50  ;;  %v8705_v50 = vpack.c.bf16 %v7909_v47, %v7902_v53 }
 0x40e   : > { %v3640_v39 = vadd.bf16 %v8036_v14, %v8718_v12 }
 0x40f   : > { %5636 = vmatpush3.bf16.msra.mxu0 %v6413_v46  ;;  %v3621_v29 = vadd.bf16 %v8018_v24, %v8699_v5  ;;  %v3624_v62 = vadd.bf16 %v8036_v14, %v8702_v10  ;;  %v3633_v31 = vadd.bf16 %v8018_v24, %v8705_v50  ;;  %v8725_v5 = vld [vmem:[#allocation35_spill] sm:$0xff]  ;;  %v3657_v50 = vadd.bf16 %v8018_v24, %v3539_v11  ;;  %v8737_v11 = vld [vmem:[#allocation21_spill] sm:$0xff] }
 0x410   : > { %5637 = vmatprep.subr.bf16.mxu0 %v6414_v19  ;;  %v8700_v19 = vpack.c.bf16 %v7857_v16, %v7851_v37  ;;  %v8703_v37 = vpack.c.bf16 %v7893_v40, %v7886_v36  ;;  %v3704_v13 = vmax.bf16 %v8602_v33, %v3640_v39  ;;  %v8731_v10 = vld [vmem:[#allocation39_spill] sm:$0xff] }
 0x411   : > { %v3685_v63 = vmax.bf16 %v8602_v33, %v3621_v29  ;;  %v3697_v36 = vmax.bf16 %v8602_v33, %v3633_v31  ;;  %v8726_v29 = vpack.c.bf16 %v7979_v6, %v8725_v5 }
 0x412   : > { %v3620_v32 = vadd.bf16 %v8036_v14, %v8700_v19  ;;  %v3629_v16 = vadd.bf16 %v8018_v24, %v8703_v37 }
 0x413   : > { %4332 = vmatmul.mubr.bf16.vlgmr.msra.gmra.mrb[128].mxu1 %v3660_v43  ;;  %5638 = vmatpush3.bf16.msra.mxu0 %v6415_v15  ;;  %v3612_v43 = vadd.bf16 %v8036_v14, %v8696_v7  ;;  %v3628_v15 = vadd.bf16 %v8036_v14, %v8704_v41 }
 0x414   : > { %4341 = vmatprep.mubr.bf16.mxu1 %v3665_v58  ;;  %5639 = vmatprep.subr.bf16.mxu0 %v6416_v1  ;;  %v8698_v58 = vpack.c.bf16 %v7841_v55, %v7835_v54  ;;  %v8701_v54 = vpack.c.bf16 %v7877_v38, %v7870_v4  ;;  %v3684_v18 = vmax.bf16 %v8602_v33, %v3620_v32  ;;  %v8727_v32 = vld [vmem:[#allocation36_spill] sm:$0xff] }
 0x415   : > { %v3676_v35 = vmax.bf16 %v8602_v33, %v3612_v43  ;;  %v3688_v38 = vmax.bf16 %v8602_v33, %v3624_v62  ;;  %v3693_v4 = vmax.bf16 %v8602_v33, %v3629_v16  ;;  %v3692_v40 = vmax.bf16 %v8602_v33, %v3628_v15 }
 0x416   : > { %v3616_v46 = vadd.bf16 %v8036_v14, %v8698_v58  ;;  %v3625_v55 = vadd.bf16 %v8018_v24, %v8701_v54  ;;  %v8706_v1 = vpack.c.bf16 %v7905_v9, %v7899_v51  ;;  %v8714_v51 = vld [vmem:[#allocation27_spill] sm:$0xff]  ;;  %v8728_v54 = vld [vmem:[#allocation37_spill] sm:$0xff] }
 0x417   : > { %5640 = vmatpush3.bf16.msra.mxu0 %v6417_v48  ;;  %v8715_v9 = vpack.c.bf16 %v8713_v25, %v8714_v51 }
 0x418   : > { %5641 = vmatprep.subr.bf16.mxu0 %v6418_v34  ;;  %v3680_v42 = vmax.bf16 %v8602_v33, %v3616_v46  ;;  %v3689_v17 = vmax.bf16 %v8602_v33, %v3625_v55  ;;  %v8710_v34 = vld [vmem:[#allocation24_spill] sm:$0xff]  ;;  %v8729_v55 = vpack.c.bf16 %v8727_v32, %v8728_v54 }
 0x419   : > { %v8712_v52 = vpack.c.bf16 %v8710_v34, %v8711_v0 }
 0x41b   : > { %4342 = vmatmul.mubr.bf16.gmra.mrb[132].mxu1 %v3664_v30  ;;  %5642 = vmatpush3.bf16.msra.mxu0 %v6419_v57  ;;  %v3632_v30 = vadd.bf16 %v8036_v14, %v8706_v1  ;;  %v3636_v26 = vadd.bf16 %v8036_v14, %v8712_v52  ;;  %v3641_v57 = vadd.bf16 %v8018_v24, %v8715_v9 }
 0x41c   : > { %4351 = vmatprep.mubr.bf16.mxu1 %v3669_v56  ;;  %v8707_v56 = vld [vmem:[#allocation22_spill] sm:$0xff] }
 0x41d   : > { %v8709_v21 = vpack.c.bf16 %v8707_v56, %v8708_v20  ;;  %v3696_v53 = vmax.bf16 %v8602_v33, %v3632_v30  ;;  %v4547_v56 = vrot.slane %v4533_v2, %v8737_v11 }
 0x41f   : > { %v3637_v48 = vadd.bf16 %v8018_v24, %v8709_v21  ;;  %v4556_v21 = vpack.i.b16 %v4547_v56, %v4547_v56 }
 0x421   : > { %v3701_v47 = vmax.bf16 %v8602_v33, %v3637_v48 }
 0x423   : > { %4352 = vmatmul.mubr.bf16.gmra.mrb[136].mxu1 %v3668_v23  ;;  %v3700_v23 = vmax.bf16 %v8602_v33, %v3636_v26 }
 0x424   : > { %4361 = vmatprep.mubr.bf16.mxu1 %v3673_v49  ;;  %v3705_v49 = vmax.bf16 %v8602_v33, %v3641_v57 }
 0x42b   : > { %4362 = vmatmul.mubr.bf16.gmra.mrb[140].mxu1 %v3672_v59  ;;  %v8719_v59 = vld [vmem:[#allocation30_spill] sm:$0xff] }
 0x42c   : > { %4371 = vmatprep.mubr.bf16.mxu1 %v3677_v60  ;;  %v8720_v60 = vld [vmem:[#allocation31_spill] sm:$0xff] }
 0x42d   : > { %v8721_v7 = vpack.c.bf16 %v8719_v59, %v8720_v60 }
 0x42f   : > { %v3645_v43 = vadd.bf16 %v8018_v24, %v8721_v7 }
 0x431   : > { %v3709_v45 = vmax.bf16 %v8602_v33, %v3645_v43 }
 0x433   : > { %4372 = vmatmul.mubr.bf16.gmra.mrb[144].mxu1 %v3676_v35  ;;  %v8722_v35 = vld [vmem:[#allocation32_spill] sm:$0xff] }
 0x434   : > { %4381 = vmatprep.mubr.bf16.mxu1 %v3681_v61  ;;  %v8723_v61 = vld [vmem:[#allocation33_spill] sm:$0xff] }
 0x435   : > { %v8724_v58 = vpack.c.bf16 %v8722_v35, %v8723_v61 }
 0x437   : > { %v3644_v46 = vadd.bf16 %v8036_v14, %v8724_v58 }
 0x43b   : > { %4382 = vmatmul.mubr.bf16.gmra.mrb[148].mxu1 %v3680_v42  ;;  %v3649_v42 = vadd.bf16 %v8018_v24, %v8726_v29 }
 0x43c   : > { %4391 = vmatprep.mubr.bf16.mxu1 %v3685_v63  ;;  %v3708_v63 = vmax.bf16 %v8602_v33, %v3644_v46 }
 0x43d   : > { %v3713_v19 = vmax.bf16 %v8602_v33, %v3649_v42 }
 0x443   : > { %4392 = vmatmul.mubr.bf16.gmra.mrb[152].mxu1 %v3684_v18  ;;  %v3648_v18 = vadd.bf16 %v8036_v14, %v8729_v55 }
 0x444   : > { %4401 = vmatprep.mubr.bf16.mxu1 %v3689_v17  ;;  %v8730_v17 = vld [vmem:[#allocation38_spill] sm:$0xff] }
 0x445   : > { %v8732_v62 = vpack.c.bf16 %v8730_v17, %v8731_v10  ;;  %v3712_v6 = vmax.bf16 %v8602_v33, %v3648_v18 }
 0x447   : > { %v3653_v37 = vadd.bf16 %v8018_v24, %v8732_v62  ;;  %v4540_v24 = vrot.slane %v5599_v27, %v8737_v11 }
 0x449   : > { %v3717_v16 = vmax.bf16 %v8602_v33, %v3653_v37  ;;  %v4549_v20 = vpack.i.b16 %v4540_v24, %v4540_v24 }
 0x44b   : > { %4402 = vmatmul.mubr.bf16.gmra.mrb[156].mxu1 %v3688_v38  ;;  %v8733_v38 = vld [vmem:[#allocation40_spill] sm:$0xff] }
 0x44c   : > { %4411 = vmatprep.mubr.bf16.mxu1 %v3693_v4  ;;  %v8734_v4 = vld [vmem:[#allocation34_spill] sm:$0xff] }
 0x44d   : > { %v8735_v41 = vpack.c.bf16 %v8733_v38, %v8734_v4 }
 0x44f   : > { %v3652_v15 = vadd.bf16 %v8036_v14, %v8735_v41 }
 0x451   : > { %v3716_v31 = vmax.bf16 %v8602_v33, %v3652_v15 }
 0x453   : > { %4412 = vmatmul.mubr.bf16.gmra.mrb[160].mxu1 %v3692_v40  ;;  %v3721_v40 = vmax.bf16 %v8602_v33, %v3657_v50 }
 0x454   : > { %4421 = vmatprep.mubr.bf16.mxu1 %v3697_v36  ;;  %v8736_v36 = vpack.c.bf16 %v8020_v22, %v8009_v8  ;;  %v8237_v8 = vrot.slane %v4549_v20, %v7221_v3 }
 0x456   : > { %v3656_v1 = vadd.bf16 %v8036_v14, %v8736_v36  ;;  %v8240_v14 = vrot.slane %v4556_v21, %v7221_v3 }
 0x458   : > { %v3720_v30 = vmax.bf16 %v8602_v33, %v3656_v1 }
 0x45b   : > { %4422 = vmatmul.mubr.bf16.gmra.mrb[164].mxu1 %v3696_v53 }
 0x45c   : > { %4431 = vmatprep.mubr.bf16.mxu1 %v3701_v47 }
 0x463   : > { %4432 = vmatmul.mubr.bf16.gmra.mrb[168].mxu1 %v3700_v23 }
 0x464   : > { %4441 = vmatprep.mubr.bf16.mxu1 %v3705_v49 }
 0x46b   : > { %4442 = vmatmul.mubr.bf16.gmra.mrb[172].mxu1 %v3704_v13 }
 0x46c   : > { %4451 = vmatprep.mubr.bf16.mxu1 %v3709_v45 }
 0x473   : > { %4452 = vmatmul.mubr.bf16.gmra.mrb[176].mxu1 %v3708_v63 }
 0x474   : > { %4461 = vmatprep.mubr.bf16.mxu1 %v3713_v19 }
 0x47b   : > { %4462 = vmatmul.mubr.bf16.gmra.mrb[180].mxu1 %v3712_v6 }
 0x47c   : > { %4471 = vmatprep.mubr.bf16.mxu1 %v3717_v16 }
 0x483   : > { %4472 = vmatmul.mubr.bf16.gmra.mrb[184].mxu1 %v3716_v31 }
 0x484   : > { %4481 = vmatprep.mubr.bf16.mxu1 %v3721_v40 }
 0x48b   : > { %4482 = vmatmul.mubr.bf16.gmra.mrb[188].mxu1 %v3720_v30 }
 0x4e6   : > { %v4333_v48 = vpop.f32.mrb[128].mxu1 }
 0x4e7   : > { %v4335_v53 = vpop.f32.mrb[129].mxu1 }
 0x4e8   : > { %v4337_v22 = vpop.f32.mrb[130].mxu1 }
 0x4e9   : > { %v4492_v47 = vpack.c.bf16 %v4337_v22, %v4333_v48  ;;  %v4339_v34 = vpop.f32.mrb[131].mxu1 }
 0x4ea   : > { %v4493_v0 = vpack.c.bf16 %v4339_v34, %v4335_v53 }
 0x4eb   : > { %v4562_v52 = vadd.bf16 %v8237_v8, %v4492_v47 }
 0x4ec   : > { %v4563_v26 = vadd.bf16 %v8240_v14, %v4493_v0 }
 0x4ed   : > { %v4594_v9 = vmax.bf16 %v8602_v33, %v4562_v52 }
 0x4ee   : > { %v4343_v25 = vpop.f32.mrb[132].mxu1  ;;  %v4595_v51 = vmax.bf16 %v8602_v33, %v4563_v26 }
 0x4ef   : > { %v4345_v57 = vpop.f32.mrb[133].mxu1 }
 0x4f0   : > { %v4347_v23 = vpop.f32.mrb[134].mxu1  ;;  %4793 = vmatprep.mubr.bf16.mxu0 %v4595_v51 }
 0x4f1   : > { %v4494_v49 = vpack.c.bf16 %v4347_v23, %v4343_v25  ;;  %v4349_v44 = vpop.f32.mrb[135].mxu1  ;;  %4794 = vmatmul.mubr.bf16.vlgmr.msra.gmra.mrb[192].mxu0 %v4594_v9 }
 0x4f2   : > { %v4495_v3 = vpack.c.bf16 %v4349_v44, %v4345_v57 }
 0x4f3   : > { %v4564_v28 = vadd.bf16 %v8237_v8, %v4494_v49 }
 0x4f4   : > { %v4565_v12 = vadd.bf16 %v8240_v14, %v4495_v3 }
 0x4f5   : > { %v4596_v7 = vmax.bf16 %v8602_v33, %v4564_v28 }
 0x4f6   : > { %v4353_v39 = vpop.f32.mrb[136].mxu1  ;;  %v4597_v59 = vmax.bf16 %v8602_v33, %v4565_v12 }
 0x4f7   : > { %v4355_v60 = vpop.f32.mrb[137].mxu1 }
 0x4f8   : > { %v4357_v43 = vpop.f32.mrb[138].mxu1  ;;  %4801 = vmatprep.mubr.bf16.mxu0 %v4597_v59 }
 0x4f9   : > { %v4496_v13 = vpack.c.bf16 %v4357_v43, %v4353_v39  ;;  %v4359_v45 = vpop.f32.mrb[139].mxu1  ;;  %4802 = vmatmul.mubr.bf16.gmra.mrb[196].mxu0 %v4596_v7 }
 0x4fa   : > { %v4497_v35 = vpack.c.bf16 %v4359_v45, %v4355_v60 }
 0x4fb   : > { %v4566_v61 = vadd.bf16 %v8237_v8, %v4496_v13 }
 0x4fc   : > { %v4567_v58 = vadd.bf16 %v8240_v14, %v4497_v35 }
 0x4fd   : > { %v4598_v42 = vmax.bf16 %v8602_v33, %v4566_v61 }
 0x4fe   : > { %v4363_v46 = vpop.f32.mrb[140].mxu1  ;;  %v4599_v5 = vmax.bf16 %v8602_v33, %v4567_v58 }
 0x4ff   : > { %v4365_v29 = vpop.f32.mrb[141].mxu1 }
 0x500   : > { %v4367_v63 = vpop.f32.mrb[142].mxu1  ;;  %4809 = vmatprep.mubr.bf16.mxu0 %v4599_v5 }
 0x501   : > { %v4498_v19 = vpack.c.bf16 %v4367_v63, %v4363_v46  ;;  %v4369_v32 = vpop.f32.mrb[143].mxu1  ;;  %4810 = vmatmul.mubr.bf16.gmra.mrb[200].mxu0 %v4598_v42 }
 0x502   : > { %v4499_v54 = vpack.c.bf16 %v4369_v32, %v4365_v29 }
 0x503   : > { %v4568_v55 = vadd.bf16 %v8237_v8, %v4498_v19 }
 0x504   : > { %v4569_v18 = vadd.bf16 %v8240_v14, %v4499_v54 }
 0x505   : > { %v4600_v37 = vmax.bf16 %v8602_v33, %v4568_v55 }
 0x506   : > { %v4373_v17 = vpop.f32.mrb[144].mxu1  ;;  %v4601_v10 = vmax.bf16 %v8602_v33, %v4569_v18 }
 0x507   : > { %v4375_v62 = vpop.f32.mrb[145].mxu1 }
 0x508   : > { %v4377_v6 = vpop.f32.mrb[146].mxu1  ;;  %4817 = vmatprep.mubr.bf16.mxu0 %v4601_v10 }
 0x509   : > { %v4500_v16 = vpack.c.bf16 %v4377_v6, %v4373_v17  ;;  %v4379_v38 = vpop.f32.mrb[147].mxu1  ;;  %4818 = vmatmul.mubr.bf16.gmra.mrb[204].mxu0 %v4600_v37 }
 0x50a   : > { %v4501_v4 = vpack.c.bf16 %v4379_v38, %v4375_v62 }
 0x50b   : > { %v4570_v41 = vadd.bf16 %v8237_v8, %v4500_v16 }
 0x50c   : > { %v4571_v15 = vadd.bf16 %v8240_v14, %v4501_v4 }
 0x50d   : > { %v4602_v36 = vmax.bf16 %v8602_v33, %v4570_v41 }
 0x50e   : > { %v4383_v50 = vpop.f32.mrb[148].mxu1  ;;  %v4603_v31 = vmax.bf16 %v8602_v33, %v4571_v15 }
 0x50f   : > { %v4385_v40 = vpop.f32.mrb[149].mxu1 }
 0x510   : > { %v4387_v1 = vpop.f32.mrb[150].mxu1  ;;  %4825 = vmatprep.mubr.bf16.mxu0 %v4603_v31 }
 0x511   : > { %v4502_v30 = vpack.c.bf16 %v4387_v1, %v4383_v50  ;;  %v4389_v27 = vpop.f32.mrb[151].mxu1  ;;  %4826 = vmatmul.mubr.bf16.gmra.mrb[208].mxu0 %v4602_v36 }
 0x512   : > { %v4503_v2 = vpack.c.bf16 %v4389_v27, %v4385_v40 }
 0x513   : > { %v4572_v11 = vadd.bf16 %v8237_v8, %v4502_v30 }
 0x514   : > { %v4573_v24 = vadd.bf16 %v8240_v14, %v4503_v2 }
 0x515   : > { %v4604_v48 = vmax.bf16 %v8602_v33, %v4572_v11 }
 0x516   : > { %v4393_v56 = vpop.f32.mrb[152].mxu1  ;;  %v4605_v20 = vmax.bf16 %v8602_v33, %v4573_v24 }
 0x517   : > { %v4395_v21 = vpop.f32.mrb[153].mxu1 }
 0x518   : > { %v4397_v53 = vpop.f32.mrb[154].mxu1  ;;  %4833 = vmatprep.mubr.bf16.mxu0 %v4605_v20 }
 0x519   : > { %v4504_v22 = vpack.c.bf16 %v4397_v53, %v4393_v56  ;;  %v4399_v47 = vpop.f32.mrb[155].mxu1  ;;  %4834 = vmatmul.mubr.bf16.gmra.mrb[212].mxu0 %v4604_v48 }
 0x51a   : > { %v4505_v34 = vpack.c.bf16 %v4399_v47, %v4395_v21 }
 0x51b   : > { %v4574_v0 = vadd.bf16 %v8237_v8, %v4504_v22 }
 0x51c   : > { %v4575_v52 = vadd.bf16 %v8240_v14, %v4505_v34 }
 0x51d   : > { %v4606_v9 = vmax.bf16 %v8602_v33, %v4574_v0 }
 0x51e   : > { %v4403_v26 = vpop.f32.mrb[156].mxu1  ;;  %v4607_v25 = vmax.bf16 %v8602_v33, %v4575_v52 }
 0x51f   : > { %v4405_v51 = vpop.f32.mrb[157].mxu1 }
 0x520   : > { %v4407_v57 = vpop.f32.mrb[158].mxu1  ;;  %4841 = vmatprep.mubr.bf16.mxu0 %v4607_v25 }
 0x521   : > { %v4506_v23 = vpack.c.bf16 %v4407_v57, %v4403_v26  ;;  %v4409_v49 = vpop.f32.mrb[159].mxu1  ;;  %4842 = vmatmul.mubr.bf16.gmra.mrb[216].mxu0 %v4606_v9 }
 0x522   : > { %v4507_v44 = vpack.c.bf16 %v4409_v49, %v4405_v51 }
 0x523   : > { %v4576_v3 = vadd.bf16 %v8237_v8, %v4506_v23 }
 0x524   : > { %v4577_v28 = vadd.bf16 %v8240_v14, %v4507_v44 }
 0x525   : > { %v4608_v60 = vmax.bf16 %v8602_v33, %v4576_v3 }
 0x526   : > { %v4413_v12 = vpop.f32.mrb[160].mxu1  ;;  %v4609_v39 = vmax.bf16 %v8602_v33, %v4577_v28 }
 0x527   : > { %v4415_v59 = vpop.f32.mrb[161].mxu1 }
 0x528   : > { %v4417_v7 = vpop.f32.mrb[162].mxu1  ;;  %4849 = vmatprep.mubr.bf16.mxu0 %v4609_v39 }
 0x529   : > { %v4508_v43 = vpack.c.bf16 %v4417_v7, %v4413_v12  ;;  %v4419_v13 = vpop.f32.mrb[163].mxu1  ;;  %4850 = vmatmul.mubr.bf16.gmra.mrb[220].mxu0 %v4608_v60 }
 0x52a   : > { %v4509_v45 = vpack.c.bf16 %v4419_v13, %v4415_v59 }
 0x52b   : > { %v4578_v35 = vadd.bf16 %v8237_v8, %v4508_v43 }
 0x52c   : > { %v4579_v61 = vadd.bf16 %v8240_v14, %v4509_v45 }
 0x52d   : > { %v4610_v29 = vmax.bf16 %v8602_v33, %v4578_v35 }
 0x52e   : > { %v4423_v58 = vpop.f32.mrb[164].mxu1  ;;  %v4611_v46 = vmax.bf16 %v8602_v33, %v4579_v61 }
 0x52f   : > { %v4425_v5 = vpop.f32.mrb[165].mxu1 }
 0x530   : > { %v4427_v42 = vpop.f32.mrb[166].mxu1  ;;  %4857 = vmatprep.mubr.bf16.mxu0 %v4611_v46 }
 0x531   : > { %v4510_v63 = vpack.c.bf16 %v4427_v42, %v4423_v58  ;;  %v4429_v19 = vpop.f32.mrb[167].mxu1  ;;  %4858 = vmatmul.mubr.bf16.gmra.mrb[224].mxu0 %v4610_v29 }
 0x532   : > { %v4511_v32 = vpack.c.bf16 %v4429_v19, %v4425_v5 }
 0x533   : > { %v4580_v54 = vadd.bf16 %v8237_v8, %v4510_v63 }
 0x534   : > { %v4581_v55 = vadd.bf16 %v8240_v14, %v4511_v32 }
 0x535   : > { %v4612_v62 = vmax.bf16 %v8602_v33, %v4580_v54 }
 0x536   : > { %v4433_v18 = vpop.f32.mrb[168].mxu1  ;;  %v4613_v17 = vmax.bf16 %v8602_v33, %v4581_v55 }
 0x537   : > { %v4435_v10 = vpop.f32.mrb[169].mxu1 }
 0x538   : > { %v4437_v37 = vpop.f32.mrb[170].mxu1  ;;  %4865 = vmatprep.mubr.bf16.mxu0 %v4613_v17 }
 0x539   : > { %v4512_v6 = vpack.c.bf16 %v4437_v37, %v4433_v18  ;;  %v4439_v16 = vpop.f32.mrb[171].mxu1  ;;  %4866 = vmatmul.mubr.bf16.gmra.mrb[228].mxu0 %v4612_v62 }
 0x53a   : > { %v4513_v38 = vpack.c.bf16 %v4439_v16, %v4435_v10  ;;  %v8313_v10 = vld [vmem:[%s8521_s10] ss:$0 sm:$0xff] }
 0x53b   : > { %v4582_v4 = vadd.bf16 %v8237_v8, %v4512_v6 }
 0x53c   : > { %v4583_v41 = vadd.bf16 %v8240_v14, %v4513_v38 }
 0x53d   : > { %v4614_v40 = vmax.bf16 %v8602_v33, %v4582_v4 }
 0x53e   : > { %v4443_v15 = vpop.f32.mrb[172].mxu1  ;;  %v4615_v50 = vmax.bf16 %v8602_v33, %v4583_v41 }
 0x53f   : > { %v4445_v31 = vpop.f32.mrb[173].mxu1 }
 0x540   : > { %v4447_v36 = vpop.f32.mrb[174].mxu1  ;;  %4873 = vmatprep.mubr.bf16.mxu0 %v4615_v50 }
 0x541   : > { %v4514_v1 = vpack.c.bf16 %v4447_v36, %v4443_v15  ;;  %v4449_v30 = vpop.f32.mrb[175].mxu1  ;;  %4874 = vmatmul.mubr.bf16.gmra.mrb[232].mxu0 %v4614_v40 }
 0x542   : > { %v4515_v27 = vpack.c.bf16 %v4449_v30, %v4445_v31 }
 0x543   : > { %v4584_v2 = vadd.bf16 %v8237_v8, %v4514_v1 }
 0x544   : > { %v4585_v11 = vadd.bf16 %v8240_v14, %v4515_v27 }
 0x545   : > { %v4616_v21 = vmax.bf16 %v8602_v33, %v4584_v2 }
 0x546   : > { %v4453_v24 = vpop.f32.mrb[176].mxu1  ;;  %v4617_v56 = vmax.bf16 %v8602_v33, %v4585_v11 }
 0x547   : > { %v4455_v20 = vpop.f32.mrb[177].mxu1 }
 0x548   : > { %v4457_v48 = vpop.f32.mrb[178].mxu1  ;;  %4881 = vmatprep.mubr.bf16.mxu0 %v4617_v56 }
 0x549   : > { %v4516_v53 = vpack.c.bf16 %v4457_v48, %v4453_v24  ;;  %v4459_v22 = vpop.f32.mrb[179].mxu1  ;;  %4882 = vmatmul.mubr.bf16.gmra.mrb[236].mxu0 %v4616_v21 }
 0x54a   : > { %v4517_v47 = vpack.c.bf16 %v4459_v22, %v4455_v20 }
 0x54b   : > { %v4586_v34 = vadd.bf16 %v8237_v8, %v4516_v53 }
 0x54c   : > { %v4587_v0 = vadd.bf16 %v8240_v14, %v4517_v47 }
 0x54d   : > { %v4618_v51 = vmax.bf16 %v8602_v33, %v4586_v34 }
 0x54e   : > { %v4463_v52 = vpop.f32.mrb[180].mxu1  ;;  %v4619_v26 = vmax.bf16 %v8602_v33, %v4587_v0 }
 0x54f   : > { %v4465_v25 = vpop.f32.mrb[181].mxu1 }
 0x550   : > { %v4467_v9 = vpop.f32.mrb[182].mxu1  ;;  %4889 = vmatprep.mubr.bf16.mxu0 %v4619_v26 }
 0x551   : > { %v4518_v57 = vpack.c.bf16 %v4467_v9, %v4463_v52  ;;  %v4469_v23 = vpop.f32.mrb[183].mxu1  ;;  %4890 = vmatmul.mubr.bf16.gmra.mrb[240].mxu0 %v4618_v51 }
 0x552   : > { %v4519_v49 = vpack.c.bf16 %v4469_v23, %v4465_v25 }
 0x553   : > { %v4588_v44 = vadd.bf16 %v8237_v8, %v4518_v57 }
 0x554   : > { %v4589_v3 = vadd.bf16 %v8240_v14, %v4519_v49 }
 0x555   : > { %v4620_v59 = vmax.bf16 %v8602_v33, %v4588_v44 }
 0x556   : > { %v4473_v28 = vpop.f32.mrb[184].mxu1  ;;  %v4621_v12 = vmax.bf16 %v8602_v33, %v4589_v3 }
 0x557   : > { %v4475_v39 = vpop.f32.mrb[185].mxu1 }
 0x558   : > { %v4477_v60 = vpop.f32.mrb[186].mxu1  ;;  %4897 = vmatprep.mubr.bf16.mxu0 %v4621_v12 }
 0x559   : > { %v4520_v7 = vpack.c.bf16 %v4477_v60, %v4473_v28  ;;  %v4479_v43 = vpop.f32.mrb[187].mxu1  ;;  %4898 = vmatmul.mubr.bf16.gmra.mrb[244].mxu0 %v4620_v59 }
 0x55a   : > { %v4521_v13 = vpack.c.bf16 %v4479_v43, %v4475_v39 }
 0x55b   : > { %v4590_v45 = vadd.bf16 %v8237_v8, %v4520_v7 }
 0x55c   : > { %v4591_v35 = vadd.bf16 %v8240_v14, %v4521_v13 }
 0x55d   : > { %v4622_v5 = vmax.bf16 %v8602_v33, %v4590_v45 }
 0x55e   : > { %v4483_v61 = vpop.f32.mrb[188].mxu1  ;;  %v4623_v58 = vmax.bf16 %v8602_v33, %v4591_v35 }
 0x55f   : > { %v4485_v46 = vpop.f32.mrb[189].mxu1 }
 0x560   : > { %v4487_v29 = vpop.f32.mrb[190].mxu1  ;;  %4905 = vmatprep.mubr.bf16.mxu0 %v4623_v58 }
 0x561   : > { %v4522_v42 = vpack.c.bf16 %v4487_v29, %v4483_v61  ;;  %v4489_v63 = vpop.f32.mrb[191].mxu1  ;;  %4906 = vmatmul.mubr.bf16.gmra.mrb[248].mxu0 %v4622_v5 }
 0x562   : > { %v4523_v19 = vpack.c.bf16 %v4489_v63, %v4485_v46 }
 0x563   : > { %v4592_v32 = vadd.bf16 %v8237_v8, %v4522_v42 }
 0x564   : > { %v4593_v54 = vadd.bf16 %v8240_v14, %v4523_v19 }
 0x565   : > { %v4624_v18 = vmax.bf16 %v8602_v33, %v4592_v32 }
 0x566   : > { %v4625_v55 = vmax.bf16 %v8602_v33, %v4593_v54 }
 0x568   : > { %4913 = vmatprep.mubr.bf16.mxu0 %v4625_v55 }
 0x569   : > { %4914 = vmatmul.mubr.bf16.gmra.mrb[252].mxu0 %v4624_v18 }
 0x5c4   : > { %v5643_v17 = vpop.f32.mrb[192].mxu0 }
 0x5c5   : > { %v5644_v8 = vpop.f32.mrb[193].mxu0 }
 0x5c6   : > { %v5645_v62 = vadd.f32 %v5644_v8, %v5643_v17  ;;  %v5646_v14 = vpop.f32.mrb[194].mxu0 }
 0x5c7   : > { %v5647_v37 = vpop.f32.mrb[195].mxu0 }
 0x5c8   : > { %v4796_v6 = vadd.f32 %v5645_v62, %v8313_v10  ;;  %v5648_v33 = vadd.f32 %v5647_v37, %v5646_v14 }
 0x5ca   : > { %4922 = vst [vmem:[%s8318_s20] sm:$0xff] %v4796_v6  ;;  %v4954_v16 = vsub.f32 0.0, %v4796_v6  ;;  %v4799_v38 = vadd.f32 %v5648_v33, %v8313_v10 }
 0x5cc   : > { %v4986_v4 = vmul.f32 1.442695, %v4954_v16  ;;  %4923 = vst [vmem:[%s8318_s20 + $0x8] sm:$0xff] %v4799_v38  ;;  %v4955_v41 = vsub.f32 0.0, %v4799_v38  ;;  %v5649_v15 = vpop.f32.mrb[196].mxu0 }
 0x5cd   : > { %v5650_v50 = vpop.f32.mrb[197].mxu0 }
 0x5ce   : > { %6420 = vpow2.f32 %v4986_v4  ;;  %v4988_v31 = vmul.f32 1.442695, %v4955_v41  ;;  %v5651_v40 = vadd.f32 %v5650_v50, %v5649_v15  ;;  %v5652_v36 = vpop.f32.mrb[198].mxu0 }
 0x5cf   : > { %v5653_v1 = vpop.f32.mrb[199].mxu0 }
 0x5d0   : > { %6422 = vpow2.f32 %v4988_v31  ;;  %v4804_v30 = vadd.f32 %v5651_v40, %v8313_v10  ;;  %v5654_v27 = vadd.f32 %v5653_v1, %v5652_v36 }
 0x5d2   : > { %4924 = vst [vmem:[%s8318_s20 + $0x10] sm:$0xff] %v4804_v30  ;;  %v4956_v2 = vsub.f32 0.0, %v4804_v30  ;;  %v4807_v11 = vadd.f32 %v5654_v27, %v8313_v10 }
 0x5d4   : > { %v4990_v24 = vmul.f32 1.442695, %v4956_v2  ;;  %4925 = vst [vmem:[%s8318_s20 + $0x18] sm:$0xff] %v4807_v11  ;;  %v4957_v56 = vsub.f32 0.0, %v4807_v11  ;;  %v5655_v20 = vpop.f32.mrb[200].mxu0 }
 0x5d5   : > { %v5656_v21 = vpop.f32.mrb[201].mxu0 }
 0x5d6   : > { %6424 = vpow2.f32 %v4990_v24  ;;  %v4992_v48 = vmul.f32 1.442695, %v4957_v56  ;;  %v5657_v53 = vadd.f32 %v5656_v21, %v5655_v20  ;;  %v5658_v22 = vpop.f32.mrb[202].mxu0 }
 0x5d7   : > { %v5659_v47 = vpop.f32.mrb[203].mxu0 }
 0x5d8   : > { %v6421_v34 = vpop.eup %6420  ;;  %6426 = vpow2.f32 %v4992_v48  ;;  %v4812_v0 = vadd.f32 %v5657_v53, %v8313_v10  ;;  %v5660_v52 = vadd.f32 %v5659_v47, %v5658_v22 }
 0x5d9   : > { %v5050_v26 = vadd.f32 1.0, %v6421_v34 }
 0x5da   : > { %v6423_v25 = vpop.eup %6422  ;;  %4926 = vst [vmem:[%s8318_s20 + $0x20] sm:$0xff] %v4812_v0  ;;  %v4958_v51 = vsub.f32 0.0, %v4812_v0  ;;  %v4815_v9 = vadd.f32 %v5660_v52, %v8313_v10 }
 0x5db   : > { %6428 = vrcp.f32 %v5050_v26  ;;  %v5051_v57 = vadd.f32 1.0, %v6423_v25 }
 0x5dc   : > { %v4994_v23 = vmul.f32 1.442695, %v4958_v51  ;;  %4927 = vst [vmem:[%s8318_s20 + $0x28] sm:$0xff] %v4815_v9  ;;  %v4959_v49 = vsub.f32 0.0, %v4815_v9  ;;  %v5661_v44 = vpop.f32.mrb[204].mxu0 }
 0x5dd   : > { %6430 = vrcp.f32 %v5051_v57  ;;  %v5662_v3 = vpop.f32.mrb[205].mxu0 }
 0x5de   : > { %6432 = vpow2.f32 %v4994_v23  ;;  %v4996_v28 = vmul.f32 1.442695, %v4959_v49  ;;  %v5663_v12 = vadd.f32 %v5662_v3, %v5661_v44  ;;  %v5664_v39 = vpop.f32.mrb[206].mxu0 }
 0x5df   : > { %v5665_v59 = vpop.f32.mrb[207].mxu0 }
 0x5e0   : > { %v6425_v60 = vpop.eup %6424  ;;  %6434 = vpow2.f32 %v4996_v28  ;;  %v4820_v7 = vadd.f32 %v5663_v12, %v8313_v10  ;;  %v5666_v43 = vadd.f32 %v5665_v59, %v5664_v39 }
 0x5e1   : > { %v5052_v13 = vadd.f32 1.0, %v6425_v60 }
 0x5e2   : > { %v6427_v45 = vpop.eup %6426  ;;  %4928 = vst [vmem:[%s8318_s20 + $0x30] sm:$0xff] %v4820_v7  ;;  %v4960_v35 = vsub.f32 0.0, %v4820_v7  ;;  %v4823_v61 = vadd.f32 %v5666_v43, %v8313_v10 }
 0x5e3   : > { %6436 = vrcp.f32 %v5052_v13  ;;  %v5053_v58 = vadd.f32 1.0, %v6427_v45 }
 0x5e4   : > { %v4998_v46 = vmul.f32 1.442695, %v4960_v35  ;;  %4929 = vst [vmem:[%s8318_s20 + $0x38] sm:$0xff] %v4823_v61  ;;  %v4961_v5 = vsub.f32 0.0, %v4823_v61  ;;  %v5667_v29 = vpop.f32.mrb[208].mxu0 }
 0x5e5   : > { %v6429_v42 = vpop.eup %6428  ;;  %6438 = vrcp.f32 %v5053_v58  ;;  %v5668_v63 = vpop.f32.mrb[209].mxu0 }
 0x5e6   : > { %5114 = vst [vmem:[%s8337_s24] sm:$0xff] %v6429_v42  ;;  %6440 = vpow2.f32 %v4998_v46  ;;  %v5000_v19 = vmul.f32 1.442695, %v4961_v5  ;;  %v5669_v32 = vadd.f32 %v5668_v63, %v5667_v29  ;;  %v5670_v54 = vpop.f32.mrb[210].mxu0 }
 0x5e7   : > { %v6431_v55 = vpop.eup %6430  ;;  %v5671_v18 = vpop.f32.mrb[211].mxu0 }
 0x5e8   : > { %v6433_v17 = vpop.eup %6432  ;;  %5115 = vst [vmem:[%s8337_s24 + $0x8] sm:$0xff] %v6431_v55  ;;  %6442 = vpow2.f32 %v5000_v19  ;;  %v4828_v8 = vadd.f32 %v5669_v32, %v8313_v10  ;;  %v5672_v62 = vadd.f32 %v5671_v18, %v5670_v54 }
 0x5e9   : > { %v5054_v14 = vadd.f32 1.0, %v6433_v17 }
 0x5ea   : > { %v6435_v37 = vpop.eup %6434  ;;  %4930 = vst [vmem:[%s8318_s20 + $0x40] sm:$0xff] %v4828_v8  ;;  %v4962_v6 = vsub.f32 0.0, %v4828_v8  ;;  %v4831_v33 = vadd.f32 %v5672_v62, %v8313_v10 }
 0x5eb   : > { %6444 = vrcp.f32 %v5054_v14  ;;  %v5055_v16 = vadd.f32 1.0, %v6435_v37 }
 0x5ec   : > { %v5002_v38 = vmul.f32 1.442695, %v4962_v6  ;;  %4931 = vst [vmem:[%s8318_s20 + $0x48] sm:$0xff] %v4831_v33  ;;  %v4963_v4 = vsub.f32 0.0, %v4831_v33  ;;  %v5673_v41 = vpop.f32.mrb[212].mxu0 }
 0x5ed   : > { %v6437_v15 = vpop.eup %6436  ;;  %6446 = vrcp.f32 %v5055_v16  ;;  %v5674_v50 = vpop.f32.mrb[213].mxu0 }
 0x5ee   : > { %5116 = vst [vmem:[%s8337_s24 + $0x10] sm:$0xff] %v6437_v15  ;;  %6448 = vpow2.f32 %v5002_v38  ;;  %v5004_v31 = vmul.f32 1.442695, %v4963_v4  ;;  %v5675_v40 = vadd.f32 %v5674_v50, %v5673_v41  ;;  %v5676_v36 = vpop.f32.mrb[214].mxu0 }
 0x5ef   : > { %v6439_v1 = vpop.eup %6438  ;;  %v5677_v30 = vpop.f32.mrb[215].mxu0 }
 0x5f0   : > { %v6441_v27 = vpop.eup %6440  ;;  %5117 = vst [vmem:[%s8337_s24 + $0x18] sm:$0xff] %v6439_v1  ;;  %6450 = vpow2.f32 %v5004_v31  ;;  %v4836_v2 = vadd.f32 %v5675_v40, %v8313_v10  ;;  %v5678_v11 = vadd.f32 %v5677_v30, %v5676_v36 }
 0x5f1   : > { %v5056_v24 = vadd.f32 1.0, %v6441_v27 }
 0x5f2   : > { %v6443_v56 = vpop.eup %6442  ;;  %4932 = vst [vmem:[%s8318_s20 + $0x50] sm:$0xff] %v4836_v2  ;;  %v4964_v20 = vsub.f32 0.0, %v4836_v2  ;;  %v4839_v21 = vadd.f32 %v5678_v11, %v8313_v10 }
 0x5f3   : > { %6452 = vrcp.f32 %v5056_v24  ;;  %v5057_v48 = vadd.f32 1.0, %v6443_v56 }
 0x5f4   : > { %v5006_v53 = vmul.f32 1.442695, %v4964_v20  ;;  %4933 = vst [vmem:[%s8318_s20 + $0x58] sm:$0xff] %v4839_v21  ;;  %v4965_v22 = vsub.f32 0.0, %v4839_v21  ;;  %v5679_v47 = vpop.f32.mrb[216].mxu0 }
 0x5f5   : > { %v6445_v34 = vpop.eup %6444  ;;  %6454 = vrcp.f32 %v5057_v48  ;;  %v5680_v0 = vpop.f32.mrb[217].mxu0 }
 0x5f6   : > { %5118 = vst [vmem:[%s8337_s24 + $0x20] sm:$0xff] %v6445_v34  ;;  %6456 = vpow2.f32 %v5006_v53  ;;  %v5008_v52 = vmul.f32 1.442695, %v4965_v22  ;;  %v5681_v26 = vadd.f32 %v5680_v0, %v5679_v47  ;;  %v5682_v25 = vpop.f32.mrb[218].mxu0 }
 0x5f7   : > { %v6447_v51 = vpop.eup %6446  ;;  %v5683_v9 = vpop.f32.mrb[219].mxu0 }
 0x5f8   : > { %v6449_v57 = vpop.eup %6448  ;;  %5119 = vst [vmem:[%s8337_s24 + $0x28] sm:$0xff] %v6447_v51  ;;  %6458 = vpow2.f32 %v5008_v52  ;;  %v4844_v23 = vadd.f32 %v5681_v26, %v8313_v10  ;;  %v5684_v49 = vadd.f32 %v5683_v9, %v5682_v25 }
 0x5f9   : > { %v5058_v44 = vadd.f32 1.0, %v6449_v57 }
 0x5fa   : > { %v6451_v3 = vpop.eup %6450  ;;  %4934 = vst [vmem:[%s8318_s20 + $0x60] sm:$0xff] %v4844_v23  ;;  %v4966_v28 = vsub.f32 0.0, %v4844_v23  ;;  %v4847_v12 = vadd.f32 %v5684_v49, %v8313_v10 }
 0x5fb   : > { %6460 = vrcp.f32 %v5058_v44  ;;  %v5059_v39 = vadd.f32 1.0, %v6451_v3 }
 0x5fc   : > { %v5010_v59 = vmul.f32 1.442695, %v4966_v28  ;;  %4935 = vst [vmem:[%s8318_s20 + $0x68] sm:$0xff] %v4847_v12  ;;  %v4967_v60 = vsub.f32 0.0, %v4847_v12  ;;  %v5685_v7 = vpop.f32.mrb[220].mxu0 }
 0x5fd   : > { %v6453_v43 = vpop.eup %6452  ;;  %6462 = vrcp.f32 %v5059_v39  ;;  %v5686_v13 = vpop.f32.mrb[221].mxu0 }
 0x5fe   : > { %5120 = vst [vmem:[%s8337_s24 + $0x30] sm:$0xff] %v6453_v43  ;;  %6464 = vpow2.f32 %v5010_v59  ;;  %v5012_v45 = vmul.f32 1.442695, %v4967_v60  ;;  %v5687_v35 = vadd.f32 %v5686_v13, %v5685_v7  ;;  %v5688_v61 = vpop.f32.mrb[222].mxu0 }
 0x5ff   : > { %v6455_v58 = vpop.eup %6454  ;;  %v5689_v46 = vpop.f32.mrb[223].mxu0 }
 0x600   : > { %v6457_v5 = vpop.eup %6456  ;;  %5121 = vst [vmem:[%s8337_s24 + $0x38] sm:$0xff] %v6455_v58  ;;  %6466 = vpow2.f32 %v5012_v45  ;;  %v4852_v29 = vadd.f32 %v5687_v35, %v8313_v10  ;;  %v5690_v42 = vadd.f32 %v5689_v46, %v5688_v61 }
 0x601   : > { %v5060_v63 = vadd.f32 1.0, %v6457_v5 }
 0x602   : > { %v6459_v19 = vpop.eup %6458  ;;  %4936 = vst [vmem:[%s8318_s20 + $0x70] sm:$0xff] %v4852_v29  ;;  %v4968_v32 = vsub.f32 0.0, %v4852_v29  ;;  %v4855_v54 = vadd.f32 %v5690_v42, %v8313_v10 }
 0x603   : > { %6468 = vrcp.f32 %v5060_v63  ;;  %v5061_v55 = vadd.f32 1.0, %v6459_v19 }
 0x604   : > { %v5014_v18 = vmul.f32 1.442695, %v4968_v32  ;;  %4937 = vst [vmem:[%s8318_s20 + $0x78] sm:$0xff] %v4855_v54  ;;  %v4969_v17 = vsub.f32 0.0, %v4855_v54  ;;  %v5691_v8 = vpop.f32.mrb[224].mxu0 }
 0x605   : > { %v6461_v62 = vpop.eup %6460  ;;  %6470 = vrcp.f32 %v5061_v55  ;;  %v5692_v14 = vpop.f32.mrb[225].mxu0 }
 0x606   : > { %5122 = vst [vmem:[%s8337_s24 + $0x40] sm:$0xff] %v6461_v62  ;;  %6472 = vpow2.f32 %v5014_v18  ;;  %v5016_v37 = vmul.f32 1.442695, %v4969_v17  ;;  %v5693_v6 = vadd.f32 %v5692_v14, %v5691_v8  ;;  %v5694_v33 = vpop.f32.mrb[226].mxu0 }
 0x607   : > { %v6463_v16 = vpop.eup %6462  ;;  %v5695_v38 = vpop.f32.mrb[227].mxu0 }
 0x608   : > { %v6465_v4 = vpop.eup %6464  ;;  %5123 = vst [vmem:[%s8337_s24 + $0x48] sm:$0xff] %v6463_v16  ;;  %6474 = vpow2.f32 %v5016_v37  ;;  %v4860_v41 = vadd.f32 %v5693_v6, %v8313_v10  ;;  %v5696_v15 = vadd.f32 %v5695_v38, %v5694_v33 }
 0x609   : > { %v5062_v50 = vadd.f32 1.0, %v6465_v4 }
 0x60a   : > { %v6467_v31 = vpop.eup %6466  ;;  %4938 = vst [vmem:[%s8318_s20 + $0x80] sm:$0xff] %v4860_v41  ;;  %v4970_v40 = vsub.f32 0.0, %v4860_v41  ;;  %v4863_v36 = vadd.f32 %v5696_v15, %v8313_v10 }
 0x60b   : > { %6476 = vrcp.f32 %v5062_v50  ;;  %v5063_v1 = vadd.f32 1.0, %v6467_v31 }
 0x60c   : > { %v5018_v30 = vmul.f32 1.442695, %v4970_v40  ;;  %4939 = vst [vmem:[%s8318_s20 + $0x88] sm:$0xff] %v4863_v36  ;;  %v4971_v27 = vsub.f32 0.0, %v4863_v36  ;;  %v5697_v2 = vpop.f32.mrb[228].mxu0 }
 0x60d   : > { %v6469_v11 = vpop.eup %6468  ;;  %6478 = vrcp.f32 %v5063_v1  ;;  %v5698_v24 = vpop.f32.mrb[229].mxu0 }
 0x60e   : > { %5124 = vst [vmem:[%s8337_s24 + $0x50] sm:$0xff] %v6469_v11  ;;  %6480 = vpow2.f32 %v5018_v30  ;;  %v5020_v56 = vmul.f32 1.442695, %v4971_v27  ;;  %v5699_v20 = vadd.f32 %v5698_v24, %v5697_v2  ;;  %v5700_v21 = vpop.f32.mrb[230].mxu0 }
 0x60f   : > { %v6471_v48 = vpop.eup %6470  ;;  %v5701_v53 = vpop.f32.mrb[231].mxu0 }
 0x610   : > { %v6473_v22 = vpop.eup %6472  ;;  %5125 = vst [vmem:[%s8337_s24 + $0x58] sm:$0xff] %v6471_v48  ;;  %6482 = vpow2.f32 %v5020_v56  ;;  %v4868_v47 = vadd.f32 %v5699_v20, %v8313_v10  ;;  %v5702_v34 = vadd.f32 %v5701_v53, %v5700_v21 }
 0x611   : > { %v5064_v0 = vadd.f32 1.0, %v6473_v22 }
 0x612   : > { %v6475_v52 = vpop.eup %6474  ;;  %4940 = vst [vmem:[%s8318_s20 + $0x90] sm:$0xff] %v4868_v47  ;;  %v4972_v26 = vsub.f32 0.0, %v4868_v47  ;;  %v4871_v25 = vadd.f32 %v5702_v34, %v8313_v10 }
 0x613   : > { %6484 = vrcp.f32 %v5064_v0  ;;  %v5065_v51 = vadd.f32 1.0, %v6475_v52 }
 0x614   : > { %v5022_v9 = vmul.f32 1.442695, %v4972_v26  ;;  %4941 = vst [vmem:[%s8318_s20 + $0x98] sm:$0xff] %v4871_v25  ;;  %v4973_v57 = vsub.f32 0.0, %v4871_v25  ;;  %v5703_v23 = vpop.f32.mrb[232].mxu0 }
 0x615   : > { %v6477_v49 = vpop.eup %6476  ;;  %6486 = vrcp.f32 %v5065_v51  ;;  %v5704_v44 = vpop.f32.mrb[233].mxu0 }
 0x616   : > { %5126 = vst [vmem:[%s8337_s24 + $0x60] sm:$0xff] %v6477_v49  ;;  %6488 = vpow2.f32 %v5022_v9  ;;  %v5024_v3 = vmul.f32 1.442695, %v4973_v57  ;;  %v5705_v28 = vadd.f32 %v5704_v44, %v5703_v23  ;;  %v5706_v12 = vpop.f32.mrb[234].mxu0 }
 0x617   : > { %v6479_v39 = vpop.eup %6478  ;;  %v5707_v59 = vpop.f32.mrb[235].mxu0 }
 0x618   : > { %v6481_v60 = vpop.eup %6480  ;;  %5127 = vst [vmem:[%s8337_s24 + $0x68] sm:$0xff] %v6479_v39  ;;  %6490 = vpow2.f32 %v5024_v3  ;;  %v4876_v7 = vadd.f32 %v5705_v28, %v8313_v10  ;;  %v5708_v43 = vadd.f32 %v5707_v59, %v5706_v12 }
 0x619   : > { %v5066_v13 = vadd.f32 1.0, %v6481_v60 }
 0x61a   : > { %v6483_v45 = vpop.eup %6482  ;;  %4942 = vst [vmem:[%s8318_s20 + $0xa0] sm:$0xff] %v4876_v7  ;;  %v4974_v35 = vsub.f32 0.0, %v4876_v7  ;;  %v4879_v61 = vadd.f32 %v5708_v43, %v8313_v10 }
 0x61b   : > { %6492 = vrcp.f32 %v5066_v13  ;;  %v5067_v58 = vadd.f32 1.0, %v6483_v45 }
 0x61c   : > { %v5026_v46 = vmul.f32 1.442695, %v4974_v35  ;;  %4943 = vst [vmem:[%s8318_s20 + $0xa8] sm:$0xff] %v4879_v61  ;;  %v4975_v5 = vsub.f32 0.0, %v4879_v61  ;;  %v5709_v29 = vpop.f32.mrb[236].mxu0 }
 0x61d   : > { %v6485_v42 = vpop.eup %6484  ;;  %6494 = vrcp.f32 %v5067_v58  ;;  %v5710_v63 = vpop.f32.mrb[237].mxu0 }
 0x61e   : > { %5128 = vst [vmem:[%s8337_s24 + $0x70] sm:$0xff] %v6485_v42  ;;  %6496 = vpow2.f32 %v5026_v46  ;;  %v5028_v19 = vmul.f32 1.442695, %v4975_v5  ;;  %v5711_v32 = vadd.f32 %v5710_v63, %v5709_v29  ;;  %v5712_v54 = vpop.f32.mrb[238].mxu0 }
 0x61f   : > { %v6487_v55 = vpop.eup %6486  ;;  %v5713_v18 = vpop.f32.mrb[239].mxu0 }
 0x620   : > { %v6489_v17 = vpop.eup %6488  ;;  %5129 = vst [vmem:[%s8337_s24 + $0x78] sm:$0xff] %v6487_v55  ;;  %6498 = vpow2.f32 %v5028_v19  ;;  %v4884_v8 = vadd.f32 %v5711_v32, %v8313_v10  ;;  %v5714_v62 = vadd.f32 %v5713_v18, %v5712_v54 }
 0x621   : > { %v5068_v14 = vadd.f32 1.0, %v6489_v17 }
 0x622   : > { %v6491_v37 = vpop.eup %6490  ;;  %4944 = vst [vmem:[%s8318_s20 + $0xb0] sm:$0xff] %v4884_v8  ;;  %v4976_v6 = vsub.f32 0.0, %v4884_v8  ;;  %v4887_v33 = vadd.f32 %v5714_v62, %v8313_v10 }
 0x623   : > { %6500 = vrcp.f32 %v5068_v14  ;;  %v5069_v16 = vadd.f32 1.0, %v6491_v37 }
 0x624   : > { %v5030_v38 = vmul.f32 1.442695, %v4976_v6  ;;  %4945 = vst [vmem:[%s8318_s20 + $0xb8] sm:$0xff] %v4887_v33  ;;  %v4977_v4 = vsub.f32 0.0, %v4887_v33  ;;  %v5715_v41 = vpop.f32.mrb[240].mxu0 }
 0x625   : > { %v6493_v15 = vpop.eup %6492  ;;  %6502 = vrcp.f32 %v5069_v16  ;;  %v5716_v50 = vpop.f32.mrb[241].mxu0 }
 0x626   : > { %5130 = vst [vmem:[%s8337_s24 + $0x80] sm:$0xff] %v6493_v15  ;;  %6504 = vpow2.f32 %v5030_v38  ;;  %v5032_v31 = vmul.f32 1.442695, %v4977_v4  ;;  %v5717_v40 = vadd.f32 %v5716_v50, %v5715_v41  ;;  %v5718_v36 = vpop.f32.mrb[242].mxu0 }
 0x627   : > { %v6495_v1 = vpop.eup %6494  ;;  %v5719_v30 = vpop.f32.mrb[243].mxu0 }
 0x628   : > { %v6497_v27 = vpop.eup %6496  ;;  %5131 = vst [vmem:[%s8337_s24 + $0x88] sm:$0xff] %v6495_v1  ;;  %6506 = vpow2.f32 %v5032_v31  ;;  %v4892_v2 = vadd.f32 %v5717_v40, %v8313_v10  ;;  %v5720_v11 = vadd.f32 %v5719_v30, %v5718_v36 }
 0x629   : > { %v5070_v24 = vadd.f32 1.0, %v6497_v27 }
 0x62a   : > { %v6499_v56 = vpop.eup %6498  ;;  %4946 = vst [vmem:[%s8318_s20 + $0xc0] sm:$0xff] %v4892_v2  ;;  %v4978_v20 = vsub.f32 0.0, %v4892_v2  ;;  %v4895_v21 = vadd.f32 %v5720_v11, %v8313_v10 }
 0x62b   : > { %6508 = vrcp.f32 %v5070_v24  ;;  %v5071_v48 = vadd.f32 1.0, %v6499_v56 }
 0x62c   : > { %v5034_v53 = vmul.f32 1.442695, %v4978_v20  ;;  %4947 = vst [vmem:[%s8318_s20 + $0xc8] sm:$0xff] %v4895_v21  ;;  %v4979_v22 = vsub.f32 0.0, %v4895_v21  ;;  %v5721_v47 = vpop.f32.mrb[244].mxu0 }
 0x62d   : > { %v6501_v34 = vpop.eup %6500  ;;  %6510 = vrcp.f32 %v5071_v48  ;;  %v5722_v0 = vpop.f32.mrb[245].mxu0 }
 0x62e   : > { %5132 = vst [vmem:[%s8337_s24 + $0x90] sm:$0xff] %v6501_v34  ;;  %6512 = vpow2.f32 %v5034_v53  ;;  %v5036_v52 = vmul.f32 1.442695, %v4979_v22  ;;  %v5723_v26 = vadd.f32 %v5722_v0, %v5721_v47  ;;  %v5724_v25 = vpop.f32.mrb[246].mxu0 }
 0x62f   : > { %v6503_v51 = vpop.eup %6502  ;;  %v5725_v9 = vpop.f32.mrb[247].mxu0 }
 0x630   : > { %v6505_v57 = vpop.eup %6504  ;;  %5133 = vst [vmem:[%s8337_s24 + $0x98] sm:$0xff] %v6503_v51  ;;  %6514 = vpow2.f32 %v5036_v52  ;;  %v4900_v23 = vadd.f32 %v5723_v26, %v8313_v10  ;;  %v5726_v49 = vadd.f32 %v5725_v9, %v5724_v25 }
 0x631   : > { %v5072_v44 = vadd.f32 1.0, %v6505_v57 }
 0x632   : > { %v6507_v3 = vpop.eup %6506  ;;  %4948 = vst [vmem:[%s8318_s20 + $0xd0] sm:$0xff] %v4900_v23  ;;  %v4980_v28 = vsub.f32 0.0, %v4900_v23  ;;  %v4903_v12 = vadd.f32 %v5726_v49, %v8313_v10 }
 0x633   : > { %6516 = vrcp.f32 %v5072_v44  ;;  %v5073_v39 = vadd.f32 1.0, %v6507_v3 }
 0x634   : > { %v5038_v59 = vmul.f32 1.442695, %v4980_v28  ;;  %4949 = vst [vmem:[%s8318_s20 + $0xd8] sm:$0xff] %v4903_v12  ;;  %v4981_v60 = vsub.f32 0.0, %v4903_v12  ;;  %v5727_v7 = vpop.f32.mrb[248].mxu0 }
 0x635   : > { %v6509_v43 = vpop.eup %6508  ;;  %6518 = vrcp.f32 %v5073_v39  ;;  %v5728_v13 = vpop.f32.mrb[249].mxu0 }
 0x636   : > { %5134 = vst [vmem:[%s8337_s24 + $0xa0] sm:$0xff] %v6509_v43  ;;  %6520 = vpow2.f32 %v5038_v59  ;;  %v5040_v45 = vmul.f32 1.442695, %v4981_v60  ;;  %v5729_v35 = vadd.f32 %v5728_v13, %v5727_v7  ;;  %v5730_v61 = vpop.f32.mrb[250].mxu0 }
 0x637   : > { %v6511_v58 = vpop.eup %6510  ;;  %v5731_v46 = vpop.f32.mrb[251].mxu0 }
 0x638   : > { %v6513_v5 = vpop.eup %6512  ;;  %5135 = vst [vmem:[%s8337_s24 + $0xa8] sm:$0xff] %v6511_v58  ;;  %6522 = vpow2.f32 %v5040_v45  ;;  %v4908_v29 = vadd.f32 %v5729_v35, %v8313_v10  ;;  %v5732_v42 = vadd.f32 %v5731_v46, %v5730_v61 }
 0x639   : > { %v5074_v63 = vadd.f32 1.0, %v6513_v5 }
 0x63a   : > { %v6515_v19 = vpop.eup %6514  ;;  %4950 = vst [vmem:[%s8318_s20 + $0xe0] sm:$0xff] %v4908_v29  ;;  %v4982_v32 = vsub.f32 0.0, %v4908_v29  ;;  %v4911_v54 = vadd.f32 %v5732_v42, %v8313_v10 }
 0x63b   : > { %6524 = vrcp.f32 %v5074_v63  ;;  %v5075_v55 = vadd.f32 1.0, %v6515_v19 }
 0x63c   : > { %v5042_v18 = vmul.f32 1.442695, %v4982_v32  ;;  %4951 = vst [vmem:[%s8318_s20 + $0xe8] sm:$0xff] %v4911_v54  ;;  %v4983_v17 = vsub.f32 0.0, %v4911_v54  ;;  %v5733_v8 = vpop.f32.mrb[252].mxu0 }
 0x63d   : > { %v6517_v62 = vpop.eup %6516  ;;  %6526 = vrcp.f32 %v5075_v55  ;;  %v5734_v14 = vpop.f32.mrb[253].mxu0 }
 0x63e   : > { %5136 = vst [vmem:[%s8337_s24 + $0xb0] sm:$0xff] %v6517_v62  ;;  %6528 = vpow2.f32 %v5042_v18  ;;  %v5044_v37 = vmul.f32 1.442695, %v4983_v17  ;;  %v5735_v6 = vadd.f32 %v5734_v14, %v5733_v8  ;;  %v5736_v33 = vpop.f32.mrb[254].mxu0 }
 0x63f   : > { %v6519_v16 = vpop.eup %6518  ;;  %v5737_v38 = vpop.f32.mrb[255].mxu0 }
 0x640   : > { %v6521_v4 = vpop.eup %6520  ;;  %5137 = vst [vmem:[%s8337_s24 + $0xb8] sm:$0xff] %v6519_v16  ;;  %6530 = vpow2.f32 %v5044_v37  ;;  %v4916_v41 = vadd.f32 %v5735_v6, %v8313_v10  ;;  %v5738_v15 = vadd.f32 %v5737_v38, %v5736_v33 }
 0x641   : > { %v5076_v50 = vadd.f32 1.0, %v6521_v4 }
 0x642   : > { %v6523_v31 = vpop.eup %6522  ;;  %4952 = vst [vmem:[%s8318_s20 + $0xf0] sm:$0xff] %v4916_v41  ;;  %v4984_v40 = vsub.f32 0.0, %v4916_v41  ;;  %v4919_v36 = vadd.f32 %v5738_v15, %v8313_v10 }
 0x643   : > { %6532 = vrcp.f32 %v5076_v50  ;;  %v5077_v1 = vadd.f32 1.0, %v6523_v31 }
 0x644   : > { %v5046_v30 = vmul.f32 1.442695, %v4984_v40  ;;  %4953 = vst [vmem:[%s8318_s20 + $0xf8] sm:$0xff] %v4919_v36  ;;  %v4985_v27 = vsub.f32 0.0, %v4919_v36 }
 0x645   : > { %v6525_v2 = vpop.eup %6524  ;;  %6534 = vrcp.f32 %v5077_v1 }
 0x646   : > { %6645 = shalt.err (!%p6642_p11)
}
 0x647   : > { %s6646_s28 = scalar_lea.hbm %s8415_s16, 4096  ;;  %s6650_s17 = scalar_lea.hbm %s8522_s11, 8192 }
 0x648   : > { %p6647_p13 = scmp.ne.s32.totalorder %s8415_s16, %s6646_s28  ;;  %p6651_p6 = scmp.lt.u32.totalorder %s8415_s16, %s8522_s11 }
 0x649   : > { %p6652_p9 = scmp.lt.u32.totalorder %s6650_s17, %s6646_s28  ;;  %p6654_p10 = scmp.lt.u32.totalorder %s6646_s28, %s8415_s16 }
 0x64a   : > { %p6648_p5 = pnand %p6647_p13, %p8738_p1 }
 0x64b   : > { %p6653_p12 = por %p6652_p9, %p6651_p6 }
 0x64c   : > { %p6649_p0 = pneg %p6648_p5 }
 0x64d   : > { %p6655_p2 = por %p6654_p10, %p6653_p12 }
 0x64f   : > { %p6656_p3 = pnand %p6655_p2, %p6649_p0 }
 0x651   : > { %6659 = shalt.err (!%p6656_p3)
}
 0x652   : > { %s6746_s18 = smov 128   ;;  %s6747_s23 = smov 8   ;;  %5138 = vst [vmem:[%s8337_s24 + $0xc0] sm:$0xff] %v6525_v2  ;;  %6536 = vpow2.f32 %v5046_v30  ;;  %v5048_v10 = vmul.f32 1.442695, %v4985_v27  ;;  %v6527_v11 = vpop.eup %6526 }
 0x653   : > { %5943 = dma.vmem_to_hbm [thread:$0]  (%p8738_p1), %s8417_s5, 4096, %s8415_s16, %s5147_s12, %s6746_s18, %s6746_s18, %s6747_s23   ;;  %v6529_v24 = vpop.eup %6528 }
 0x654   : > { %5139 = vst [vmem:[%s8337_s24 + $0xc8] sm:$0xff] %v6527_v11  ;;  %6538 = vpow2.f32 %v5048_v10  ;;  %v5078_v56 = vadd.f32 1.0, %v6529_v24  ;;  %v6531_v20 = vpop.eup %6530  ;;  %s5181_s5 = sshll.u32 %s8337_s24, 4  ;;  %s8739_s21 = sld [smem:[#allocation42_spill]]  ;;  %s8464_s5 = int_to_ptr.vmem [resolvable:$true] %s5181_s5 }
 0x655   : > { %v5079_v21 = vadd.f32 1.0, %v6531_v20  ;;  %v6533_v48 = vpop.eup %6532  ;;  %s5152_s28 = scalar_lea.sflag [#allocation10], %s8307_s29  ;;  %s6660_s19 = scalar_lea.vmem %s8464_s5, 4096 }
 0x656   : > { %6540 = vrcp.f32 %v5078_v56  ;;  %5140 = vst [vmem:[%s8337_s24 + $0xd0] sm:$0xff] %v6533_v48  ;;  %v6535_v53 = vpop.eup %6534  ;;  %p6661_p4 = scmp.ne.s32.totalorder %s8464_s5, %s6660_s19  ;;  %s6748_s26 = smov [#allocation9]  }
 0x657   : > { %6542 = vrcp.f32 %v5079_v21  ;;  %5141 = vst [vmem:[%s8337_s24 + $0xd8] sm:$0xff] %v6535_v53  ;;  %s6664_s25 = sshll.u32 %s6748_s26, 4  ;;  %s6665_s25 = int_to_ptr.vmem [resolvable:$false] %s6664_s25 }
 0x658   : > { %p6662_p7 = pnand %p6661_p4, %p8738_p1  ;;  %s6666_s17 = scalar_lea.vmem %s6665_s25, 8192 }
 0x659   : > { %p6667_p11 = scmp.lt.s32.totalorder %s8464_s5, %s6665_s25  ;;  %p6668_p13 = scmp.lt.s32.totalorder %s6666_s17, %s6660_s19 }
 0x65a   : > { %s8740_s30 = smov %s8739_s21  ;;  %s8462_s27 = scalar_lea.hbm %s8739_s21, %s5625_s14 }
 0x65b   : > { %p6663_p8 = pneg %p6662_p7  ;;  %p6669_p5 = por %p6668_p13, %p6667_p11 }
 0x65c   : > { %v6537_v22 = vpop.eup %6536 }
 0x65d   : > { %v5080_v47 = vadd.f32 1.0, %v6537_v22  ;;  %p6670_p0 = pnand %p6669_p5, %p6663_p8 }
 0x65e   : > { %v6539_v34 = vpop.eup %6538 }
 0x65f   : > { %6544 = vrcp.f32 %v5080_v47  ;;  %v5081_v0 = vadd.f32 1.0, %v6539_v34 }
 0x660   : > { %v6541_v52 = vpop.eup %6540 }
 0x661   : > { %6546 = vrcp.f32 %v5081_v0  ;;  %5142 = vst [vmem:[%s8337_s24 + $0xe0] sm:$0xff] %v6541_v52  ;;  %v6543_v26 = vpop.eup %6542 }
 0x662   : > { %5143 = vst [vmem:[%s8337_s24 + $0xe8] sm:$0xff] %v6543_v26 }
 0x669   : > { %v6545_v25 = vpop.eup %6544 }
 0x66a   : > { %5144 = vst [vmem:[%s8337_s24 + $0xf0] sm:$0xff] %v6545_v25 }
 0x66b   : > { %v6547_v51 = vpop.eup %6546 }
 0x66c   : > { %5145 = vst [vmem:[%s8337_s24 + $0xf8] sm:$0xff] %v6547_v51 }
 0x66d   : > { %6673 = shalt.err (!%p6670_p0)
}
 0x66e   : > { %s6674_s24 = scalar_lea.hbm %s8462_s27, 4096  ;;  %s6678_s15 = scalar_lea.hbm %s8740_s30, 8192 }
 0x66f   : > { %p6675_p6 = scmp.ne.s32.totalorder %s8462_s27, %s6674_s24  ;;  %p6679_p10 = scmp.lt.u32.totalorder %s8462_s27, %s8740_s30 }
 0x670   : > { %p6680_p2 = scmp.lt.u32.totalorder %s6678_s15, %s6674_s24  ;;  %p6682_p4 = scmp.lt.u32.totalorder %s6674_s24, %s8462_s27 }
 0x671   : > { %p6676_p9 = pnand %p6675_p6, %p8738_p1 }
 0x672   : > { %p6681_p3 = por %p6680_p2, %p6679_p10 }
 0x673   : > { %p6677_p12 = pneg %p6676_p9 }
 0x674   : > { %p6683_p7 = por %p6682_p4, %p6681_p3 }
 0x676   : > { %p6684_p8 = pnand %p6683_p7, %p6677_p12 }
 0x678   : > { %6687 = shalt.err (!%p6684_p8)
}
 0x679   : > { %5944 = dma.vmem_to_hbm [thread:$0]  (%p8738_p1), %s8464_s5, 4096, %s8462_s27, %s5152_s28, %s6746_s18, %s6746_s18, %s6747_s23  }
 0x67a PF: > { %s8741_s21 = sld [smem:[#allocation17_spill]]  ;;  %s8742_s19 = sld [smem:[#allocation15_spill]] }
 0x67b   : > { %s8743_s26 = sld [smem:[#allocation20_spill]] }
 0x680   : > { %p5970_p11 = scmp.ge.s32.totalorder %s8741_s21, 2  ;;  %s5196_s25 = sand.u32 1, %s8742_s19  }
 0x681   : > { %p8744_p13 = scmp.ne.s32.totalorder %s8743_s26, 0  ;;  %s5197_s17 = scalar_lea.sflag [#allocation4], %s5196_s25 }
 0x683   : > { %p5958_p5 = pnand %p5970_p11, %p8744_p13 }
 0x685   : > { %6713 = dma.done.wait (!%p5958_p5), %s5197_s17, 4096  }
 0x686   : > { %6715 = vsyncadd (!%p5958_p5), %s5197_s17, 4294963200  ;;  %s5206_s13 = scalar_lea.sflag [#allocation10], %s5196_s25 }
 0x687   : > { %6717 = dma.done.wait (!%p5958_p5), %s5206_s13, 4096  }
 0x688   : > { %6719 = vsyncadd (!%p5958_p5), %s5206_s13, 4294963200  ;;  %s8745_s24 = sld [smem:[#allocation18_spill]]  ;;  %s8746_s29 = sld [smem:[#allocation16_spill]] }
 0x689   : > { %s8747_s23 = sld [smem:[#allocation19_spill]]  ;;  %s8748_s21 = smov %s6726_s22 }
 0x68e   : > { %p28_p1 = scmp.ge.s32.totalorder %s8745_s24, 4   ;;  %s8749_s22 = smov %s8746_s29 }
 0x690   :  { %30 = sbr.rel (!%p28_p1) target bundleno = 10 (0xa), region = 129 }
 0x697   :  { %5211 = vsyncpa [#allocation3], 1 }
 0x698   :  { %5213 = vsyncpa [#allocation3 + $0x1], 1 }
 0x699   :  { %5214 = vsyncpa [#allocation6], 1 }
 0x69a   :  { %5215 = vsyncpa [#allocation4], 1 }
 0x69b   :  { %5217 = vsyncpa [#allocation4 + $0x1], 1 }
 0x69c   :  { %5218 = vsyncpa [#allocation10], 1 }
 0x69d   :  { %5220 = vsyncpa [#allocation10 + $0x1], 1 }

</bundles_post_ra>
